<compile_context>
chip_gen: v5e
topology: v5e:2x2
jax: 0.10.0
libtpu: 0.0.40
codegen_flags: <defaults>
</compile_context>

<pallas_src>
import functools

import jax
import jax.numpy as jnp
from jax import lax
from jax.experimental import pallas as pl
from jax.experimental.pallas import tpu as pltpu


# ---------------------------------------------------------------------------
# Fused whole-layer kernel. One grid step == one batch tile of b_blk elements.
#   x_ref    : (T, Bb, D)   decoder input (time-major)
#   enc_ref  : (S, Bb, De)  encoder output (time-major)
#   h0/c0    : (Bb, D)      LSTM initial states
#   mask_ref : (Bb, 1, S)   additive key-padding mask (0 or -1e30), f32
#   out_ref  : (T, Bb, D)   layer output
#   wavg_ref : (Bb, T, S)   head-averaged attention weights
#   xg_sc    : (T, Bb, 4D)  scratch: hoisted x @ W_ih (+bias)
#   y_sc     : (T, Bb, D)   scratch: LSTM hidden states
#   ctx_sc   : (T, Bb, D)   scratch: attention context (per-head column stores)
# ---------------------------------------------------------------------------
def _layer_kernel(
    x_ref, enc_ref, h0_ref, c0_ref, mask_ref,
    wih_ref, whh_ref, bg_ref,
    ln1g_ref, ln1b_ref,
    wq_ref, bq_ref, wkv_ref, bkv_ref, wo_ref, bo_ref,
    ln2g_ref, ln2b_ref,
    w1_ref, b1_ref, w2_ref, b2_ref,
    ln3g_ref, ln3b_ref,
    out_ref, wavg_ref,
    xg_sc, y_sc, ctx_sc,
    *, num_heads):
    T, Bb, D = x_ref.shape
    S = enc_ref.shape[0]
    De = enc_ref.shape[-1]
    H = num_heads
    hd = D // H
    scaling = float(hd) ** -0.5
    cdt = wih_ref.dtype            # MXU operand dtype (f32, or bf16 in production)

    def add_ln(y, res, g, b):      # residual add + LayerNorm, f32 statistics
        z = y + res
        mean = jnp.mean(z, axis=-1, keepdims=True)
        cent = z - mean
        var = jnp.mean(cent * cent, axis=-1, keepdims=True)
        return cent * lax.rsqrt(var + 1e-5) * g + b

    # ---- 1. LSTM sub-layer -------------------------------------------------
    x_in = x_ref[...]                                       # (T, Bb, D) f32
    x_flat = x_in.reshape(T * Bb, D)
    # hoisted input projection: one (T*Bb, D) @ (D, 4D) matmul
    xg = jnp.dot(x_flat.astype(cdt), wih_ref[...],
                 preferred_element_type=jnp.float32) + bg_ref[...]
    xg_sc[...] = xg.reshape(T, Bb, 4 * D)
    whh = whh_ref[...]                                      # (D, 4D), hoisted load

    def step(t, carry):
        h_prev, c_prev = carry                              # (Bb, D) each, f32
        gates = xg_sc[t] + jnp.dot(h_prev.astype(cdt), whh,
                                   preferred_element_type=jnp.float32)  # (Bb, 4D)
        i_g = jax.nn.sigmoid(gates[:, 0:D])
        f_g = jax.nn.sigmoid(gates[:, D:2 * D])
        g_g = jnp.tanh(gates[:, 2 * D:3 * D])
        o_g = jax.nn.sigmoid(gates[:, 3 * D:4 * D])
        c = f_g * c_prev + i_g * g_g
        h = o_g * jnp.tanh(c)
        y_sc[t] = h                                         # sublane-dense when Bb >= 8
        return (h, c)

    # capped unroll: keeps LLO visibility without vreg-spill cliffs at large T
    lax.fori_loop(0, T, step, (h0_ref[...], c0_ref[...]), unroll=min(T, 8))

    # dropout == identity at inference; post-norm
    x1 = add_ln(y_sc[...].reshape(T * Bb, D), x_flat,
                ln1g_ref[...], ln1b_ref[...])               # (T*Bb, D) f32

    # ---- 2. encoder-decoder attention ---------------------------------------
    q = (jnp.dot(x1.astype(cdt), wq_ref[...],
                 preferred_element_type=jnp.float32) + bq_ref[...]) * scaling
    enc_flat = enc_ref[...].reshape(S * Bb, De)
    kv = jnp.dot(enc_flat.astype(cdt), wkv_ref[...],
                 preferred_element_type=jnp.float32) + bkv_ref[...]      # (S*Bb, 2D)
    q3 = q.reshape(T, Bb, D)
    kv3 = kv.reshape(S, Bb, 2 * D)
    mask_all = mask_ref[...]                                # (Bb, 1, S) additive, f32
    inv_h = 1.0 / H

    # TODO(synk): for head_dim >= 128 the per-head static-slice matmuls below are
    # MXU-efficient; for tiny head_dim a head-batched dot_general would fill more
    # contraction depth.
    for b in range(Bb):                                     # static batch-tile loop
        q_b = q3[:, b, :].astype(cdt)                       # (T, D)
        k_b = kv3[:, b, :D].astype(cdt)                     # (S, D)
        v_b = kv3[:, b, D:].astype(cdt)                     # (S, D)
        mask_b = jnp.broadcast_to(mask_all[b], (T, S))      # hoisted out of head loop
        w_sum = jnp.zeros((T, S), jnp.float32)
        for h_i in range(H):                                # static head loop
            sl = slice(h_i * hd, (h_i + 1) * hd)
            scores = lax.dot_general(q_b[:, sl], k_b[:, sl],
                                     (((1,), (1,)), ((), ())),
                                     preferred_element_type=jnp.float32) + mask_b
            m = jnp.max(scores, axis=-1, keepdims=True)
            p = jnp.exp(scores - m)                         # f32 softmax
            probs = p * pl.reciprocal(jnp.sum(p, axis=-1, keepdims=True),
                                      approx=True)
            ctx_part = jnp.dot(probs.astype(cdt), v_b[:, sl],
                               preferred_element_type=jnp.float32)       # (T, hd)
            ctx_sc[:, b:b + 1, sl] = ctx_part.reshape(T, 1, hd)          # slice store
            w_sum = w_sum + probs
        wavg_ref[b] = w_sum * inv_h                         # head-averaged weights

    ctx_flat = ctx_sc[...].reshape(T * Bb, D)
    attn_out = jnp.dot(ctx_flat.astype(cdt), wo_ref[...],
                       preferred_element_type=jnp.float32) + bo_ref[...]
    x2 = add_ln(attn_out, x1, ln2g_ref[...], ln2b_ref[...])

    # ---- 3. FFN sub-layer ----------------------------------------------------
    hmid = jnp.maximum(
        jnp.dot(x2.astype(cdt), w1_ref[...],
                preferred_element_type=jnp.float32) + b1_ref[...], 0.0)
    ffo = jnp.dot(hmid.astype(cdt), w2_ref[...],
                  preferred_element_type=jnp.float32) + b2_ref[...]
    out = add_ln(ffo, x2, ln3g_ref[...], ln3b_ref[...])
    out_ref[...] = out.reshape(T, Bb, D).astype(out_ref.dtype)


def _pick_batch_tile(B):
    # >=8 batch rows per tile fills vreg sublanes / the MXU M axis for the serial
    # LSTM recurrence; fall back to the full batch when B is small or not a
    # multiple of 8 (block shape must then equal the full batch dim).
    for cand in (16, 8):
        if B > cand and B % cand == 0:
            return cand
    return B


# ---------------------------------------------------------------------------
# Forward wrapper: single fused pallas_call, grid over batch tiles.
# ---------------------------------------------------------------------------
@functools.partial(jax.jit, static_argnames=("num_heads",))
def lstm_transformer_decoder_layer(x, init_h, init_c, encoder_out,
                                   encoder_padding_mask, kp, num_heads):
    T, B, D = x.shape
    S, _, De = encoder_out.shape
    Fdim = kp["w1_t"].shape[1]

    b_blk = _pick_batch_tile(B)
    n_tiles = B // b_blk

    # additive key-padding mask (True = padded -> -1e30); always f32
    mask_add = jnp.where(encoder_padding_mask, -1e30, 0.0).astype(
        jnp.float32).reshape(B, 1, S)

    kernel = functools.partial(_layer_kernel, num_heads=num_heads)

    def full_spec(shape):
        zeros = (0,) * len(shape)
        return pl.BlockSpec(shape, lambda b, _z=zeros: _z)

    in_specs = [
        # activations: time-major, batch (middle) axis tiled -> no wrapper transposes
        pl.BlockSpec((T, b_blk, D), lambda b: (0, b, 0)),    # x
        pl.BlockSpec((S, b_blk, De), lambda b: (0, b, 0)),   # encoder_out
        pl.BlockSpec((b_blk, D), lambda b: (b, 0)),          # h0
        pl.BlockSpec((b_blk, D), lambda b: (b, 0)),          # c0
        pl.BlockSpec((b_blk, 1, S), lambda b: (b, 0, 0)),    # additive mask
        # weights: constant block index (VMEM-resident across the grid)
        # TODO(synk): at production D/F, tile w1/w2 over the FFN dim (extra
        # "arbitrary" grid axis) or single-buffer the weight specs to fit v7x VMEM.
        full_spec((D, 4 * D)), full_spec((D, 4 * D)), full_spec((1, 4 * D)),
        full_spec((1, D)), full_spec((1, D)),                # LN1
        full_spec((D, D)), full_spec((1, D)),                # Wq, bq
        full_spec((De, 2 * D)), full_spec((1, 2 * D)),       # Wkv (fused), bkv
        full_spec((D, D)), full_spec((1, D)),                # Wo, bo
        full_spec((1, D)), full_spec((1, D)),                # LN2
        full_spec((D, Fdim)), full_spec((1, Fdim)),          # W1, b1
        full_spec((Fdim, D)), full_spec((1, D)),             # W2, b2
        full_spec((1, D)), full_spec((1, D)),                # LN3
    ]
    out_specs = (
        pl.BlockSpec((T, b_blk, D), lambda b: (0, b, 0)),    # layer output (time-major)
        pl.BlockSpec((b_blk, T, S), lambda b: (b, 0, 0)),    # attn weights (avg heads)
    )

    # rough VMEM budget: double-buffered weights + activations/scratch + headroom
    w_bytes = sum(int(v.size) * v.dtype.itemsize for v in kp.values())
    act_bytes = 4 * (T * b_blk * (8 * D + 4 * D + S + 2 * Fdim)
                     + S * b_blk * (De + 2 * D) + b_blk * T * S)
    vmem_limit = int(min(max(2 * w_bytes + 3 * act_bytes + (4 << 20), 32 << 20),
                         112 << 20))

    out, attn = pl.pallas_call(
        kernel,
        grid=(n_tiles,),
        in_specs=in_specs,
        out_specs=out_specs,
        out_shape=(jax.ShapeDtypeStruct((T, B, D), jnp.float32),
                   jax.ShapeDtypeStruct((B, T, S), jnp.float32)),
        scratch_shapes=[pltpu.VMEM((T, b_blk, 4 * D), jnp.float32),   # hoisted x@W_ih
                        pltpu.VMEM((T, b_blk, D), jnp.float32),       # LSTM outputs
                        pltpu.VMEM((T, b_blk, D), jnp.float32)],      # attn context
        compiler_params=pltpu.CompilerParams(
            dimension_semantics=("parallel",),                        # 2 TCs on v7x
            vmem_limit_bytes=vmem_limit),
    )(x, encoder_out, init_h, init_c, mask_add,
      kp["wih_t"], kp["whh_t"], kp["b_gates"],
      kp["ln1_g"], kp["ln1_b"],
      kp["wq_t"], kp["bq"], kp["wkv_t"], kp["bkv"], kp["wo_t"], kp["bo"],
      kp["ln2_g"], kp["ln2_b"],
      kp["w1_t"], kp["b1"], kp["w2_t"], kp["b2"],
      kp["ln3_g"], kp["ln3_b"])

    return out, attn


# ---------------------------------------------------------------------------
# Parameter init (PyTorch layouts) and one-time kernel-layout preparation.
# ---------------------------------------------------------------------------
def init_params(key, D, De, Fdim):
    ks = jax.random.split(key, 16)
    s = 0.08

    def w(k, shape):
        return jax.random.normal(k, shape, jnp.float32) * s

    return dict(
        # nn.LSTM(embed_dim, embed_dim): weight_ih/hh (4D, D), gate order i,f,g,o
        w_ih=w(ks[0], (4 * D, D)), w_hh=w(ks[1], (4 * D, D)),
        b_ih=w(ks[2], (4 * D,)),   b_hh=w(ks[3], (4 * D,)),
        ln1_g=jnp.ones((D,), jnp.float32), ln1_b=jnp.zeros((D,), jnp.float32),
        # MultiheadAttention projections (PyTorch Linear layout: (out, in))
        wq=w(ks[4], (D, D)),  bq=w(ks[5], (D,)),
        wk=w(ks[6], (D, De)), bk=w(ks[7], (D,)),
        wv=w(ks[8], (D, De)), bv=w(ks[9], (D,)),
        wo=w(ks[10], (D, D)), bo=w(ks[11], (D,)),
        ln2_g=jnp.ones((D,), jnp.float32), ln2_b=jnp.zeros((D,), jnp.float32),
        # FFN
        w1=w(ks[12], (Fdim, D)), b1=w(ks[13], (Fdim,)),
        w2=w(ks[14], (D, Fdim)), b2=w(ks[15], (D,)),
        ln3_g=jnp.ones((D,), jnp.float32), ln3_b=jnp.zeros((D,), jnp.float32),
    )


def prepare_params(p, param_dtype=jnp.float32):
    """One-time conversion to kernel-friendly (in, out) layouts.

    Gate/KV weights are fused; matmul weights cast to `param_dtype` (bf16 for the
    production MXU path); biases and LayerNorm params stay f32.
    """
    D = p["wq"].shape[0]
    Fdim = p["w1"].shape[0]
    wd = param_dtype
    return dict(
        wih_t=p["w_ih"].T.astype(wd),                         # (D, 4D) cols i|f|g|o
        whh_t=p["w_hh"].T.astype(wd),                         # (D, 4D)
        b_gates=(p["b_ih"] + p["b_hh"]).reshape(1, 4 * D).astype(jnp.float32),
        ln1_g=p["ln1_g"].reshape(1, D), ln1_b=p["ln1_b"].reshape(1, D),
        wq_t=p["wq"].T.astype(wd), bq=p["bq"].reshape(1, D),
        wkv_t=jnp.concatenate([p["wk"].T, p["wv"].T], axis=1).astype(wd),  # (De, 2D)
        bkv=jnp.concatenate([p["bk"], p["bv"]]).reshape(1, 2 * D),
        wo_t=p["wo"].T.astype(wd), bo=p["bo"].reshape(1, D),
        ln2_g=p["ln2_g"].reshape(1, D), ln2_b=p["ln2_b"].reshape(1, D),
        w1_t=p["w1"].T.astype(wd), b1=p["b1"].reshape(1, Fdim),
        w2_t=p["w2"].T.astype(wd), b2=p["b2"].reshape(1, D),
        ln3_g=p["ln3_g"].reshape(1, D), ln3_b=p["ln3_b"].reshape(1, D),
    )


# ---------------------------------------------------------------------------
# Pure-JAX reference (mirrors the PyTorch module) for correctness checking.
# ---------------------------------------------------------------------------
def reference_forward(x, h0, c0, enc, pad_mask, p, H):
    T, B, D = x.shape
    S = enc.shape[0]
    hd = D // H

    def ln(y, g, b):
        m = y.mean(-1, keepdims=True)
        c = y - m
        v = (c * c).mean(-1, keepdims=True)
        return c / jnp.sqrt(v + 1e-5) * g + b

    def step(carry, x_t):
        h, c = carry
        gates = (x_t @ p["w_ih"].T + p["b_ih"] + h @ p["w_hh"].T + p["b_hh"])
        i, f, g, o = jnp.split(gates, 4, axis=-1)
        i, f, g, o = jax.nn.sigmoid(i), jax.nn.sigmoid(f), jnp.tanh(g), jax.nn.sigmoid(o)
        c = f * c + i * g
        h = o * jnp.tanh(c)
        return (h, c), h

    _, y = lax.scan(step, (h0, c0), x)
    x1 = ln(y + x, p["ln1_g"], p["ln1_b"])

    q = (x1.reshape(T * B, D) @ p["wq"].T + p["bq"]) * (float(hd) ** -0.5)
    k = enc.reshape(S * B, -1) @ p["wk"].T + p["bk"]
    v = enc.reshape(S * B, -1) @ p["wv"].T + p["bv"]
    qh = q.reshape(T, B, H, hd).transpose(1, 2, 0, 3)
    kh = k.reshape(S, B, H, hd).transpose(1, 2, 0, 3)
    vh = v.reshape(S, B, H, hd).transpose(1, 2, 0, 3)
    scores = jnp.einsum("bhtd,bhsd->bhts", qh, kh)
    scores = scores + jnp.where(pad_mask, -1e30, 0.0)[:, None, None, :]
    probs = jax.nn.softmax(scores, axis=-1)
    attn_w = probs.mean(axis=1)
    ctx = jnp.einsum("bhts,bhsd->bhtd", probs, vh).transpose(2, 0, 1, 3).reshape(T, B, D)
    ao = (ctx.reshape(T * B, D) @ p["wo"].T + p["bo"]).reshape(T, B, D)
    x2 = ln(ao + x1, p["ln2_g"], p["ln2_b"])
    ff = (jnp.maximum(x2.reshape(T * B, D) @ p["w1"].T + p["b1"], 0.0)
          @ p["w2"].T + p["b2"]).reshape(T, B, D)
    x3 = ln(ff + x2, p["ln3_g"], p["ln3_b"])
    return x3, attn_w


if __name__ == "__main__":
    # small shapes: embed_dim=32, ffn=64, heads=4 (head_dim=8), T=8, S=8, B=2
    T, B, D, S, H, Fdim = 8, 2, 32, 8, 4, 64
    De = D  # encoder_embed_dim == embed_dim

    key = jax.random.PRNGKey(0)
    k_x, k_enc, k_h, k_c, k_p = jax.random.split(key, 5)

    x = jax.random.normal(k_x, (T, B, D), jnp.float32)
    encoder_out = jax.random.normal(k_enc, (S, B, De), jnp.float32)
    init_h = jax.random.normal(k_h, (B, D), jnp.float32)
    init_c = jax.random.normal(k_c, (B, D), jnp.float32)
    # key_padding_mask: True = padded; pad the last 2 source positions of batch 1
    # NOTE: rows with ALL keys padded would give a uniform softmax here (PyTorch
    # gives NaN for that degenerate case); not exercised in this test.
    encoder_padding_mask = jnp.zeros((B, S), dtype=bool).at[1, S - 2:].set(True)

    params = init_params(k_p, D, De, Fdim)
    ref_out, ref_attn = reference_forward(
        x, init_h, init_c, encoder_out, encoder_padding_mask, params, H)

    # ---- f32 run: tight check against the pure-JAX reference ----------------
    kp32 = prepare_params(params, jnp.float32)
    out, attn = lstm_transformer_decoder_layer(
        x, init_h, init_c, encoder_out, encoder_padding_mask, kp32, num_heads=H)
    out, attn = jax.block_until_ready((out, attn))

    assert out.shape == (T, B, D)
    assert attn.shape == (B, T, S)
    assert bool(jnp.all(jnp.isfinite(out))) and bool(jnp.all(jnp.isfinite(attn)))
    # attention rows sum to 1 (approx-reciprocal softmax) and padded keys get 0 weight
    assert bool(jnp.allclose(attn.sum(-1), 1.0, atol=5e-3))
    assert bool(jnp.all(attn[1, :, S - 2:] < 1e-6))
    assert bool(jnp.allclose(out, ref_out, atol=5e-3, rtol=5e-3))
    assert bool(jnp.allclose(attn, ref_attn, atol=5e-3, rtol=5e-3))

    # ---- bf16 matmul-operand run (production MXU config); looser tolerance ---
    kp16 = prepare_params(params, jnp.bfloat16)
    out16, attn16 = lstm_transformer_decoder_layer(
        x, init_h, init_c, encoder_out, encoder_padding_mask, kp16, num_heads=H)
    out16, attn16 = jax.block_until_ready((out16, attn16))
    assert bool(jnp.all(jnp.isfinite(out16))) and bool(jnp.all(jnp.isfinite(attn16)))
    assert bool(jnp.allclose(out16, ref_out, atol=8e-2, rtol=8e-2))
    assert bool(jnp.allclose(attn16, ref_attn, atol=3e-2, rtol=3e-2))

    print("KERNEL_OK")
</pallas_src>

<mosaic_0001>
module attributes {stable_mosaic.version = 11 : i64} {
  func.func @_layer_kernel(%arg0: i32, %arg1: memref<8x2x32xf32, #tpu.memory_space<vmem>>, %arg2: memref<8x2x32xf32, #tpu.memory_space<vmem>>, %arg3: memref<2x32xf32, #tpu.memory_space<vmem>>, %arg4: memref<2x32xf32, #tpu.memory_space<vmem>>, %arg5: memref<2x1x8xf32, #tpu.memory_space<vmem>>, %arg6: memref<32x128xf32, #tpu.memory_space<vmem>>, %arg7: memref<32x128xf32, #tpu.memory_space<vmem>>, %arg8: memref<1x128xf32, #tpu.memory_space<vmem>>, %arg9: memref<1x32xf32, #tpu.memory_space<vmem>>, %arg10: memref<1x32xf32, #tpu.memory_space<vmem>>, %arg11: memref<32x32xf32, #tpu.memory_space<vmem>>, %arg12: memref<1x32xf32, #tpu.memory_space<vmem>>, %arg13: memref<32x64xf32, #tpu.memory_space<vmem>>, %arg14: memref<1x64xf32, #tpu.memory_space<vmem>>, %arg15: memref<32x32xf32, #tpu.memory_space<vmem>>, %arg16: memref<1x32xf32, #tpu.memory_space<vmem>>, %arg17: memref<1x32xf32, #tpu.memory_space<vmem>>, %arg18: memref<1x32xf32, #tpu.memory_space<vmem>>, %arg19: memref<32x64xf32, #tpu.memory_space<vmem>>, %arg20: memref<1x64xf32, #tpu.memory_space<vmem>>, %arg21: memref<64x32xf32, #tpu.memory_space<vmem>>, %arg22: memref<1x32xf32, #tpu.memory_space<vmem>>, %arg23: memref<1x32xf32, #tpu.memory_space<vmem>>, %arg24: memref<1x32xf32, #tpu.memory_space<vmem>>, %arg25: memref<8x2x32xf32, #tpu.memory_space<vmem>>, %arg26: memref<2x8x8xf32, #tpu.memory_space<vmem>>, %arg27: memref<8x2x128xf32, #tpu.memory_space<vmem>>, %arg28: memref<8x2x32xf32, #tpu.memory_space<vmem>>, %arg29: memref<8x2x32xf32, #tpu.memory_space<vmem>>) attributes {dimension_semantics = [#tpu.dimension_semantics<parallel>], iteration_bounds = array<i64: 1>, scalar_prefetch = 0 : i64, scratch_operands = 3 : i64, tpu.core_type = #tpu.core_type<tc>, window_params = [{transform_indices = @transform_0, window_bounds = array<i64: 8, 2, 32>}, {transform_indices = @transform_1, window_bounds = array<i64: 8, 2, 32>}, {transform_indices = @transform_2, window_bounds = array<i64: 2, 32>}, {transform_indices = @transform_3, window_bounds = array<i64: 2, 32>}, {transform_indices = @transform_4, window_bounds = array<i64: 2, 1, 8>}, {pipeline_mode = #tpu.pipeline_mode<synchronous>, transform_indices = @transform_5, window_bounds = array<i64: 32, 128>}, {pipeline_mode = #tpu.pipeline_mode<synchronous>, transform_indices = @transform_6, window_bounds = array<i64: 32, 128>}, {pipeline_mode = #tpu.pipeline_mode<synchronous>, transform_indices = @transform_7, window_bounds = array<i64: 1, 128>}, {pipeline_mode = #tpu.pipeline_mode<synchronous>, transform_indices = @transform_8, window_bounds = array<i64: 1, 32>}, {pipeline_mode = #tpu.pipeline_mode<synchronous>, transform_indices = @transform_9, window_bounds = array<i64: 1, 32>}, {pipeline_mode = #tpu.pipeline_mode<synchronous>, transform_indices = @transform_10, window_bounds = array<i64: 32, 32>}, {pipeline_mode = #tpu.pipeline_mode<synchronous>, transform_indices = @transform_11, window_bounds = array<i64: 1, 32>}, {pipeline_mode = #tpu.pipeline_mode<synchronous>, transform_indices = @transform_12, window_bounds = array<i64: 32, 64>}, {pipeline_mode = #tpu.pipeline_mode<synchronous>, transform_indices = @transform_13, window_bounds = array<i64: 1, 64>}, {pipeline_mode = #tpu.pipeline_mode<synchronous>, transform_indices = @transform_14, window_bounds = array<i64: 32, 32>}, {pipeline_mode = #tpu.pipeline_mode<synchronous>, transform_indices = @transform_15, window_bounds = array<i64: 1, 32>}, {pipeline_mode = #tpu.pipeline_mode<synchronous>, transform_indices = @transform_16, window_bounds = array<i64: 1, 32>}, {pipeline_mode = #tpu.pipeline_mode<synchronous>, transform_indices = @transform_17, window_bounds = array<i64: 1, 32>}, {pipeline_mode = #tpu.pipeline_mode<synchronous>, transform_indices = @transform_18, window_bounds = array<i64: 32, 64>}, {pipeline_mode = #tpu.pipeline_mode<synchronous>, transform_indices = @transform_19, window_bounds = array<i64: 1, 64>}, {pipeline_mode = #tpu.pipeline_mode<synchronous>, transform_indices = @transform_20, window_bounds = array<i64: 64, 32>}, {pipeline_mode = #tpu.pipeline_mode<synchronous>, transform_indices = @transform_21, window_bounds = array<i64: 1, 32>}, {pipeline_mode = #tpu.pipeline_mode<synchronous>, transform_indices = @transform_22, window_bounds = array<i64: 1, 32>}, {pipeline_mode = #tpu.pipeline_mode<synchronous>, transform_indices = @transform_23, window_bounds = array<i64: 1, 32>}, {transform_indices = @transform_24, window_bounds = array<i64: 8, 2, 32>}, {transform_indices = @transform_25, window_bounds = array<i64: 2, 8, 8>}]} {
    %c0 = arith.constant 0 : index
    %c0_0 = arith.constant 0 : index
    %c0_1 = arith.constant 0 : index
    %0 = vector.load %arg1[%c0, %c0_0, %c0_1] : memref<8x2x32xf32, #tpu.memory_space<vmem>>, vector<8x2x32xf32>
    %1 = vector.shape_cast %0 : vector<8x2x32xf32> to vector<16x32xf32>
    %c0_2 = arith.constant 0 : index
    %c0_3 = arith.constant 0 : index
    %2 = vector.load %arg6[%c0_2, %c0_3] : memref<32x128xf32, #tpu.memory_space<vmem>>, vector<32x128xf32>
    %cst = arith.constant dense<0.000000e+00> : vector<16x128xf32>
    %3 = tpu.matmul %1, %2, %cst {dimension_numbers = #tpu.dot_dimension_numbers<[1], [0], [0], [1], [0, 0, 1, 1], [], []>} : vector<16x32xf32>, vector<32x128xf32>, vector<16x128xf32> -> vector<16x128xf32>
    %c0_4 = arith.constant 0 : index
    %c0_5 = arith.constant 0 : index
    %4 = vector.load %arg8[%c0_4, %c0_5] : memref<1x128xf32, #tpu.memory_space<vmem>>, vector<1x128xf32>
    %5 = vector.broadcast %4 : vector<1x128xf32> to vector<16x128xf32>
    %6 = arith.addf %3, %5 : vector<16x128xf32>
    %7 = vector.shape_cast %6 : vector<16x128xf32> to vector<8x2x128xf32>
    %c0_6 = arith.constant 0 : index
    %c0_7 = arith.constant 0 : index
    %c0_8 = arith.constant 0 : index
    %8 = vector.load %arg27[%c0_6, %c0_7, %c0_8] : memref<8x2x128xf32, #tpu.memory_space<vmem>>, vector<8x2x128xf32>
    tpu.vector_store %arg27[%c0_6, %c0_7, %c0_8], %7 {strides = array<i32>} : memref<8x2x128xf32, #tpu.memory_space<vmem>>, vector<8x2x128xf32>,
    %c0_9 = arith.constant 0 : index
    %c0_10 = arith.constant 0 : index
    %9 = vector.load %arg7[%c0_9, %c0_10] : memref<32x128xf32, #tpu.memory_space<vmem>>, vector<32x128xf32>
    %c0_11 = arith.constant 0 : index
    %c0_12 = arith.constant 0 : index
    %10 = vector.load %arg3[%c0_11, %c0_12] : memref<2x32xf32, #tpu.memory_space<vmem>>, vector<2x32xf32>
    %c0_13 = arith.constant 0 : index
    %c0_14 = arith.constant 0 : index
    %11 = vector.load %arg4[%c0_13, %c0_14] : memref<2x32xf32, #tpu.memory_space<vmem>>, vector<2x32xf32>
    %c0_i32 = arith.constant 0 : i32
    %12 = arith.index_cast %c0_i32 : i32 to index
    %c0_15 = arith.constant 0 : index
    %c0_16 = arith.constant 0 : index
    %13 = vector.load %arg27[%12, %c0_15, %c0_16] : memref<8x2x128xf32, #tpu.memory_space<vmem>>, vector<1x2x128xf32>
    %14 = vector.shape_cast %13 : vector<1x2x128xf32> to vector<2x128xf32>
    %cst_17 = arith.constant dense<0.000000e+00> : vector<2x128xf32>
    %15 = tpu.matmul %10, %9, %cst_17 {dimension_numbers = #tpu.dot_dimension_numbers<[1], [0], [0], [1], [0, 0, 1, 1], [], []>} : vector<2x32xf32>, vector<32x128xf32>, vector<2x128xf32> -> vector<2x128xf32>
    %16 = arith.addf %14, %15 : vector<2x128xf32>
    %17 = vector.extract_strided_slice %16 {offsets = [0, 0], sizes = [2, 32], strides = [1, 1]} : vector<2x128xf32> to vector<2x32xf32>
    %18 = arith.negf %17 : vector<2x32xf32>
    %19 = math.exp %18 : vector<2x32xf32>
    %cst_18 = arith.constant 1.000000e+00 : f32
    %20 = vector.broadcast %cst_18 : f32 to vector<2x32xf32>
    %21 = arith.addf %20, %19 : vector<2x32xf32>
    %22 = arith.divf %20, %21 : vector<2x32xf32>
    %23 = vector.extract_strided_slice %16 {offsets = [0, 32], sizes = [2, 32], strides = [1, 1]} : vector<2x128xf32> to vector<2x32xf32>
    %24 = arith.negf %23 : vector<2x32xf32>
    %25 = math.exp %24 : vector<2x32xf32>
    %cst_19 = arith.constant 1.000000e+00 : f32
    %26 = vector.broadcast %cst_19 : f32 to vector<2x32xf32>
    %27 = arith.addf %26, %25 : vector<2x32xf32>
    %28 = arith.divf %26, %27 : vector<2x32xf32>
    %29 = vector.extract_strided_slice %16 {offsets = [0, 64], sizes = [2, 32], strides = [1, 1]} : vector<2x128xf32> to vector<2x32xf32>
    %30 = math.tanh %29 : vector<2x32xf32>
    %31 = vector.extract_strided_slice %16 {offsets = [0, 96], sizes = [2, 32], strides = [1, 1]} : vector<2x128xf32> to vector<2x32xf32>
    %32 = arith.negf %31 : vector<2x32xf32>
    %33 = math.exp %32 : vector<2x32xf32>
    %cst_20 = arith.constant 1.000000e+00 : f32
    %34 = vector.broadcast %cst_20 : f32 to vector<2x32xf32>
    %35 = arith.addf %34, %33 : vector<2x32xf32>
    %36 = arith.divf %34, %35 : vector<2x32xf32>
    %37 = arith.mulf %28, %11 : vector<2x32xf32>
    %38 = arith.mulf %22, %30 : vector<2x32xf32>
    %39 = arith.addf %37, %38 : vector<2x32xf32>
    %40 = math.tanh %39 : vector<2x32xf32>
    %41 = arith.mulf %36, %40 : vector<2x32xf32>
    %42 = arith.index_cast %c0_i32 : i32 to index
    %c0_21 = arith.constant 0 : index
    %c0_22 = arith.constant 0 : index
    %43 = vector.load %arg28[%42, %c0_21, %c0_22] : memref<8x2x32xf32, #tpu.memory_space<vmem>>, vector<1x2x32xf32>
    %44 = vector.shape_cast %43 : vector<1x2x32xf32> to vector<2x32xf32>
    %45 = vector.shape_cast %41 : vector<2x32xf32> to vector<1x2x32xf32>
    tpu.vector_store %arg28[%42, %c0_21, %c0_22], %45 {strides = array<i32>} : memref<8x2x32xf32, #tpu.memory_space<vmem>>, vector<1x2x32xf32>,
    %c1_i32 = arith.constant 1 : i32
    %46 = arith.index_cast %c1_i32 : i32 to index
    %c0_23 = arith.constant 0 : index
    %c0_24 = arith.constant 0 : index
    %47 = vector.load %arg27[%46, %c0_23, %c0_24] : memref<8x2x128xf32, #tpu.memory_space<vmem>>, vector<1x2x128xf32>
    %48 = vector.shape_cast %47 : vector<1x2x128xf32> to vector<2x128xf32>
    %cst_25 = arith.constant dense<0.000000e+00> : vector<2x128xf32>
    %49 = tpu.matmul %41, %9, %cst_25 {dimension_numbers = #tpu.dot_dimension_numbers<[1], [0], [0], [1], [0, 0, 1, 1], [], []>} : vector<2x32xf32>, vector<32x128xf32>, vector<2x128xf32> -> vector<2x128xf32>
    %50 = arith.addf %48, %49 : vector<2x128xf32>
    %51 = vector.extract_strided_slice %50 {offsets = [0, 0], sizes = [2, 32], strides = [1, 1]} : vector<2x128xf32> to vector<2x32xf32>
    %52 = arith.negf %51 : vector<2x32xf32>
    %53 = math.exp %52 : vector<2x32xf32>
    %cst_26 = arith.constant 1.000000e+00 : f32
    %54 = vector.broadcast %cst_26 : f32 to vector<2x32xf32>
    %55 = arith.addf %54, %53 : vector<2x32xf32>
    %56 = arith.divf %54, %55 : vector<2x32xf32>
    %57 = vector.extract_strided_slice %50 {offsets = [0, 32], sizes = [2, 32], strides = [1, 1]} : vector<2x128xf32> to vector<2x32xf32>
    %58 = arith.negf %57 : vector<2x32xf32>
    %59 = math.exp %58 : vector<2x32xf32>
    %cst_27 = arith.constant 1.000000e+00 : f32
    %60 = vector.broadcast %cst_27 : f32 to vector<2x32xf32>
    %61 = arith.addf %60, %59 : vector<2x32xf32>
    %62 = arith.divf %60, %61 : vector<2x32xf32>
    %63 = vector.extract_strided_slice %50 {offsets = [0, 64], sizes = [2, 32], strides = [1, 1]} : vector<2x128xf32> to vector<2x32xf32>
    %64 = math.tanh %63 : vector<2x32xf32>
    %65 = vector.extract_strided_slice %50 {offsets = [0, 96], sizes = [2, 32], strides = [1, 1]} : vector<2x128xf32> to vector<2x32xf32>
    %66 = arith.negf %65 : vector<2x32xf32>
    %67 = math.exp %66 : vector<2x32xf32>
    %cst_28 = arith.constant 1.000000e+00 : f32
    %68 = vector.broadcast %cst_28 : f32 to vector<2x32xf32>
    %69 = arith.addf %68, %67 : vector<2x32xf32>
    %70 = arith.divf %68, %69 : vector<2x32xf32>
    %71 = arith.mulf %62, %39 : vector<2x32xf32>
    %72 = arith.mulf %56, %64 : vector<2x32xf32>
    %73 = arith.addf %71, %72 : vector<2x32xf32>
    %74 = math.tanh %73 : vector<2x32xf32>
    %75 = arith.mulf %70, %74 : vector<2x32xf32>
    %76 = arith.index_cast %c1_i32 : i32 to index
    %c0_29 = arith.constant 0 : index
    %c0_30 = arith.constant 0 : index
    %77 = vector.load %arg28[%76, %c0_29, %c0_30] : memref<8x2x32xf32, #tpu.memory_space<vmem>>, vector<1x2x32xf32>
    %78 = vector.shape_cast %77 : vector<1x2x32xf32> to vector<2x32xf32>
    %79 = vector.shape_cast %75 : vector<2x32xf32> to vector<1x2x32xf32>
    tpu.vector_store %arg28[%76, %c0_29, %c0_30], %79 {strides = array<i32>} : memref<8x2x32xf32, #tpu.memory_space<vmem>>, vector<1x2x32xf32>,
    %c2_i32 = arith.constant 2 : i32
    %80 = arith.index_cast %c2_i32 : i32 to index
    %c0_31 = arith.constant 0 : index
    %c0_32 = arith.constant 0 : index
    %81 = vector.load %arg27[%80, %c0_31, %c0_32] : memref<8x2x128xf32, #tpu.memory_space<vmem>>, vector<1x2x128xf32>
    %82 = vector.shape_cast %81 : vector<1x2x128xf32> to vector<2x128xf32>
    %cst_33 = arith.constant dense<0.000000e+00> : vector<2x128xf32>
    %83 = tpu.matmul %75, %9, %cst_33 {dimension_numbers = #tpu.dot_dimension_numbers<[1], [0], [0], [1], [0, 0, 1, 1], [], []>} : vector<2x32xf32>, vector<32x128xf32>, vector<2x128xf32> -> vector<2x128xf32>
    %84 = arith.addf %82, %83 : vector<2x128xf32>
    %85 = vector.extract_strided_slice %84 {offsets = [0, 0], sizes = [2, 32], strides = [1, 1]} : vector<2x128xf32> to vector<2x32xf32>
    %86 = arith.negf %85 : vector<2x32xf32>
    %87 = math.exp %86 : vector<2x32xf32>
    %cst_34 = arith.constant 1.000000e+00 : f32
    %88 = vector.broadcast %cst_34 : f32 to vector<2x32xf32>
    %89 = arith.addf %88, %87 : vector<2x32xf32>
    %90 = arith.divf %88, %89 : vector<2x32xf32>
    %91 = vector.extract_strided_slice %84 {offsets = [0, 32], sizes = [2, 32], strides = [1, 1]} : vector<2x128xf32> to vector<2x32xf32>
    %92 = arith.negf %91 : vector<2x32xf32>
    %93 = math.exp %92 : vector<2x32xf32>
    %cst_35 = arith.constant 1.000000e+00 : f32
    %94 = vector.broadcast %cst_35 : f32 to vector<2x32xf32>
    %95 = arith.addf %94, %93 : vector<2x32xf32>
    %96 = arith.divf %94, %95 : vector<2x32xf32>
    %97 = vector.extract_strided_slice %84 {offsets = [0, 64], sizes = [2, 32], strides = [1, 1]} : vector<2x128xf32> to vector<2x32xf32>
    %98 = math.tanh %97 : vector<2x32xf32>
    %99 = vector.extract_strided_slice %84 {offsets = [0, 96], sizes = [2, 32], strides = [1, 1]} : vector<2x128xf32> to vector<2x32xf32>
    %100 = arith.negf %99 : vector<2x32xf32>
    %101 = math.exp %100 : vector<2x32xf32>
    %cst_36 = arith.constant 1.000000e+00 : f32
    %102 = vector.broadcast %cst_36 : f32 to vector<2x32xf32>
    %103 = arith.addf %102, %101 : vector<2x32xf32>
    %104 = arith.divf %102, %103 : vector<2x32xf32>
    %105 = arith.mulf %96, %73 : vector<2x32xf32>
    %106 = arith.mulf %90, %98 : vector<2x32xf32>
    %107 = arith.addf %105, %106 : vector<2x32xf32>
    %108 = math.tanh %107 : vector<2x32xf32>
    %109 = arith.mulf %104, %108 : vector<2x32xf32>
    %110 = arith.index_cast %c2_i32 : i32 to index
    %c0_37 = arith.constant 0 : index
    %c0_38 = arith.constant 0 : index
    %111 = vector.load %arg28[%110, %c0_37, %c0_38] : memref<8x2x32xf32, #tpu.memory_space<vmem>>, vector<1x2x32xf32>
    %112 = vector.shape_cast %111 : vector<1x2x32xf32> to vector<2x32xf32>
    %113 = vector.shape_cast %109 : vector<2x32xf32> to vector<1x2x32xf32>
    tpu.vector_store %arg28[%110, %c0_37, %c0_38], %113 {strides = array<i32>} : memref<8x2x32xf32, #tpu.memory_space<vmem>>, vector<1x2x32xf32>,
    %c3_i32 = arith.constant 3 : i32
    %114 = arith.index_cast %c3_i32 : i32 to index
    %c0_39 = arith.constant 0 : index
    %c0_40 = arith.constant 0 : index
    %115 = vector.load %arg27[%114, %c0_39, %c0_40] : memref<8x2x128xf32, #tpu.memory_space<vmem>>, vector<1x2x128xf32>
    %116 = vector.shape_cast %115 : vector<1x2x128xf32> to vector<2x128xf32>
    %cst_41 = arith.constant dense<0.000000e+00> : vector<2x128xf32>
    %117 = tpu.matmul %109, %9, %cst_41 {dimension_numbers = #tpu.dot_dimension_numbers<[1], [0], [0], [1], [0, 0, 1, 1], [], []>} : vector<2x32xf32>, vector<32x128xf32>, vector<2x128xf32> -> vector<2x128xf32>
    %118 = arith.addf %116, %117 : vector<2x128xf32>
    %119 = vector.extract_strided_slice %118 {offsets = [0, 0], sizes = [2, 32], strides = [1, 1]} : vector<2x128xf32> to vector<2x32xf32>
    %120 = arith.negf %119 : vector<2x32xf32>
    %121 = math.exp %120 : vector<2x32xf32>
    %cst_42 = arith.constant 1.000000e+00 : f32
    %122 = vector.broadcast %cst_42 : f32 to vector<2x32xf32>
    %123 = arith.addf %122, %121 : vector<2x32xf32>
    %124 = arith.divf %122, %123 : vector<2x32xf32>
    %125 = vector.extract_strided_slice %118 {offsets = [0, 32], sizes = [2, 32], strides = [1, 1]} : vector<2x128xf32> to vector<2x32xf32>
    %126 = arith.negf %125 : vector<2x32xf32>
    %127 = math.exp %126 : vector<2x32xf32>
    %cst_43 = arith.constant 1.000000e+00 : f32
    %128 = vector.broadcast %cst_43 : f32 to vector<2x32xf32>
    %129 = arith.addf %128, %127 : vector<2x32xf32>
    %130 = arith.divf %128, %129 : vector<2x32xf32>
    %131 = vector.extract_strided_slice %118 {offsets = [0, 64], sizes = [2, 32], strides = [1, 1]} : vector<2x128xf32> to vector<2x32xf32>
    %132 = math.tanh %131 : vector<2x32xf32>
    %133 = vector.extract_strided_slice %118 {offsets = [0, 96], sizes = [2, 32], strides = [1, 1]} : vector<2x128xf32> to vector<2x32xf32>
    %134 = arith.negf %133 : vector<2x32xf32>
    %135 = math.exp %134 : vector<2x32xf32>
    %cst_44 = arith.constant 1.000000e+00 : f32
    %136 = vector.broadcast %cst_44 : f32 to vector<2x32xf32>
    %137 = arith.addf %136, %135 : vector<2x32xf32>
    %138 = arith.divf %136, %137 : vector<2x32xf32>
    %139 = arith.mulf %130, %107 : vector<2x32xf32>
    %140 = arith.mulf %124, %132 : vector<2x32xf32>
    %141 = arith.addf %139, %140 : vector<2x32xf32>
    %142 = math.tanh %141 : vector<2x32xf32>
    %143 = arith.mulf %138, %142 : vector<2x32xf32>
    %144 = arith.index_cast %c3_i32 : i32 to index
    %c0_45 = arith.constant 0 : index
    %c0_46 = arith.constant 0 : index
    %145 = vector.load %arg28[%144, %c0_45, %c0_46] : memref<8x2x32xf32, #tpu.memory_space<vmem>>, vector<1x2x32xf32>
    %146 = vector.shape_cast %145 : vector<1x2x32xf32> to vector<2x32xf32>
    %147 = vector.shape_cast %143 : vector<2x32xf32> to vector<1x2x32xf32>
    tpu.vector_store %arg28[%144, %c0_45, %c0_46], %147 {strides = array<i32>} : memref<8x2x32xf32, #tpu.memory_space<vmem>>, vector<1x2x32xf32>,
    %c4_i32 = arith.constant 4 : i32
    %148 = arith.index_cast %c4_i32 : i32 to index
    %c0_47 = arith.constant 0 : index
    %c0_48 = arith.constant 0 : index
    %149 = vector.load %arg27[%148, %c0_47, %c0_48] : memref<8x2x128xf32, #tpu.memory_space<vmem>>, vector<1x2x128xf32>
    %150 = vector.shape_cast %149 : vector<1x2x128xf32> to vector<2x128xf32>
    %cst_49 = arith.constant dense<0.000000e+00> : vector<2x128xf32>
    %151 = tpu.matmul %143, %9, %cst_49 {dimension_numbers = #tpu.dot_dimension_numbers<[1], [0], [0], [1], [0, 0, 1, 1], [], []>} : vector<2x32xf32>, vector<32x128xf32>, vector<2x128xf32> -> vector<2x128xf32>
    %152 = arith.addf %150, %151 : vector<2x128xf32>
    %153 = vector.extract_strided_slice %152 {offsets = [0, 0], sizes = [2, 32], strides = [1, 1]} : vector<2x128xf32> to vector<2x32xf32>
    %154 = arith.negf %153 : vector<2x32xf32>
    %155 = math.exp %154 : vector<2x32xf32>
    %cst_50 = arith.constant 1.000000e+00 : f32
    %156 = vector.broadcast %cst_50 : f32 to vector<2x32xf32>
    %157 = arith.addf %156, %155 : vector<2x32xf32>
    %158 = arith.divf %156, %157 : vector<2x32xf32>
    %159 = vector.extract_strided_slice %152 {offsets = [0, 32], sizes = [2, 32], strides = [1, 1]} : vector<2x128xf32> to vector<2x32xf32>
    %160 = arith.negf %159 : vector<2x32xf32>
    %161 = math.exp %160 : vector<2x32xf32>
    %cst_51 = arith.constant 1.000000e+00 : f32
    %162 = vector.broadcast %cst_51 : f32 to vector<2x32xf32>
    %163 = arith.addf %162, %161 : vector<2x32xf32>
    %164 = arith.divf %162, %163 : vector<2x32xf32>
    %165 = vector.extract_strided_slice %152 {offsets = [0, 64], sizes = [2, 32], strides = [1, 1]} : vector<2x128xf32> to vector<2x32xf32>
    %166 = math.tanh %165 : vector<2x32xf32>
    %167 = vector.extract_strided_slice %152 {offsets = [0, 96], sizes = [2, 32], strides = [1, 1]} : vector<2x128xf32> to vector<2x32xf32>
    %168 = arith.negf %167 : vector<2x32xf32>
    %169 = math.exp %168 : vector<2x32xf32>
    %cst_52 = arith.constant 1.000000e+00 : f32
    %170 = vector.broadcast %cst_52 : f32 to vector<2x32xf32>
    %171 = arith.addf %170, %169 : vector<2x32xf32>
    %172 = arith.divf %170, %171 : vector<2x32xf32>
    %173 = arith.mulf %164, %141 : vector<2x32xf32>
    %174 = arith.mulf %158, %166 : vector<2x32xf32>
    %175 = arith.addf %173, %174 : vector<2x32xf32>
    %176 = math.tanh %175 : vector<2x32xf32>
    %177 = arith.mulf %172, %176 : vector<2x32xf32>
    %178 = arith.index_cast %c4_i32 : i32 to index
    %c0_53 = arith.constant 0 : index
    %c0_54 = arith.constant 0 : index
    %179 = vector.load %arg28[%178, %c0_53, %c0_54] : memref<8x2x32xf32, #tpu.memory_space<vmem>>, vector<1x2x32xf32>
    %180 = vector.shape_cast %179 : vector<1x2x32xf32> to vector<2x32xf32>
    %181 = vector.shape_cast %177 : vector<2x32xf32> to vector<1x2x32xf32>
    tpu.vector_store %arg28[%178, %c0_53, %c0_54], %181 {strides = array<i32>} : memref<8x2x32xf32, #tpu.memory_space<vmem>>, vector<1x2x32xf32>,
    %c5_i32 = arith.constant 5 : i32
    %182 = arith.index_cast %c5_i32 : i32 to index
    %c0_55 = arith.constant 0 : index
    %c0_56 = arith.constant 0 : index
    %183 = vector.load %arg27[%182, %c0_55, %c0_56] : memref<8x2x128xf32, #tpu.memory_space<vmem>>, vector<1x2x128xf32>
    %184 = vector.shape_cast %183 : vector<1x2x128xf32> to vector<2x128xf32>
    %cst_57 = arith.constant dense<0.000000e+00> : vector<2x128xf32>
    %185 = tpu.matmul %177, %9, %cst_57 {dimension_numbers = #tpu.dot_dimension_numbers<[1], [0], [0], [1], [0, 0, 1, 1], [], []>} : vector<2x32xf32>, vector<32x128xf32>, vector<2x128xf32> -> vector<2x128xf32>
    %186 = arith.addf %184, %185 : vector<2x128xf32>
    %187 = vector.extract_strided_slice %186 {offsets = [0, 0], sizes = [2, 32], strides = [1, 1]} : vector<2x128xf32> to vector<2x32xf32>
    %188 = arith.negf %187 : vector<2x32xf32>
    %189 = math.exp %188 : vector<2x32xf32>
    %cst_58 = arith.constant 1.000000e+00 : f32
    %190 = vector.broadcast %cst_58 : f32 to vector<2x32xf32>
    %191 = arith.addf %190, %189 : vector<2x32xf32>
    %192 = arith.divf %190, %191 : vector<2x32xf32>
    %193 = vector.extract_strided_slice %186 {offsets = [0, 32], sizes = [2, 32], strides = [1, 1]} : vector<2x128xf32> to vector<2x32xf32>
    %194 = arith.negf %193 : vector<2x32xf32>
    %195 = math.exp %194 : vector<2x32xf32>
    %cst_59 = arith.constant 1.000000e+00 : f32
    %196 = vector.broadcast %cst_59 : f32 to vector<2x32xf32>
    %197 = arith.addf %196, %195 : vector<2x32xf32>
    %198 = arith.divf %196, %197 : vector<2x32xf32>
    %199 = vector.extract_strided_slice %186 {offsets = [0, 64], sizes = [2, 32], strides = [1, 1]} : vector<2x128xf32> to vector<2x32xf32>
    %200 = math.tanh %199 : vector<2x32xf32>
    %201 = vector.extract_strided_slice %186 {offsets = [0, 96], sizes = [2, 32], strides = [1, 1]} : vector<2x128xf32> to vector<2x32xf32>
    %202 = arith.negf %201 : vector<2x32xf32>
    %203 = math.exp %202 : vector<2x32xf32>
    %cst_60 = arith.constant 1.000000e+00 : f32
    %204 = vector.broadcast %cst_60 : f32 to vector<2x32xf32>
    %205 = arith.addf %204, %203 : vector<2x32xf32>
    %206 = arith.divf %204, %205 : vector<2x32xf32>
    %207 = arith.mulf %198, %175 : vector<2x32xf32>
    %208 = arith.mulf %192, %200 : vector<2x32xf32>
    %209 = arith.addf %207, %208 : vector<2x32xf32>
    %210 = math.tanh %209 : vector<2x32xf32>
    %211 = arith.mulf %206, %210 : vector<2x32xf32>
    %212 = arith.index_cast %c5_i32 : i32 to index
    %c0_61 = arith.constant 0 : index
    %c0_62 = arith.constant 0 : index
    %213 = vector.load %arg28[%212, %c0_61, %c0_62] : memref<8x2x32xf32, #tpu.memory_space<vmem>>, vector<1x2x32xf32>
    %214 = vector.shape_cast %213 : vector<1x2x32xf32> to vector<2x32xf32>
    %215 = vector.shape_cast %211 : vector<2x32xf32> to vector<1x2x32xf32>
    tpu.vector_store %arg28[%212, %c0_61, %c0_62], %215 {strides = array<i32>} : memref<8x2x32xf32, #tpu.memory_space<vmem>>, vector<1x2x32xf32>,
    %c6_i32 = arith.constant 6 : i32
    %216 = arith.index_cast %c6_i32 : i32 to index
    %c0_63 = arith.constant 0 : index
    %c0_64 = arith.constant 0 : index
    %217 = vector.load %arg27[%216, %c0_63, %c0_64] : memref<8x2x128xf32, #tpu.memory_space<vmem>>, vector<1x2x128xf32>
    %218 = vector.shape_cast %217 : vector<1x2x128xf32> to vector<2x128xf32>
    %cst_65 = arith.constant dense<0.000000e+00> : vector<2x128xf32>
    %219 = tpu.matmul %211, %9, %cst_65 {dimension_numbers = #tpu.dot_dimension_numbers<[1], [0], [0], [1], [0, 0, 1, 1], [], []>} : vector<2x32xf32>, vector<32x128xf32>, vector<2x128xf32> -> vector<2x128xf32>
    %220 = arith.addf %218, %219 : vector<2x128xf32>
    %221 = vector.extract_strided_slice %220 {offsets = [0, 0], sizes = [2, 32], strides = [1, 1]} : vector<2x128xf32> to vector<2x32xf32>
    %222 = arith.negf %221 : vector<2x32xf32>
    %223 = math.exp %222 : vector<2x32xf32>
    %cst_66 = arith.constant 1.000000e+00 : f32
    %224 = vector.broadcast %cst_66 : f32 to vector<2x32xf32>
    %225 = arith.addf %224, %223 : vector<2x32xf32>
    %226 = arith.divf %224, %225 : vector<2x32xf32>
    %227 = vector.extract_strided_slice %220 {offsets = [0, 32], sizes = [2, 32], strides = [1, 1]} : vector<2x128xf32> to vector<2x32xf32>
    %228 = arith.negf %227 : vector<2x32xf32>
    %229 = math.exp %228 : vector<2x32xf32>
    %cst_67 = arith.constant 1.000000e+00 : f32
    %230 = vector.broadcast %cst_67 : f32 to vector<2x32xf32>
    %231 = arith.addf %230, %229 : vector<2x32xf32>
    %232 = arith.divf %230, %231 : vector<2x32xf32>
    %233 = vector.extract_strided_slice %220 {offsets = [0, 64], sizes = [2, 32], strides = [1, 1]} : vector<2x128xf32> to vector<2x32xf32>
    %234 = math.tanh %233 : vector<2x32xf32>
    %235 = vector.extract_strided_slice %220 {offsets = [0, 96], sizes = [2, 32], strides = [1, 1]} : vector<2x128xf32> to vector<2x32xf32>
    %236 = arith.negf %235 : vector<2x32xf32>
    %237 = math.exp %236 : vector<2x32xf32>
    %cst_68 = arith.constant 1.000000e+00 : f32
    %238 = vector.broadcast %cst_68 : f32 to vector<2x32xf32>
    %239 = arith.addf %238, %237 : vector<2x32xf32>
    %240 = arith.divf %238, %239 : vector<2x32xf32>
    %241 = arith.mulf %232, %209 : vector<2x32xf32>
    %242 = arith.mulf %226, %234 : vector<2x32xf32>
    %243 = arith.addf %241, %242 : vector<2x32xf32>
    %244 = math.tanh %243 : vector<2x32xf32>
    %245 = arith.mulf %240, %244 : vector<2x32xf32>
    %246 = arith.index_cast %c6_i32 : i32 to index
    %c0_69 = arith.constant 0 : index
    %c0_70 = arith.constant 0 : index
    %247 = vector.load %arg28[%246, %c0_69, %c0_70] : memref<8x2x32xf32, #tpu.memory_space<vmem>>, vector<1x2x32xf32>
    %248 = vector.shape_cast %247 : vector<1x2x32xf32> to vector<2x32xf32>
    %249 = vector.shape_cast %245 : vector<2x32xf32> to vector<1x2x32xf32>
    tpu.vector_store %arg28[%246, %c0_69, %c0_70], %249 {strides = array<i32>} : memref<8x2x32xf32, #tpu.memory_space<vmem>>, vector<1x2x32xf32>,
    %c7_i32 = arith.constant 7 : i32
    %250 = arith.index_cast %c7_i32 : i32 to index
    %c0_71 = arith.constant 0 : index
    %c0_72 = arith.constant 0 : index
    %251 = vector.load %arg27[%250, %c0_71, %c0_72] : memref<8x2x128xf32, #tpu.memory_space<vmem>>, vector<1x2x128xf32>
    %252 = vector.shape_cast %251 : vector<1x2x128xf32> to vector<2x128xf32>
    %cst_73 = arith.constant dense<0.000000e+00> : vector<2x128xf32>
    %253 = tpu.matmul %245, %9, %cst_73 {dimension_numbers = #tpu.dot_dimension_numbers<[1], [0], [0], [1], [0, 0, 1, 1], [], []>} : vector<2x32xf32>, vector<32x128xf32>, vector<2x128xf32> -> vector<2x128xf32>
    %254 = arith.addf %252, %253 : vector<2x128xf32>
    %255 = vector.extract_strided_slice %254 {offsets = [0, 0], sizes = [2, 32], strides = [1, 1]} : vector<2x128xf32> to vector<2x32xf32>
    %256 = arith.negf %255 : vector<2x32xf32>
    %257 = math.exp %256 : vector<2x32xf32>
    %cst_74 = arith.constant 1.000000e+00 : f32
    %258 = vector.broadcast %cst_74 : f32 to vector<2x32xf32>
    %259 = arith.addf %258, %257 : vector<2x32xf32>
    %260 = arith.divf %258, %259 : vector<2x32xf32>
    %261 = vector.extract_strided_slice %254 {offsets = [0, 32], sizes = [2, 32], strides = [1, 1]} : vector<2x128xf32> to vector<2x32xf32>
    %262 = arith.negf %261 : vector<2x32xf32>
    %263 = math.exp %262 : vector<2x32xf32>
    %cst_75 = arith.constant 1.000000e+00 : f32
    %264 = vector.broadcast %cst_75 : f32 to vector<2x32xf32>
    %265 = arith.addf %264, %263 : vector<2x32xf32>
    %266 = arith.divf %264, %265 : vector<2x32xf32>
    %267 = vector.extract_strided_slice %254 {offsets = [0, 64], sizes = [2, 32], strides = [1, 1]} : vector<2x128xf32> to vector<2x32xf32>
    %268 = math.tanh %267 : vector<2x32xf32>
    %269 = vector.extract_strided_slice %254 {offsets = [0, 96], sizes = [2, 32], strides = [1, 1]} : vector<2x128xf32> to vector<2x32xf32>
    %270 = arith.negf %269 : vector<2x32xf32>
    %271 = math.exp %270 : vector<2x32xf32>
    %cst_76 = arith.constant 1.000000e+00 : f32
    %272 = vector.broadcast %cst_76 : f32 to vector<2x32xf32>
    %273 = arith.addf %272, %271 : vector<2x32xf32>
    %274 = arith.divf %272, %273 : vector<2x32xf32>
    %275 = arith.mulf %266, %243 : vector<2x32xf32>
    %276 = arith.mulf %260, %268 : vector<2x32xf32>
    %277 = arith.addf %275, %276 : vector<2x32xf32>
    %278 = math.tanh %277 : vector<2x32xf32>
    %279 = arith.mulf %274, %278 : vector<2x32xf32>
    %280 = arith.index_cast %c7_i32 : i32 to index
    %c0_77 = arith.constant 0 : index
    %c0_78 = arith.constant 0 : index
    %281 = vector.load %arg28[%280, %c0_77, %c0_78] : memref<8x2x32xf32, #tpu.memory_space<vmem>>, vector<1x2x32xf32>
    %282 = vector.shape_cast %281 : vector<1x2x32xf32> to vector<2x32xf32>
    %283 = vector.shape_cast %279 : vector<2x32xf32> to vector<1x2x32xf32>
    tpu.vector_store %arg28[%280, %c0_77, %c0_78], %283 {strides = array<i32>} : memref<8x2x32xf32, #tpu.memory_space<vmem>>, vector<1x2x32xf32>,
    %c8_i32 = arith.constant 8 : i32
    %c0_79 = arith.constant 0 : index
    %c0_80 = arith.constant 0 : index
    %c0_81 = arith.constant 0 : index
    %284 = vector.load %arg28[%c0_79, %c0_80, %c0_81] : memref<8x2x32xf32, #tpu.memory_space<vmem>>, vector<8x2x32xf32>
    %285 = vector.shape_cast %284 : vector<8x2x32xf32> to vector<16x32xf32>
    %c0_82 = arith.constant 0 : index
    %c0_83 = arith.constant 0 : index
    %286 = vector.load %arg9[%c0_82, %c0_83] : memref<1x32xf32, #tpu.memory_space<vmem>>, vector<1x32xf32>
    %c0_84 = arith.constant 0 : index
    %c0_85 = arith.constant 0 : index
    %287 = vector.load %arg10[%c0_84, %c0_85] : memref<1x32xf32, #tpu.memory_space<vmem>>, vector<1x32xf32>
    %288 = arith.addf %285, %1 : vector<16x32xf32>
    %cst_86 = arith.constant dense<0.000000e+00> : vector<16xf32>
    %289 = vector.multi_reduction <add>, %288, %cst_86 [1] : vector<16x32xf32> to vector<16xf32>
    %290 = vector.shape_cast %289 : vector<16xf32> to vector<16x1xf32>
    %cst_87 = arith.constant 3.200000e+01 : f32
    %291 = vector.broadcast %cst_87 : f32 to vector<16x1xf32>
    %292 = arith.divf %290, %291 : vector<16x1xf32>
    %293 = vector.broadcast %292 : vector<16x1xf32> to vector<16x32xf32>
    %294 = arith.subf %288, %293 : vector<16x32xf32>
    %295 = arith.mulf %294, %294 : vector<16x32xf32>
    %cst_88 = arith.constant dense<0.000000e+00> : vector<16xf32>
    %296 = vector.multi_reduction <add>, %295, %cst_88 [1] : vector<16x32xf32> to vector<16xf32>
    %297 = vector.shape_cast %296 : vector<16xf32> to vector<16x1xf32>
    %cst_89 = arith.constant 3.200000e+01 : f32
    %298 = vector.broadcast %cst_89 : f32 to vector<16x1xf32>
    %299 = arith.divf %297, %298 : vector<16x1xf32>
    %cst_90 = arith.constant 9.99999974E-6 : f32
    %300 = vector.broadcast %cst_90 : f32 to vector<16x1xf32>
    %301 = arith.addf %299, %300 : vector<16x1xf32>
    %302 = math.rsqrt %301 : vector<16x1xf32>
    %303 = vector.broadcast %302 : vector<16x1xf32> to vector<16x32xf32>
    %304 = arith.mulf %294, %303 : vector<16x32xf32>
    %305 = vector.broadcast %286 : vector<1x32xf32> to vector<16x32xf32>
    %306 = arith.mulf %304, %305 : vector<16x32xf32>
    %307 = vector.broadcast %287 : vector<1x32xf32> to vector<16x32xf32>
    %308 = arith.addf %306, %307 : vector<16x32xf32>
    %c0_91 = arith.constant 0 : index
    %c0_92 = arith.constant 0 : index
    %309 = vector.load %arg11[%c0_91, %c0_92] : memref<32x32xf32, #tpu.memory_space<vmem>>, vector<32x32xf32>
    %cst_93 = arith.constant dense<0.000000e+00> : vector<16x32xf32>
    %310 = tpu.matmul %308, %309, %cst_93 {dimension_numbers = #tpu.dot_dimension_numbers<[1], [0], [0], [1], [0, 0, 1, 1], [], []>} : vector<16x32xf32>, vector<32x32xf32>, vector<16x32xf32> -> vector<16x32xf32>
    %c0_94 = arith.constant 0 : index
    %c0_95 = arith.constant 0 : index
    %311 = vector.load %arg12[%c0_94, %c0_95] : memref<1x32xf32, #tpu.memory_space<vmem>>, vector<1x32xf32>
    %312 = vector.broadcast %311 : vector<1x32xf32> to vector<16x32xf32>
    %313 = arith.addf %310, %312 : vector<16x32xf32>
    %cst_96 = arith.constant 0.353553385 : f32
    %314 = vector.broadcast %cst_96 : f32 to vector<16x32xf32>
    %315 = arith.mulf %313, %314 : vector<16x32xf32>
    %c0_97 = arith.constant 0 : index
    %c0_98 = arith.constant 0 : index
    %c0_99 = arith.constant 0 : index
    %316 = vector.load %arg2[%c0_97, %c0_98, %c0_99] : memref<8x2x32xf32, #tpu.memory_space<vmem>>, vector<8x2x32xf32>
    %317 = vector.shape_cast %316 : vector<8x2x32xf32> to vector<16x32xf32>
    %c0_100 = arith.constant 0 : index
    %c0_101 = arith.constant 0 : index
    %318 = vector.load %arg13[%c0_100, %c0_101] : memref<32x64xf32, #tpu.memory_space<vmem>>, vector<32x64xf32>
    %cst_102 = arith.constant dense<0.000000e+00> : vector<16x64xf32>
    %319 = tpu.matmul %317, %318, %cst_102 {dimension_numbers = #tpu.dot_dimension_numbers<[1], [0], [0], [1], [0, 0, 1, 1], [], []>} : vector<16x32xf32>, vector<32x64xf32>, vector<16x64xf32> -> vector<16x64xf32>
    %c0_103 = arith.constant 0 : index
    %c0_104 = arith.constant 0 : index
    %320 = vector.load %arg14[%c0_103, %c0_104] : memref<1x64xf32, #tpu.memory_space<vmem>>, vector<1x64xf32>
    %321 = vector.broadcast %320 : vector<1x64xf32> to vector<16x64xf32>
    %322 = arith.addf %319, %321 : vector<16x64xf32>
    %323 = vector.shape_cast %315 : vector<16x32xf32> to vector<8x2x32xf32>
    %324 = vector.shape_cast %322 : vector<16x64xf32> to vector<8x2x64xf32>
    %c0_105 = arith.constant 0 : index
    %c0_106 = arith.constant 0 : index
    %c0_107 = arith.constant 0 : index
    %325 = vector.load %arg5[%c0_105, %c0_106, %c0_107] : memref<2x1x8xf32, #tpu.memory_space<vmem>>, vector<2x1x8xf32>
    %326 = vector.extract_strided_slice %323 {offsets = [0, 0, 0], sizes = [8, 1, 32], strides = [1, 1, 1]} : vector<8x2x32xf32> to vector<8x1x32xf32>
    %327 = vector.shape_cast %326 : vector<8x1x32xf32> to vector<8x32xf32>
    %328 = vector.extract_strided_slice %324 {offsets = [0, 0, 0], sizes = [8, 1, 32], strides = [1, 1, 1]} : vector<8x2x64xf32> to vector<8x1x32xf32>
    %329 = vector.shape_cast %328 : vector<8x1x32xf32> to vector<8x32xf32>
    %330 = vector.extract_strided_slice %324 {offsets = [0, 0, 32], sizes = [8, 1, 32], strides = [1, 1, 1]} : vector<8x2x64xf32> to vector<8x1x32xf32>
    %331 = vector.shape_cast %330 : vector<8x1x32xf32> to vector<8x32xf32>
    %332 = vector.extract_strided_slice %325 {offsets = [0, 0, 0], sizes = [1, 1, 8], strides = [1, 1, 1]} : vector<2x1x8xf32> to vector<1x1x8xf32>
    %333 = vector.shape_cast %332 : vector<1x1x8xf32> to vector<1x8xf32>
    %334 = vector.shape_cast %333 : vector<1x8xf32> to vector<1x8xf32>
    %335 = vector.broadcast %334 : vector<1x8xf32> to vector<8x8xf32>
    %cst_108 = arith.constant 0.000000e+00 : f32
    %336 = vector.broadcast %cst_108 : f32 to vector<8x8xf32>
    %337 = vector.extract_strided_slice %327 {offsets = [0, 0], sizes = [8, 8], strides = [1, 1]} : vector<8x32xf32> to vector<8x8xf32>
    %338 = vector.extract_strided_slice %329 {offsets = [0, 0], sizes = [8, 8], strides = [1, 1]} : vector<8x32xf32> to vector<8x8xf32>
    %cst_109 = arith.constant dense<0.000000e+00> : vector<8x8xf32>
    %339 = tpu.matmul %337, %338, %cst_109 {dimension_numbers = #tpu.dot_dimension_numbers<[1], [1], [0], [0], [0, 0, 1, 0], [], []>} : vector<8x8xf32>, vector<8x8xf32>, vector<8x8xf32> -> vector<8x8xf32>
    %340 = arith.addf %339, %335 : vector<8x8xf32>
    %cst_110 = arith.constant dense<0xFF800000> : vector<8xf32>
    %341 = vector.multi_reduction <maximumf>, %340, %cst_110 [1] : vector<8x8xf32> to vector<8xf32>
    %342 = vector.shape_cast %341 : vector<8xf32> to vector<8x1xf32>
    %343 = vector.broadcast %342 : vector<8x1xf32> to vector<8x8xf32>
    %344 = arith.subf %340, %343 : vector<8x8xf32>
    %345 = math.exp %344 : vector<8x8xf32>
    %cst_111 = arith.constant dense<0.000000e+00> : vector<8xf32>
    %346 = vector.multi_reduction <add>, %345, %cst_111 [1] : vector<8x8xf32> to vector<8xf32>
    %347 = vector.shape_cast %346 : vector<8xf32> to vector<8x1xf32>
    %348 = tpu.reciprocal %347 {approx = true} : vector<8x1xf32> -> vector<8x1xf32>
    %349 = vector.broadcast %348 : vector<8x1xf32> to vector<8x8xf32>
    %350 = arith.mulf %345, %349 : vector<8x8xf32>
    %351 = vector.extract_strided_slice %331 {offsets = [0, 0], sizes = [8, 8], strides = [1, 1]} : vector<8x32xf32> to vector<8x8xf32>
    %cst_112 = arith.constant dense<0.000000e+00> : vector<8x8xf32>
    %352 = tpu.matmul %350, %351, %cst_112 {dimension_numbers = #tpu.dot_dimension_numbers<[1], [0], [0], [1], [0, 0, 1, 1], [], []>} : vector<8x8xf32>, vector<8x8xf32>, vector<8x8xf32> -> vector<8x8xf32>
    %353 = vector.shape_cast %352 : vector<8x8xf32> to vector<8x1x8xf32>
    %c0_113 = arith.constant 0 : index
    %c0_114 = arith.constant 0 : index
    %c0_115 = arith.constant 0 : index
    %354 = vector.load %arg29[%c0_113, %c0_114, %c0_115] : memref<8x2x32xf32, #tpu.memory_space<vmem>>, vector<8x1x8xf32>
    tpu.vector_store %arg29[%c0_113, %c0_114, %c0_115], %353 {strides = array<i32>} : memref<8x2x32xf32, #tpu.memory_space<vmem>>, vector<8x1x8xf32>,
    %355 = arith.addf %336, %350 : vector<8x8xf32>
    %356 = vector.extract_strided_slice %327 {offsets = [0, 8], sizes = [8, 8], strides = [1, 1]} : vector<8x32xf32> to vector<8x8xf32>
    %357 = vector.extract_strided_slice %329 {offsets = [0, 8], sizes = [8, 8], strides = [1, 1]} : vector<8x32xf32> to vector<8x8xf32>
    %cst_116 = arith.constant dense<0.000000e+00> : vector<8x8xf32>
    %358 = tpu.matmul %356, %357, %cst_116 {dimension_numbers = #tpu.dot_dimension_numbers<[1], [1], [0], [0], [0, 0, 1, 0], [], []>} : vector<8x8xf32>, vector<8x8xf32>, vector<8x8xf32> -> vector<8x8xf32>
    %359 = arith.addf %358, %335 : vector<8x8xf32>
    %cst_117 = arith.constant dense<0xFF800000> : vector<8xf32>
    %360 = vector.multi_reduction <maximumf>, %359, %cst_117 [1] : vector<8x8xf32> to vector<8xf32>
    %361 = vector.shape_cast %360 : vector<8xf32> to vector<8x1xf32>
    %362 = vector.broadcast %361 : vector<8x1xf32> to vector<8x8xf32>
    %363 = arith.subf %359, %362 : vector<8x8xf32>
    %364 = math.exp %363 : vector<8x8xf32>
    %cst_118 = arith.constant dense<0.000000e+00> : vector<8xf32>
    %365 = vector.multi_reduction <add>, %364, %cst_118 [1] : vector<8x8xf32> to vector<8xf32>
    %366 = vector.shape_cast %365 : vector<8xf32> to vector<8x1xf32>
    %367 = tpu.reciprocal %366 {approx = true} : vector<8x1xf32> -> vector<8x1xf32>
    %368 = vector.broadcast %367 : vector<8x1xf32> to vector<8x8xf32>
    %369 = arith.mulf %364, %368 : vector<8x8xf32>
    %370 = vector.extract_strided_slice %331 {offsets = [0, 8], sizes = [8, 8], strides = [1, 1]} : vector<8x32xf32> to vector<8x8xf32>
    %cst_119 = arith.constant dense<0.000000e+00> : vector<8x8xf32>
    %371 = tpu.matmul %369, %370, %cst_119 {dimension_numbers = #tpu.dot_dimension_numbers<[1], [0], [0], [1], [0, 0, 1, 1], [], []>} : vector<8x8xf32>, vector<8x8xf32>, vector<8x8xf32> -> vector<8x8xf32>
    %372 = vector.shape_cast %371 : vector<8x8xf32> to vector<8x1x8xf32>
    %c0_120 = arith.constant 0 : index
    %c0_121 = arith.constant 0 : index
    %c8 = arith.constant 8 : index
    %373 = vector.load %arg29[%c0_120, %c0_121, %c8] : memref<8x2x32xf32, #tpu.memory_space<vmem>>, vector<8x1x8xf32>
    tpu.vector_store %arg29[%c0_120, %c0_121, %c8], %372 {strides = array<i32>} : memref<8x2x32xf32, #tpu.memory_space<vmem>>, vector<8x1x8xf32>,
    %374 = arith.addf %355, %369 : vector<8x8xf32>
    %375 = vector.extract_strided_slice %327 {offsets = [0, 16], sizes = [8, 8], strides = [1, 1]} : vector<8x32xf32> to vector<8x8xf32>
    %376 = vector.extract_strided_slice %329 {offsets = [0, 16], sizes = [8, 8], strides = [1, 1]} : vector<8x32xf32> to vector<8x8xf32>
    %cst_122 = arith.constant dense<0.000000e+00> : vector<8x8xf32>
    %377 = tpu.matmul %375, %376, %cst_122 {dimension_numbers = #tpu.dot_dimension_numbers<[1], [1], [0], [0], [0, 0, 1, 0], [], []>} : vector<8x8xf32>, vector<8x8xf32>, vector<8x8xf32> -> vector<8x8xf32>
    %378 = arith.addf %377, %335 : vector<8x8xf32>
    %cst_123 = arith.constant dense<0xFF800000> : vector<8xf32>
    %379 = vector.multi_reduction <maximumf>, %378, %cst_123 [1] : vector<8x8xf32> to vector<8xf32>
    %380 = vector.shape_cast %379 : vector<8xf32> to vector<8x1xf32>
    %381 = vector.broadcast %380 : vector<8x1xf32> to vector<8x8xf32>
    %382 = arith.subf %378, %381 : vector<8x8xf32>
    %383 = math.exp %382 : vector<8x8xf32>
    %cst_124 = arith.constant dense<0.000000e+00> : vector<8xf32>
    %384 = vector.multi_reduction <add>, %383, %cst_124 [1] : vector<8x8xf32> to vector<8xf32>
    %385 = vector.shape_cast %384 : vector<8xf32> to vector<8x1xf32>
    %386 = tpu.reciprocal %385 {approx = true} : vector<8x1xf32> -> vector<8x1xf32>
    %387 = vector.broadcast %386 : vector<8x1xf32> to vector<8x8xf32>
    %388 = arith.mulf %383, %387 : vector<8x8xf32>
    %389 = vector.extract_strided_slice %331 {offsets = [0, 16], sizes = [8, 8], strides = [1, 1]} : vector<8x32xf32> to vector<8x8xf32>
    %cst_125 = arith.constant dense<0.000000e+00> : vector<8x8xf32>
    %390 = tpu.matmul %388, %389, %cst_125 {dimension_numbers = #tpu.dot_dimension_numbers<[1], [0], [0], [1], [0, 0, 1, 1], [], []>} : vector<8x8xf32>, vector<8x8xf32>, vector<8x8xf32> -> vector<8x8xf32>
    %391 = vector.shape_cast %390 : vector<8x8xf32> to vector<8x1x8xf32>
    %c0_126 = arith.constant 0 : index
    %c0_127 = arith.constant 0 : index
    %c16 = arith.constant 16 : index
    %392 = vector.load %arg29[%c0_126, %c0_127, %c16] : memref<8x2x32xf32, #tpu.memory_space<vmem>>, vector<8x1x8xf32>
    tpu.vector_store %arg29[%c0_126, %c0_127, %c16], %391 {strides = array<i32>} : memref<8x2x32xf32, #tpu.memory_space<vmem>>, vector<8x1x8xf32>,
    %393 = arith.addf %374, %388 : vector<8x8xf32>
    %394 = vector.extract_strided_slice %327 {offsets = [0, 24], sizes = [8, 8], strides = [1, 1]} : vector<8x32xf32> to vector<8x8xf32>
    %395 = vector.extract_strided_slice %329 {offsets = [0, 24], sizes = [8, 8], strides = [1, 1]} : vector<8x32xf32> to vector<8x8xf32>
    %cst_128 = arith.constant dense<0.000000e+00> : vector<8x8xf32>
    %396 = tpu.matmul %394, %395, %cst_128 {dimension_numbers = #tpu.dot_dimension_numbers<[1], [1], [0], [0], [0, 0, 1, 0], [], []>} : vector<8x8xf32>, vector<8x8xf32>, vector<8x8xf32> -> vector<8x8xf32>
    %397 = arith.addf %396, %335 : vector<8x8xf32>
    %cst_129 = arith.constant dense<0xFF800000> : vector<8xf32>
    %398 = vector.multi_reduction <maximumf>, %397, %cst_129 [1] : vector<8x8xf32> to vector<8xf32>
    %399 = vector.shape_cast %398 : vector<8xf32> to vector<8x1xf32>
    %400 = vector.broadcast %399 : vector<8x1xf32> to vector<8x8xf32>
    %401 = arith.subf %397, %400 : vector<8x8xf32>
    %402 = math.exp %401 : vector<8x8xf32>
    %cst_130 = arith.constant dense<0.000000e+00> : vector<8xf32>
    %403 = vector.multi_reduction <add>, %402, %cst_130 [1] : vector<8x8xf32> to vector<8xf32>
    %404 = vector.shape_cast %403 : vector<8xf32> to vector<8x1xf32>
    %405 = tpu.reciprocal %404 {approx = true} : vector<8x1xf32> -> vector<8x1xf32>
    %406 = vector.broadcast %405 : vector<8x1xf32> to vector<8x8xf32>
    %407 = arith.mulf %402, %406 : vector<8x8xf32>
    %408 = vector.extract_strided_slice %331 {offsets = [0, 24], sizes = [8, 8], strides = [1, 1]} : vector<8x32xf32> to vector<8x8xf32>
    %cst_131 = arith.constant dense<0.000000e+00> : vector<8x8xf32>
    %409 = tpu.matmul %407, %408, %cst_131 {dimension_numbers = #tpu.dot_dimension_numbers<[1], [0], [0], [1], [0, 0, 1, 1], [], []>} : vector<8x8xf32>, vector<8x8xf32>, vector<8x8xf32> -> vector<8x8xf32>
    %410 = vector.shape_cast %409 : vector<8x8xf32> to vector<8x1x8xf32>
    %c0_132 = arith.constant 0 : index
    %c0_133 = arith.constant 0 : index
    %c24 = arith.constant 24 : index
    %411 = vector.load %arg29[%c0_132, %c0_133, %c24] : memref<8x2x32xf32, #tpu.memory_space<vmem>>, vector<8x1x8xf32>
    tpu.vector_store %arg29[%c0_132, %c0_133, %c24], %410 {strides = array<i32>} : memref<8x2x32xf32, #tpu.memory_space<vmem>>, vector<8x1x8xf32>,
    %412 = arith.addf %393, %407 : vector<8x8xf32>
    %cst_134 = arith.constant 2.500000e-01 : f32
    %413 = vector.broadcast %cst_134 : f32 to vector<8x8xf32>
    %414 = arith.mulf %412, %413 : vector<8x8xf32>
    %c0_135 = arith.constant 0 : index
    %c0_136 = arith.constant 0 : index
    %c0_137 = arith.constant 0 : index
    %415 = vector.load %arg26[%c0_135, %c0_136, %c0_137] : memref<2x8x8xf32, #tpu.memory_space<vmem>>, vector<1x8x8xf32>
    %416 = vector.shape_cast %415 : vector<1x8x8xf32> to vector<8x8xf32>
    %417 = vector.shape_cast %414 : vector<8x8xf32> to vector<1x8x8xf32>
    tpu.vector_store %arg26[%c0_135, %c0_136, %c0_137], %417 {strides = array<i32>} : memref<2x8x8xf32, #tpu.memory_space<vmem>>, vector<1x8x8xf32>,
    %418 = vector.extract_strided_slice %323 {offsets = [0, 1, 0], sizes = [8, 1, 32], strides = [1, 1, 1]} : vector<8x2x32xf32> to vector<8x1x32xf32>
    %419 = vector.shape_cast %418 : vector<8x1x32xf32> to vector<8x32xf32>
    %420 = vector.extract_strided_slice %324 {offsets = [0, 1, 0], sizes = [8, 1, 32], strides = [1, 1, 1]} : vector<8x2x64xf32> to vector<8x1x32xf32>
    %421 = vector.shape_cast %420 : vector<8x1x32xf32> to vector<8x32xf32>
    %422 = vector.extract_strided_slice %324 {offsets = [0, 1, 32], sizes = [8, 1, 32], strides = [1, 1, 1]} : vector<8x2x64xf32> to vector<8x1x32xf32>
    %423 = vector.shape_cast %422 : vector<8x1x32xf32> to vector<8x32xf32>
    %424 = vector.extract_strided_slice %325 {offsets = [1, 0, 0], sizes = [1, 1, 8], strides = [1, 1, 1]} : vector<2x1x8xf32> to vector<1x1x8xf32>
    %425 = vector.shape_cast %424 : vector<1x1x8xf32> to vector<1x8xf32>
    %426 = vector.shape_cast %425 : vector<1x8xf32> to vector<1x8xf32>
    %427 = vector.broadcast %426 : vector<1x8xf32> to vector<8x8xf32>
    %cst_138 = arith.constant 0.000000e+00 : f32
    %428 = vector.broadcast %cst_138 : f32 to vector<8x8xf32>
    %429 = vector.extract_strided_slice %419 {offsets = [0, 0], sizes = [8, 8], strides = [1, 1]} : vector<8x32xf32> to vector<8x8xf32>
    %430 = vector.extract_strided_slice %421 {offsets = [0, 0], sizes = [8, 8], strides = [1, 1]} : vector<8x32xf32> to vector<8x8xf32>
    %cst_139 = arith.constant dense<0.000000e+00> : vector<8x8xf32>
    %431 = tpu.matmul %429, %430, %cst_139 {dimension_numbers = #tpu.dot_dimension_numbers<[1], [1], [0], [0], [0, 0, 1, 0], [], []>} : vector<8x8xf32>, vector<8x8xf32>, vector<8x8xf32> -> vector<8x8xf32>
    %432 = arith.addf %431, %427 : vector<8x8xf32>
    %cst_140 = arith.constant dense<0xFF800000> : vector<8xf32>
    %433 = vector.multi_reduction <maximumf>, %432, %cst_140 [1] : vector<8x8xf32> to vector<8xf32>
    %434 = vector.shape_cast %433 : vector<8xf32> to vector<8x1xf32>
    %435 = vector.broadcast %434 : vector<8x1xf32> to vector<8x8xf32>
    %436 = arith.subf %432, %435 : vector<8x8xf32>
    %437 = math.exp %436 : vector<8x8xf32>
    %cst_141 = arith.constant dense<0.000000e+00> : vector<8xf32>
    %438 = vector.multi_reduction <add>, %437, %cst_141 [1] : vector<8x8xf32> to vector<8xf32>
    %439 = vector.shape_cast %438 : vector<8xf32> to vector<8x1xf32>
    %440 = tpu.reciprocal %439 {approx = true} : vector<8x1xf32> -> vector<8x1xf32>
    %441 = vector.broadcast %440 : vector<8x1xf32> to vector<8x8xf32>
    %442 = arith.mulf %437, %441 : vector<8x8xf32>
    %443 = vector.extract_strided_slice %423 {offsets = [0, 0], sizes = [8, 8], strides = [1, 1]} : vector<8x32xf32> to vector<8x8xf32>
    %cst_142 = arith.constant dense<0.000000e+00> : vector<8x8xf32>
    %444 = tpu.matmul %442, %443, %cst_142 {dimension_numbers = #tpu.dot_dimension_numbers<[1], [0], [0], [1], [0, 0, 1, 1], [], []>} : vector<8x8xf32>, vector<8x8xf32>, vector<8x8xf32> -> vector<8x8xf32>
    %445 = vector.shape_cast %444 : vector<8x8xf32> to vector<8x1x8xf32>
    %c0_143 = arith.constant 0 : index
    %c1 = arith.constant 1 : index
    %c0_144 = arith.constant 0 : index
    %446 = vector.load %arg29[%c0_143, %c1, %c0_144] : memref<8x2x32xf32, #tpu.memory_space<vmem>>, vector<8x1x8xf32>
    tpu.vector_store %arg29[%c0_143, %c1, %c0_144], %445 {strides = array<i32>} : memref<8x2x32xf32, #tpu.memory_space<vmem>>, vector<8x1x8xf32>,
    %447 = arith.addf %428, %442 : vector<8x8xf32>
    %448 = vector.extract_strided_slice %419 {offsets = [0, 8], sizes = [8, 8], strides = [1, 1]} : vector<8x32xf32> to vector<8x8xf32>
    %449 = vector.extract_strided_slice %421 {offsets = [0, 8], sizes = [8, 8], strides = [1, 1]} : vector<8x32xf32> to vector<8x8xf32>
    %cst_145 = arith.constant dense<0.000000e+00> : vector<8x8xf32>
    %450 = tpu.matmul %448, %449, %cst_145 {dimension_numbers = #tpu.dot_dimension_numbers<[1], [1], [0], [0], [0, 0, 1, 0], [], []>} : vector<8x8xf32>, vector<8x8xf32>, vector<8x8xf32> -> vector<8x8xf32>
    %451 = arith.addf %450, %427 : vector<8x8xf32>
    %cst_146 = arith.constant dense<0xFF800000> : vector<8xf32>
    %452 = vector.multi_reduction <maximumf>, %451, %cst_146 [1] : vector<8x8xf32> to vector<8xf32>
    %453 = vector.shape_cast %452 : vector<8xf32> to vector<8x1xf32>
    %454 = vector.broadcast %453 : vector<8x1xf32> to vector<8x8xf32>
    %455 = arith.subf %451, %454 : vector<8x8xf32>
    %456 = math.exp %455 : vector<8x8xf32>
    %cst_147 = arith.constant dense<0.000000e+00> : vector<8xf32>
    %457 = vector.multi_reduction <add>, %456, %cst_147 [1] : vector<8x8xf32> to vector<8xf32>
    %458 = vector.shape_cast %457 : vector<8xf32> to vector<8x1xf32>
    %459 = tpu.reciprocal %458 {approx = true} : vector<8x1xf32> -> vector<8x1xf32>
    %460 = vector.broadcast %459 : vector<8x1xf32> to vector<8x8xf32>
    %461 = arith.mulf %456, %460 : vector<8x8xf32>
    %462 = vector.extract_strided_slice %423 {offsets = [0, 8], sizes = [8, 8], strides = [1, 1]} : vector<8x32xf32> to vector<8x8xf32>
    %cst_148 = arith.constant dense<0.000000e+00> : vector<8x8xf32>
    %463 = tpu.matmul %461, %462, %cst_148 {dimension_numbers = #tpu.dot_dimension_numbers<[1], [0], [0], [1], [0, 0, 1, 1], [], []>} : vector<8x8xf32>, vector<8x8xf32>, vector<8x8xf32> -> vector<8x8xf32>
    %464 = vector.shape_cast %463 : vector<8x8xf32> to vector<8x1x8xf32>
    %c0_149 = arith.constant 0 : index
    %c1_150 = arith.constant 1 : index
    %c8_151 = arith.constant 8 : index
    %465 = vector.load %arg29[%c0_149, %c1_150, %c8_151] : memref<8x2x32xf32, #tpu.memory_space<vmem>>, vector<8x1x8xf32>
    tpu.vector_store %arg29[%c0_149, %c1_150, %c8_151], %464 {strides = array<i32>} : memref<8x2x32xf32, #tpu.memory_space<vmem>>, vector<8x1x8xf32>,
    %466 = arith.addf %447, %461 : vector<8x8xf32>
    %467 = vector.extract_strided_slice %419 {offsets = [0, 16], sizes = [8, 8], strides = [1, 1]} : vector<8x32xf32> to vector<8x8xf32>
    %468 = vector.extract_strided_slice %421 {offsets = [0, 16], sizes = [8, 8], strides = [1, 1]} : vector<8x32xf32> to vector<8x8xf32>
    %cst_152 = arith.constant dense<0.000000e+00> : vector<8x8xf32>
    %469 = tpu.matmul %467, %468, %cst_152 {dimension_numbers = #tpu.dot_dimension_numbers<[1], [1], [0], [0], [0, 0, 1, 0], [], []>} : vector<8x8xf32>, vector<8x8xf32>, vector<8x8xf32> -> vector<8x8xf32>
    %470 = arith.addf %469, %427 : vector<8x8xf32>
    %cst_153 = arith.constant dense<0xFF800000> : vector<8xf32>
    %471 = vector.multi_reduction <maximumf>, %470, %cst_153 [1] : vector<8x8xf32> to vector<8xf32>
    %472 = vector.shape_cast %471 : vector<8xf32> to vector<8x1xf32>
    %473 = vector.broadcast %472 : vector<8x1xf32> to vector<8x8xf32>
    %474 = arith.subf %470, %473 : vector<8x8xf32>
    %475 = math.exp %474 : vector<8x8xf32>
    %cst_154 = arith.constant dense<0.000000e+00> : vector<8xf32>
    %476 = vector.multi_reduction <add>, %475, %cst_154 [1] : vector<8x8xf32> to vector<8xf32>
    %477 = vector.shape_cast %476 : vector<8xf32> to vector<8x1xf32>
    %478 = tpu.reciprocal %477 {approx = true} : vector<8x1xf32> -> vector<8x1xf32>
    %479 = vector.broadcast %478 : vector<8x1xf32> to vector<8x8xf32>
    %480 = arith.mulf %475, %479 : vector<8x8xf32>
    %481 = vector.extract_strided_slice %423 {offsets = [0, 16], sizes = [8, 8], strides = [1, 1]} : vector<8x32xf32> to vector<8x8xf32>
    %cst_155 = arith.constant dense<0.000000e+00> : vector<8x8xf32>
    %482 = tpu.matmul %480, %481, %cst_155 {dimension_numbers = #tpu.dot_dimension_numbers<[1], [0], [0], [1], [0, 0, 1, 1], [], []>} : vector<8x8xf32>, vector<8x8xf32>, vector<8x8xf32> -> vector<8x8xf32>
    %483 = vector.shape_cast %482 : vector<8x8xf32> to vector<8x1x8xf32>
    %c0_156 = arith.constant 0 : index
    %c1_157 = arith.constant 1 : index
    %c16_158 = arith.constant 16 : index
    %484 = vector.load %arg29[%c0_156, %c1_157, %c16_158] : memref<8x2x32xf32, #tpu.memory_space<vmem>>, vector<8x1x8xf32>
    tpu.vector_store %arg29[%c0_156, %c1_157, %c16_158], %483 {strides = array<i32>} : memref<8x2x32xf32, #tpu.memory_space<vmem>>, vector<8x1x8xf32>,
    %485 = arith.addf %466, %480 : vector<8x8xf32>
    %486 = vector.extract_strided_slice %419 {offsets = [0, 24], sizes = [8, 8], strides = [1, 1]} : vector<8x32xf32> to vector<8x8xf32>
    %487 = vector.extract_strided_slice %421 {offsets = [0, 24], sizes = [8, 8], strides = [1, 1]} : vector<8x32xf32> to vector<8x8xf32>
    %cst_159 = arith.constant dense<0.000000e+00> : vector<8x8xf32>
    %488 = tpu.matmul %486, %487, %cst_159 {dimension_numbers = #tpu.dot_dimension_numbers<[1], [1], [0], [0], [0, 0, 1, 0], [], []>} : vector<8x8xf32>, vector<8x8xf32>, vector<8x8xf32> -> vector<8x8xf32>
    %489 = arith.addf %488, %427 : vector<8x8xf32>
    %cst_160 = arith.constant dense<0xFF800000> : vector<8xf32>
    %490 = vector.multi_reduction <maximumf>, %489, %cst_160 [1] : vector<8x8xf32> to vector<8xf32>
    %491 = vector.shape_cast %490 : vector<8xf32> to vector<8x1xf32>
    %492 = vector.broadcast %491 : vector<8x1xf32> to vector<8x8xf32>
    %493 = arith.subf %489, %492 : vector<8x8xf32>
    %494 = math.exp %493 : vector<8x8xf32>
    %cst_161 = arith.constant dense<0.000000e+00> : vector<8xf32>
    %495 = vector.multi_reduction <add>, %494, %cst_161 [1] : vector<8x8xf32> to vector<8xf32>
    %496 = vector.shape_cast %495 : vector<8xf32> to vector<8x1xf32>
    %497 = tpu.reciprocal %496 {approx = true} : vector<8x1xf32> -> vector<8x1xf32>
    %498 = vector.broadcast %497 : vector<8x1xf32> to vector<8x8xf32>
    %499 = arith.mulf %494, %498 : vector<8x8xf32>
    %500 = vector.extract_strided_slice %423 {offsets = [0, 24], sizes = [8, 8], strides = [1, 1]} : vector<8x32xf32> to vector<8x8xf32>
    %cst_162 = arith.constant dense<0.000000e+00> : vector<8x8xf32>
    %501 = tpu.matmul %499, %500, %cst_162 {dimension_numbers = #tpu.dot_dimension_numbers<[1], [0], [0], [1], [0, 0, 1, 1], [], []>} : vector<8x8xf32>, vector<8x8xf32>, vector<8x8xf32> -> vector<8x8xf32>
    %502 = vector.shape_cast %501 : vector<8x8xf32> to vector<8x1x8xf32>
    %c0_163 = arith.constant 0 : index
    %c1_164 = arith.constant 1 : index
    %c24_165 = arith.constant 24 : index
    %503 = vector.load %arg29[%c0_163, %c1_164, %c24_165] : memref<8x2x32xf32, #tpu.memory_space<vmem>>, vector<8x1x8xf32>
    tpu.vector_store %arg29[%c0_163, %c1_164, %c24_165], %502 {strides = array<i32>} : memref<8x2x32xf32, #tpu.memory_space<vmem>>, vector<8x1x8xf32>,
    %504 = arith.addf %485, %499 : vector<8x8xf32>
    %cst_166 = arith.constant 2.500000e-01 : f32
    %505 = vector.broadcast %cst_166 : f32 to vector<8x8xf32>
    %506 = arith.mulf %504, %505 : vector<8x8xf32>
    %c1_167 = arith.constant 1 : index
    %c0_168 = arith.constant 0 : index
    %c0_169 = arith.constant 0 : index
    %507 = vector.load %arg26[%c1_167, %c0_168, %c0_169] : memref<2x8x8xf32, #tpu.memory_space<vmem>>, vector<1x8x8xf32>
    %508 = vector.shape_cast %507 : vector<1x8x8xf32> to vector<8x8xf32>
    %509 = vector.shape_cast %506 : vector<8x8xf32> to vector<1x8x8xf32>
    tpu.vector_store %arg26[%c1_167, %c0_168, %c0_169], %509 {strides = array<i32>} : memref<2x8x8xf32, #tpu.memory_space<vmem>>, vector<1x8x8xf32>,
    %c0_170 = arith.constant 0 : index
    %c0_171 = arith.constant 0 : index
    %c0_172 = arith.constant 0 : index
    %510 = vector.load %arg29[%c0_170, %c0_171, %c0_172] : memref<8x2x32xf32, #tpu.memory_space<vmem>>, vector<8x2x32xf32>
    %511 = vector.shape_cast %510 : vector<8x2x32xf32> to vector<16x32xf32>
    %c0_173 = arith.constant 0 : index
    %c0_174 = arith.constant 0 : index
    %512 = vector.load %arg15[%c0_173, %c0_174] : memref<32x32xf32, #tpu.memory_space<vmem>>, vector<32x32xf32>
    %cst_175 = arith.constant dense<0.000000e+00> : vector<16x32xf32>
    %513 = tpu.matmul %511, %512, %cst_175 {dimension_numbers = #tpu.dot_dimension_numbers<[1], [0], [0], [1], [0, 0, 1, 1], [], []>} : vector<16x32xf32>, vector<32x32xf32>, vector<16x32xf32> -> vector<16x32xf32>
    %c0_176 = arith.constant 0 : index
    %c0_177 = arith.constant 0 : index
    %514 = vector.load %arg16[%c0_176, %c0_177] : memref<1x32xf32, #tpu.memory_space<vmem>>, vector<1x32xf32>
    %515 = vector.broadcast %514 : vector<1x32xf32> to vector<16x32xf32>
    %516 = arith.addf %513, %515 : vector<16x32xf32>
    %c0_178 = arith.constant 0 : index
    %c0_179 = arith.constant 0 : index
    %517 = vector.load %arg17[%c0_178, %c0_179] : memref<1x32xf32, #tpu.memory_space<vmem>>, vector<1x32xf32>
    %c0_180 = arith.constant 0 : index
    %c0_181 = arith.constant 0 : index
    %518 = vector.load %arg18[%c0_180, %c0_181] : memref<1x32xf32, #tpu.memory_space<vmem>>, vector<1x32xf32>
    %519 = arith.addf %516, %308 : vector<16x32xf32>
    %cst_182 = arith.constant dense<0.000000e+00> : vector<16xf32>
    %520 = vector.multi_reduction <add>, %519, %cst_182 [1] : vector<16x32xf32> to vector<16xf32>
    %521 = vector.shape_cast %520 : vector<16xf32> to vector<16x1xf32>
    %cst_183 = arith.constant 3.200000e+01 : f32
    %522 = vector.broadcast %cst_183 : f32 to vector<16x1xf32>
    %523 = arith.divf %521, %522 : vector<16x1xf32>
    %524 = vector.broadcast %523 : vector<16x1xf32> to vector<16x32xf32>
    %525 = arith.subf %519, %524 : vector<16x32xf32>
    %526 = arith.mulf %525, %525 : vector<16x32xf32>
    %cst_184 = arith.constant dense<0.000000e+00> : vector<16xf32>
    %527 = vector.multi_reduction <add>, %526, %cst_184 [1] : vector<16x32xf32> to vector<16xf32>
    %528 = vector.shape_cast %527 : vector<16xf32> to vector<16x1xf32>
    %cst_185 = arith.constant 3.200000e+01 : f32
    %529 = vector.broadcast %cst_185 : f32 to vector<16x1xf32>
    %530 = arith.divf %528, %529 : vector<16x1xf32>
    %cst_186 = arith.constant 9.99999974E-6 : f32
    %531 = vector.broadcast %cst_186 : f32 to vector<16x1xf32>
    %532 = arith.addf %530, %531 : vector<16x1xf32>
    %533 = math.rsqrt %532 : vector<16x1xf32>
    %534 = vector.broadcast %533 : vector<16x1xf32> to vector<16x32xf32>
    %535 = arith.mulf %525, %534 : vector<16x32xf32>
    %536 = vector.broadcast %517 : vector<1x32xf32> to vector<16x32xf32>
    %537 = arith.mulf %535, %536 : vector<16x32xf32>
    %538 = vector.broadcast %518 : vector<1x32xf32> to vector<16x32xf32>
    %539 = arith.addf %537, %538 : vector<16x32xf32>
    %c0_187 = arith.constant 0 : index
    %c0_188 = arith.constant 0 : index
    %540 = vector.load %arg19[%c0_187, %c0_188] : memref<32x64xf32, #tpu.memory_space<vmem>>, vector<32x64xf32>
    %cst_189 = arith.constant dense<0.000000e+00> : vector<16x64xf32>
    %541 = tpu.matmul %539, %540, %cst_189 {dimension_numbers = #tpu.dot_dimension_numbers<[1], [0], [0], [1], [0, 0, 1, 1], [], []>} : vector<16x32xf32>, vector<32x64xf32>, vector<16x64xf32> -> vector<16x64xf32>
    %c0_190 = arith.constant 0 : index
    %c0_191 = arith.constant 0 : index
    %542 = vector.load %arg20[%c0_190, %c0_191] : memref<1x64xf32, #tpu.memory_space<vmem>>, vector<1x64xf32>
    %543 = vector.broadcast %542 : vector<1x64xf32> to vector<16x64xf32>
    %544 = arith.addf %541, %543 : vector<16x64xf32>
    %cst_192 = arith.constant 0.000000e+00 : f32
    %545 = vector.broadcast %cst_192 : f32 to vector<16x64xf32>
    %546 = arith.maximumf %544, %545 : vector<16x64xf32>
    %c0_193 = arith.constant 0 : index
    %c0_194 = arith.constant 0 : index
    %547 = vector.load %arg21[%c0_193, %c0_194] : memref<64x32xf32, #tpu.memory_space<vmem>>, vector<64x32xf32>
    %cst_195 = arith.constant dense<0.000000e+00> : vector<16x32xf32>
    %548 = tpu.matmul %546, %547, %cst_195 {dimension_numbers = #tpu.dot_dimension_numbers<[1], [0], [0], [1], [0, 0, 1, 1], [], []>} : vector<16x64xf32>, vector<64x32xf32>, vector<16x32xf32> -> vector<16x32xf32>
    %c0_196 = arith.constant 0 : index
    %c0_197 = arith.constant 0 : index
    %549 = vector.load %arg22[%c0_196, %c0_197] : memref<1x32xf32, #tpu.memory_space<vmem>>, vector<1x32xf32>
    %550 = vector.broadcast %549 : vector<1x32xf32> to vector<16x32xf32>
    %551 = arith.addf %548, %550 : vector<16x32xf32>
    %c0_198 = arith.constant 0 : index
    %c0_199 = arith.constant 0 : index
    %552 = vector.load %arg23[%c0_198, %c0_199] : memref<1x32xf32, #tpu.memory_space<vmem>>, vector<1x32xf32>
    %c0_200 = arith.constant 0 : index
    %c0_201 = arith.constant 0 : index
    %553 = vector.load %arg24[%c0_200, %c0_201] : memref<1x32xf32, #tpu.memory_space<vmem>>, vector<1x32xf32>
    %554 = arith.addf %551, %539 : vector<16x32xf32>
    %cst_202 = arith.constant dense<0.000000e+00> : vector<16xf32>
    %555 = vector.multi_reduction <add>, %554, %cst_202 [1] : vector<16x32xf32> to vector<16xf32>
    %556 = vector.shape_cast %555 : vector<16xf32> to vector<16x1xf32>
    %cst_203 = arith.constant 3.200000e+01 : f32
    %557 = vector.broadcast %cst_203 : f32 to vector<16x1xf32>
    %558 = arith.divf %556, %557 : vector<16x1xf32>
    %559 = vector.broadcast %558 : vector<16x1xf32> to vector<16x32xf32>
    %560 = arith.subf %554, %559 : vector<16x32xf32>
    %561 = arith.mulf %560, %560 : vector<16x32xf32>
    %cst_204 = arith.constant dense<0.000000e+00> : vector<16xf32>
    %562 = vector.multi_reduction <add>, %561, %cst_204 [1] : vector<16x32xf32> to vector<16xf32>
    %563 = vector.shape_cast %562 : vector<16xf32> to vector<16x1xf32>
    %cst_205 = arith.constant 3.200000e+01 : f32
    %564 = vector.broadcast %cst_205 : f32 to vector<16x1xf32>
    %565 = arith.divf %563, %564 : vector<16x1xf32>
    %cst_206 = arith.constant 9.99999974E-6 : f32
    %566 = vector.broadcast %cst_206 : f32 to vector<16x1xf32>
    %567 = arith.addf %565, %566 : vector<16x1xf32>
    %568 = math.rsqrt %567 : vector<16x1xf32>
    %569 = vector.broadcast %568 : vector<16x1xf32> to vector<16x32xf32>
    %570 = arith.mulf %560, %569 : vector<16x32xf32>
    %571 = vector.broadcast %552 : vector<1x32xf32> to vector<16x32xf32>
    %572 = arith.mulf %570, %571 : vector<16x32xf32>
    %573 = vector.broadcast %553 : vector<1x32xf32> to vector<16x32xf32>
    %574 = arith.addf %572, %573 : vector<16x32xf32>
    %575 = vector.shape_cast %574 : vector<16x32xf32> to vector<8x2x32xf32>
    %c0_207 = arith.constant 0 : index
    %c0_208 = arith.constant 0 : index
    %c0_209 = arith.constant 0 : index
    %576 = vector.load %arg25[%c0_207, %c0_208, %c0_209] : memref<8x2x32xf32, #tpu.memory_space<vmem>>, vector<8x2x32xf32>
    tpu.vector_store %arg25[%c0_207, %c0_208, %c0_209], %575 {strides = array<i32>} : memref<8x2x32xf32, #tpu.memory_space<vmem>>, vector<8x2x32xf32>,
    return
  }
  func.func @transform_0(%arg0: i32) -> (i32, i32, i32) {
    %c0_i32 = arith.constant 0 : i32
    %c0_i32_0 = arith.constant 0 : i32
    %c0_i32_1 = arith.constant 0 : i32
    return %c0_i32, %arg0, %c0_i32_0 : i32, i32, i32
  }
  func.func @transform_1(%arg0: i32) -> (i32, i32, i32) {
    %c0_i32 = arith.constant 0 : i32
    %c0_i32_0 = arith.constant 0 : i32
    %c0_i32_1 = arith.constant 0 : i32
    return %c0_i32, %arg0, %c0_i32_0 : i32, i32, i32
  }
  func.func @transform_2(%arg0: i32) -> (i32, i32) {
    %c0_i32 = arith.constant 0 : i32
    %c0_i32_0 = arith.constant 0 : i32
    return %arg0, %c0_i32 : i32, i32
  }
  func.func @transform_3(%arg0: i32) -> (i32, i32) {
    %c0_i32 = arith.constant 0 : i32
    %c0_i32_0 = arith.constant 0 : i32
    return %arg0, %c0_i32 : i32, i32
  }
  func.func @transform_4(%arg0: i32) -> (i32, i32, i32) {
    %c0_i32 = arith.constant 0 : i32
    %c0_i32_0 = arith.constant 0 : i32
    %c0_i32_1 = arith.constant 0 : i32
    return %arg0, %c0_i32, %c0_i32_0 : i32, i32, i32
  }
  func.func @transform_5(%arg0: i32) -> (i32, i32) {
    %c0_i32 = arith.constant 0 : i32
    %c0_i32_0 = arith.constant 0 : i32
    %c0_i32_1 = arith.constant 0 : i32
    return %c0_i32, %c0_i32_0 : i32, i32
  }
  func.func @transform_6(%arg0: i32) -> (i32, i32) {
    %c0_i32 = arith.constant 0 : i32
    %c0_i32_0 = arith.constant 0 : i32
    %c0_i32_1 = arith.constant 0 : i32
    return %c0_i32, %c0_i32_0 : i32, i32
  }
  func.func @transform_7(%arg0: i32) -> (i32, i32) {
    %c0_i32 = arith.constant 0 : i32
    %c0_i32_0 = arith.constant 0 : i32
    %c0_i32_1 = arith.constant 0 : i32
    return %c0_i32, %c0_i32_0 : i32, i32
  }
  func.func @transform_8(%arg0: i32) -> (i32, i32) {
    %c0_i32 = arith.constant 0 : i32
    %c0_i32_0 = arith.constant 0 : i32
    %c0_i32_1 = arith.constant 0 : i32
    return %c0_i32, %c0_i32_0 : i32, i32
  }
  func.func @transform_9(%arg0: i32) -> (i32, i32) {
    %c0_i32 = arith.constant 0 : i32
    %c0_i32_0 = arith.constant 0 : i32
    %c0_i32_1 = arith.constant 0 : i32
    return %c0_i32, %c0_i32_0 : i32, i32
  }
  func.func @transform_10(%arg0: i32) -> (i32, i32) {
    %c0_i32 = arith.constant 0 : i32
    %c0_i32_0 = arith.constant 0 : i32
    %c0_i32_1 = arith.constant 0 : i32
    return %c0_i32, %c0_i32_0 : i32, i32
  }
  func.func @transform_11(%arg0: i32) -> (i32, i32) {
    %c0_i32 = arith.constant 0 : i32
    %c0_i32_0 = arith.constant 0 : i32
    %c0_i32_1 = arith.constant 0 : i32
    return %c0_i32, %c0_i32_0 : i32, i32
  }
  func.func @transform_12(%arg0: i32) -> (i32, i32) {
    %c0_i32 = arith.constant 0 : i32
    %c0_i32_0 = arith.constant 0 : i32
    %c0_i32_1 = arith.constant 0 : i32
    return %c0_i32, %c0_i32_0 : i32, i32
  }
  func.func @transform_13(%arg0: i32) -> (i32, i32) {
    %c0_i32 = arith.constant 0 : i32
    %c0_i32_0 = arith.constant 0 : i32
    %c0_i32_1 = arith.constant 0 : i32
    return %c0_i32, %c0_i32_0 : i32, i32
  }
  func.func @transform_14(%arg0: i32) -> (i32, i32) {
    %c0_i32 = arith.constant 0 : i32
    %c0_i32_0 = arith.constant 0 : i32
    %c0_i32_1 = arith.constant 0 : i32
    return %c0_i32, %c0_i32_0 : i32, i32
  }
  func.func @transform_15(%arg0: i32) -> (i32, i32) {
    %c0_i32 = arith.constant 0 : i32
    %c0_i32_0 = arith.constant 0 : i32
    %c0_i32_1 = arith.constant 0 : i32
    return %c0_i32, %c0_i32_0 : i32, i32
  }
  func.func @transform_16(%arg0: i32) -> (i32, i32) {
    %c0_i32 = arith.constant 0 : i32
    %c0_i32_0 = arith.constant 0 : i32
    %c0_i32_1 = arith.constant 0 : i32
    return %c0_i32, %c0_i32_0 : i32, i32
  }
  func.func @transform_17(%arg0: i32) -> (i32, i32) {
    %c0_i32 = arith.constant 0 : i32
    %c0_i32_0 = arith.constant 0 : i32
    %c0_i32_1 = arith.constant 0 : i32
    return %c0_i32, %c0_i32_0 : i32, i32
  }
  func.func @transform_18(%arg0: i32) -> (i32, i32) {
    %c0_i32 = arith.constant 0 : i32
    %c0_i32_0 = arith.constant 0 : i32
    %c0_i32_1 = arith.constant 0 : i32
    return %c0_i32, %c0_i32_0 : i32, i32
  }
  func.func @transform_19(%arg0: i32) -> (i32, i32) {
    %c0_i32 = arith.constant 0 : i32
    %c0_i32_0 = arith.constant 0 : i32
    %c0_i32_1 = arith.constant 0 : i32
    return %c0_i32, %c0_i32_0 : i32, i32
  }
  func.func @transform_20(%arg0: i32) -> (i32, i32) {
    %c0_i32 = arith.constant 0 : i32
    %c0_i32_0 = arith.constant 0 : i32
    %c0_i32_1 = arith.constant 0 : i32
    return %c0_i32, %c0_i32_0 : i32, i32
  }
  func.func @transform_21(%arg0: i32) -> (i32, i32) {
    %c0_i32 = arith.constant 0 : i32
    %c0_i32_0 = arith.constant 0 : i32
    %c0_i32_1 = arith.constant 0 : i32
    return %c0_i32, %c0_i32_0 : i32, i32
  }
  func.func @transform_22(%arg0: i32) -> (i32, i32) {
    %c0_i32 = arith.constant 0 : i32
    %c0_i32_0 = arith.constant 0 : i32
    %c0_i32_1 = arith.constant 0 : i32
    return %c0_i32, %c0_i32_0 : i32, i32
  }
  func.func @transform_23(%arg0: i32) -> (i32, i32) {
    %c0_i32 = arith.constant 0 : i32
    %c0_i32_0 = arith.constant 0 : i32
    %c0_i32_1 = arith.constant 0 : i32
    return %c0_i32, %c0_i32_0 : i32, i32
  }
  func.func @transform_24(%arg0: i32) -> (i32, i32, i32) {
    %c0_i32 = arith.constant 0 : i32
    %c0_i32_0 = arith.constant 0 : i32
    %c0_i32_1 = arith.constant 0 : i32
    return %c0_i32, %arg0, %c0_i32_0 : i32, i32, i32
  }
  func.func @transform_25(%arg0: i32) -> (i32, i32, i32) {
    %c0_i32 = arith.constant 0 : i32
    %c0_i32_0 = arith.constant 0 : i32
    %c0_i32_1 = arith.constant 0 : i32
    return %arg0, %c0_i32, %c0_i32_0 : i32, i32, i32
  }
}

</mosaic_0001>

<bundles_post_ra>
// kernel: lstm_transformer_decoder_layer.1
= control target key start
LH: loop header
LB: loop body
LE: loop exit
PB: predicated region body
PF: predicated region fallthrough
CT: control target
= control target key end

     0   :  { %s3788_s0 = inlined_call_operand.hbm [shape: f32[8,2,32], index: 0, kind: input, shape index: {}]   ;;  %s3789_s1 = inlined_call_operand.hbm [shape: f32[8,2,32], index: 1, kind: input, shape index: {}]   ;;  %s3790_s2 = inlined_call_operand.vmem [shape: f32[2,32], index: 2, kind: input, shape index: {}]   ;;  %s3791_s3 = inlined_call_operand.vmem [shape: f32[2,32], index: 3, kind: input, shape index: {}]   ;;  %s3792_s4 = inlined_call_operand.vmem [shape: f32[2,1,8], index: 4, kind: input, shape index: {}]   ;;  %s3793_s5 = inlined_call_operand.vmem [shape: f32[32,128], index: 5, kind: input, shape index: {}]   ;;  %s3794_s6 = inlined_call_operand.vmem [shape: f32[32,128], index: 6, kind: input, shape index: {}]   ;;  %s3795_s7 = inlined_call_operand.vmem [shape: f32[1,128], index: 7, kind: input, shape index: {}]   ;;  %s3796_s8 = inlined_call_operand.vmem [shape: f32[1,32], index: 8, kind: input, shape index: {}]   ;;  %s3797_s9 = inlined_call_operand.vmem [shape: f32[1,32], index: 9, kind: input, shape index: {}]   ;;  %s3798_s10 = inlined_call_operand.vmem [shape: f32[32,32], index: 10, kind: input, shape index: {}]   ;;  %s3799_s11 = inlined_call_operand.vmem [shape: f32[1,32], index: 11, kind: input, shape index: {}]   ;;  %s3800_s12 = inlined_call_operand.hbm [shape: f32[32,64], index: 12, kind: input, shape index: {}]   ;;  %s3801_s13 = inlined_call_operand.vmem [shape: f32[1,64], index: 13, kind: input, shape index: {}]   ;;  %s3802_s14 = inlined_call_operand.hbm [shape: f32[32,32], index: 14, kind: input, shape index: {}]   ;;  %s3803_s15 = inlined_call_operand.vmem [shape: f32[1,32], index: 15, kind: input, shape index: {}]   ;;  %s3804_s16 = inlined_call_operand.vmem [shape: f32[1,32], index: 16, kind: input, shape index: {}]   ;;  %s3805_s17 = inlined_call_operand.vmem [shape: f32[1,32], index: 17, kind: input, shape index: {}]   ;;  %s3806_s18 = inlined_call_operand.hbm [shape: f32[32,64], index: 18, kind: input, shape index: {}]   ;;  %s3807_s19 = inlined_call_operand.hbm [shape: f32[1,64], index: 19, kind: input, shape index: {}]   ;;  %s3808_s20 = inlined_call_operand.vmem [shape: f32[64,32], index: 20, kind: input, shape index: {}]   ;;  %s3809_s21 = inlined_call_operand.hbm [shape: f32[1,32], index: 21, kind: input, shape index: {}]   ;;  %s3810_s22 = inlined_call_operand.vmem [shape: f32[1,32], index: 22, kind: input, shape index: {}]   ;;  %s3811_s23 = inlined_call_operand.vmem [shape: f32[1,32], index: 23, kind: input, shape index: {}]   ;;  %s3812_s24 = inlined_call_operand.hbm [shape: f32[8,2,32], index: 24, kind: output, shape index: {0}]   ;;  %s3813_s25 = inlined_call_operand.hbm [shape: f32[2,8,8], index: 25, kind: output, shape index: {1}]  }
   0x1   :  { %3819 = sst [smem:[#allocation26_spill]] %s3788_s0 }
   0x2   :  { %3820 = sst [smem:[#allocation27_spill]] %s3789_s1 }
   0x3   :  { %3821 = sst [smem:[#allocation28_spill]] %s3790_s2 }
   0x4   :  { %3822 = sst [smem:[#allocation29_spill]] %s3791_s3 }
   0x5   :  { %3823 = sst [smem:[#allocation30_spill]] %s3792_s4 }
   0x6   :  { %3824 = sst [smem:[#allocation31_spill]] %s3793_s5 }
   0x7   :  { %3825 = sst [smem:[#allocation32_spill]] %s3794_s6 }
   0x8   :  { %3826 = sst [smem:[#allocation33_spill]] %s3795_s7 }
   0x9   :  { %3827 = sst [smem:[#allocation34_spill]] %s3796_s8 }
   0xa   :  { %3828 = sst [smem:[#allocation35_spill]] %s3797_s9 }
   0xb   :  { %3829 = sst [smem:[#allocation36_spill]] %s3812_s24 }
   0xc   :  { %31 = vsyncpa [#allocation6], 0 }
   0xd   :  { %32 = vsyncpa [#allocation9], 0 }
   0xe   :  { %33 = vsyncpa [#allocation12], 0 }
   0xf   :  { %34 = vsyncpa [#allocation15], 0 }
  0x10   :  { %35 = vsyncpa [#allocation7], 0 }
  0x11   :  { %36 = vsyncpa [#allocation19], 0  ;;  %s3830_s6 = sld [smem:[#allocation27_spill]]  ;;  %s2958_s7 = smov [#allocation8]  }
  0x12   :  { %s56_s3 = sshll.u32 %s2958_s7, 4  ;;  %s3817_s26 = smov 32   ;;  %s57_s3 = int_to_ptr.vmem [resolvable:$true] %s56_s3 }
  0x13   :  { %s2960_s1 = smov 2   ;;  %s102_s4 = sshll.u32 %s3802_s14, 4  ;;  %s103_s4 = int_to_ptr.hbm [resolvable:$true] %s102_s4 }
  0x14   :  { %s2961_s28 = smov [#allocation11]   ;;  %s135_s29 = sshll.u32 %s3807_s19, 4  ;;  %s136_s29 = int_to_ptr.hbm [resolvable:$true] %s135_s29 }
  0x15   :  { %s104_s9 = sshll.u32 %s2961_s28, 4  ;;  %s2962_s2 = smov 128   ;;  %s105_s9 = int_to_ptr.vmem [resolvable:$true] %s104_s9 }
  0x16   :  { %s2964_s14 = smov [#allocation14]   ;;  %s2965_s28 = smov [#allocation5]  }
  0x17   :  { %s54_s30 = sshll.u32 %s3830_s6, 4  ;;  %s2963_s6 = smov 8   ;;  %s55_s30 = int_to_ptr.hbm [resolvable:$true] %s54_s30 }
  0x18   :  { %62 = dma.hbm_to_vmem [thread:$0]  %s55_s30, 256, %s57_s3, [#allocation9], %s3817_s26, %s3817_s26, %s2960_s1  }
  0x19   :  { %110 = dma.hbm_to_vmem [thread:$0]  %s103_s4, 512, %s105_s9, [#allocation12], %s2962_s2, %s2962_s2, %s2963_s6  }
  0x1a   :  { %s3831_s3 = sld [smem:[#allocation26_spill]]  ;;  %s137_s27 = sshll.u32 %s2964_s14, 4  ;;  %s138_s27 = int_to_ptr.vmem [resolvable:$true] %s137_s27 }
  0x1b   :  { %140 = dma.hbm_to_vmem [thread:$0]  %s136_s29, 16, %s138_s27, [#allocation15]  }
  0x1c   :  { %s43_s5 = sshll.u32 %s2965_s28, 4  ;;  %s87_s26 = sshll.u32 %s3800_s12, 4  ;;  %s44_s5 = int_to_ptr.vmem [resolvable:$true] %s43_s5  ;;  %s88_s26 = int_to_ptr.hbm [resolvable:$true] %s87_s26 }
  0x1d   :  { %s3832_s24 = smov 32   ;;  %s121_s30 = sshll.u32 %s3806_s18, 4  ;;  %s122_s30 = int_to_ptr.hbm [resolvable:$true] %s121_s30 }
  0x1e   :  { %s2966_s7 = smov [#allocation10]   ;;  %s2967_s29 = smov [#allocation13]  }
  0x1f   :  { %s123_s12 = sshll.u32 %s2967_s29, 4  ;;  %s148_s28 = sshll.u32 %s3809_s21, 4  ;;  %s124_s12 = int_to_ptr.vmem [resolvable:$true] %s123_s12  ;;  %s149_s28 = int_to_ptr.hbm [resolvable:$true] %s148_s28 }
  0x20   :  { %s41_s8 = sshll.u32 %s3831_s3, 4  ;;  %s89_s3 = sshll.u32 %s2966_s7, 4  ;;  %s42_s8 = int_to_ptr.hbm [resolvable:$true] %s41_s8  ;;  %s90_s3 = int_to_ptr.vmem [resolvable:$true] %s89_s3 }
  0x21   :  { %49 = dma.hbm_to_vmem [thread:$0]  %s42_s8, 256, %s44_s5, [#allocation6], %s3832_s24, %s3832_s24, %s2960_s1  }
  0x22   :  { %95 = dma.hbm_to_vmem [thread:$0]  %s88_s26, 512, %s90_s3, [#allocation9], %s2962_s2, %s2962_s2, %s2963_s6  }
  0x23   :  { %129 = dma.hbm_to_vmem [thread:$0]  %s122_s30, 512, %s124_s12, [#allocation12], %s2962_s2, %s2962_s2, %s2963_s6  }
  0x24   :  { %s2968_s18 = smov [#allocation16]  }
  0x25   :  { %s150_s8 = sshll.u32 %s2968_s18, 4  ;;  %s151_s8 = int_to_ptr.vmem [resolvable:$true] %s150_s8 }
  0x26   :  { %153 = dma.hbm_to_vmem [thread:$0]  %s149_s28, 16, %s151_s8, [#allocation15]  }
  0x27   :  { %2946 = dma.done.wait [#allocation6], 256  }
  0x28   :  { %2947 = vsyncadd [#allocation6], 4294967040 }
  0x29   :  { %2948 = dma.done.wait [#allocation9], 768  }
  0x2a   :  { %2949 = vsyncadd [#allocation9], 4294966528 }
  0x2b   :  { %2950 = dma.done.wait [#allocation12], 1024  }
  0x2c   :  { %2951 = vsyncadd [#allocation12], 4294966272 }
  0x2d   :  { %2952 = dma.done.wait [#allocation15], 32  }
  0x2e   :  { %2953 = vsyncadd [#allocation15], 4294967264  ;;  %s3833_s5 = sld [smem:[#allocation31_spill]]  ;;  %v3161_v3 = vld [vmem:[#allocation5] sm:$0x3]  ;;  %vm227_vm0 = vcmask 261120  }
  0x2f   :  { %v3163_v4 = vld [vmem:[#allocation5 + $0x2] sm:$0x3]  ;;  %v3165_v5 = vld [vmem:[#allocation5 + $0x4] sm:$0x3]  ;;  %v3167_v6 = vld [vmem:[#allocation5 + $0x6] sm:$0x3] }
  0x30   :  { %210 = vst [vmem:[#allocation1] ss:$4 sm:$0xff] %v3161_v3  ;;  %s3834_s3 = sld [smem:[#allocation32_spill]]  ;;  %v3174_v8 = vld [vmem:[#allocation5 + $0x8] sm:$0x3]  ;;  %s2969_s30 = smov 64  }
  0x31   :  { %212 = vst [vmem:[#allocation1 + $0x1] ss:$4 sm:$0xff] %v3163_v4  ;;  %v3180_v10 = vld [vmem:[#allocation5 + $0xa] sm:$0x3]  ;;  %v3186_v12 = vld [vmem:[#allocation5 + $0xc] sm:$0x3] }
  0x32   :  { %214 = vst [vmem:[#allocation1 + $0x2] ss:$4 sm:$0xff] %v3165_v5  ;;  %v3188_v13 = vld [vmem:[#allocation5 + $0xe] sm:$0x3]  ;;  %s3835_s19 = sld [smem:[#allocation28_spill]]  ;;  %vm353_vm5 = vcmask 254976  }
  0x33   :  { %216 = vst [vmem:[#allocation1 + $0x3] ss:$4 sm:$0xff] %v3167_v6  ;;  %s3836_s9 = sld [smem:[#allocation33_spill]]  ;;  %s2977_s12 = smov 104  }
  0x34   :  { %v197_v0 = vld [vmem:[%s3833_s5 + $0x18] sm:$0xff]  ;;  %v196_v1 = vld [vmem:[%s3833_s5 + $0x10] sm:$0xff]  ;;  %v195_v2 = vld [vmem:[%s3833_s5 + $0x8] sm:$0xff]  ;;  %218 = vst [vmem:[#allocation1 + $0x20] ss:$4 sm:$0xff] %v3174_v8  ;;  %s3837_s29 = sld [smem:[#allocation29_spill]] }
  0x35   :  { %244 = vmatpush.msra.mxu1 %v197_v0  ;;  %v194_v9 = vld [vmem:[%s3833_s5] sm:$0xff]  ;;  %220 = vst [vmem:[#allocation1 + $0x21] ss:$4 sm:$0xff] %v3180_v10  ;;  %s3838_s0 = sld [smem:[#allocation34_spill]]  ;;  %s2978_s26 = smov 88  }
  0x36   :  { %v280_v7 = vld [vmem:[%s3834_s3 + $0x18] sm:$0xff]  ;;  %v279_v11 = vld [vmem:[%s3834_s3 + $0x10] sm:$0xff]  ;;  %v278_v14 = vld [vmem:[%s3834_s3 + $0x8] sm:$0xff]  ;;  %222 = vst [vmem:[#allocation1 + $0x22] ss:$4 sm:$0xff] %v3186_v12  ;;  %s3840_s28 = sld [smem:[#allocation30_spill]] }
  0x37   :  { %245 = vmatpush.msra.mxu1 %v196_v1  ;;  %371 = vmatpush.msra.mxu2 %v280_v7  ;;  %v277_v15 = vld [vmem:[%s3834_s3] sm:$0xff]  ;;  %224 = vst [vmem:[#allocation1 + $0x23] ss:$4 sm:$0xff] %v3188_v13  ;;  %s2979_s21 = smov 80   ;;  %s2980_s5 = smov 72  }
  0x38   :  { %439 = vmatpush.msra.mxu3 %v280_v7  ;;  %711 = vmatpush.msra.mxu0 %v280_v7  ;;  %v281_v18 = vld [vmem:[%s3835_s19] sm:$0x3]  ;;  %s2981_s19 = smov 96   ;;  %s2983_s4 = smov 16  }
  0x39   :  { %246 = vmatpush.msra.mxu1 %v195_v2  ;;  %372 = vmatpush.msra.mxu2 %v279_v11  ;;  %v2606_v19 = vld [vmem:[%s3836_s9] ss:$0 sm:$0xff] }
  0x3a   :  { %440 = vmatpush.msra.mxu3 %v279_v11  ;;  %712 = vmatpush.msra.mxu0 %v279_v11  ;;  %v225_v16 = vld.sshfl [vmem:[#allocation1] sm:$0xff pattern:$0x73625140] }
  0x3b   :  { %247 = vmatpush.msra.mxu1 %v194_v9  ;;  %373 = vmatpush.msra.mxu2 %v278_v14  ;;  %v282_v34 = vld [vmem:[%s3837_s29] sm:$0x3]  ;;  %s3841_s29 = sld [smem:[#allocation36_spill]] }
  0x3c   :  { %441 = vmatpush.msra.mxu3 %v278_v14  ;;  %713 = vmatpush.msra.mxu0 %v278_v14 }
  0x3d   :  { %299 = vmatpush.msrb.mxu1 %v280_v7  ;;  %374 = vmatpush.msra.mxu2 %v277_v15 }
  0x3e   :  { %442 = vmatpush.msra.mxu3 %v277_v15  ;;  %2521 = vmatmul.msk.f32.vlgmr.msra.gmra.mxu1 %vm227_vm0, %v225_v16  ;;  %v226_v17 = vld.sshfl [vmem:[#allocation1 + $0x20] sm:$0xff pattern:$0x73625140] }
  0x3f   :  { %300 = vmatpush.msrb.mxu1 %v279_v11  ;;  %575 = vmatpush.msrb.mxu2 %v280_v7 }
  0x40   :  { %643 = vmatpush.msrb.mxu3 %v280_v7  ;;  %714 = vmatpush.msra.mxu0 %v277_v15 }
  0x41   :  { %301 = vmatpush.msrb.mxu1 %v278_v14  ;;  %576 = vmatpush.msrb.mxu2 %v279_v11 }
  0x42   :  { %644 = vmatpush.msrb.mxu3 %v279_v11 }
  0x43   :  { %302 = vmatpush.msrb.mxu1 %v277_v15  ;;  %577 = vmatpush.msrb.mxu2 %v278_v14 }
  0x44   :  { %645 = vmatpush.msrb.mxu3 %v278_v14 }
  0x45   :  { %507 = vmatpush.msra.mxu1 %v280_v7  ;;  %578 = vmatpush.msrb.mxu2 %v277_v15 }
  0x46   :  { %646 = vmatpush.msrb.mxu3 %v277_v15  ;;  %2522 = vmatmul.msk.f32.gmra.mxu1 %vm227_vm0, %v226_v17 }
  0x47   :  { %508 = vmatpush.msra.mxu1 %v279_v11 }
  0x49   :  { %509 = vmatpush.msra.mxu1 %v278_v14 }
  0x4b   :  { %510 = vmatpush.msra.mxu1 %v277_v15 }
  0x4e   :  { %2523 = vmatmul.msk.f32.vlgmr.msrb.gmra.mxu1 %vm227_vm0, %v281_v18 }
  0x4f   :  { %779 = vmatpush.msrb.mxu1 %v280_v7 }
  0x51   :  { %780 = vmatpush.msrb.mxu1 %v279_v11 }
  0x53   :  { %781 = vmatpush.msrb.mxu1 %v278_v14 }
  0x55   :  { %782 = vmatpush.msrb.mxu1 %v277_v15 }
  0xbb   :  { %v249_v20 = vpop.f32.mrf.mxu1 }
  0xbc   :  { %v250_v21 = vadd.f32 %v2606_v19, %v249_v20 }
  0xbe   :  { %v257_v22 = vrot.slane %v250_v21, 2  ;;  %v258_v23 = vrot.slane %v250_v21, 4  ;;  %v259_v24 = vrot.slane %v250_v21, 6  ;;  %269 = vst [vmem:[#allocation2] sm:$0x3] %v250_v21 }
  0xc0   :  { %270 = vst [vmem:[#allocation2 + $0x2] sm:$0x3] %v257_v22 }
  0xc1   :  { %271 = vst [vmem:[#allocation2 + $0x4] sm:$0x3] %v258_v23 }
  0xc2   :  { %272 = vst [vmem:[#allocation2 + $0x6] sm:$0x3] %v259_v24 }
  0xc3   :  { %v252_v25 = vpop.f32.mrf.mxu1 }
  0xc4   :  { %v253_v26 = vadd.f32 %v2606_v19, %v252_v25 }
  0xc5   :  { %v283_v30 = vld [vmem:[#allocation2] sm:$0x3] }
  0xc6   :  { %v260_v27 = vrot.slane %v253_v26, 2  ;;  %v261_v28 = vrot.slane %v253_v26, 4  ;;  %v262_v29 = vrot.slane %v253_v26, 6  ;;  %273 = vst [vmem:[#allocation2 + $0x8] sm:$0x3] %v253_v26 }
  0xc7   :  { %v356_v60 = vld [vmem:[#allocation2 + $0x2] sm:$0x3] }
  0xc8   :  { %274 = vst [vmem:[#allocation2 + $0xa] sm:$0x3] %v260_v27 }
  0xc9   :  { %275 = vst [vmem:[#allocation2 + $0xc] sm:$0x3] %v261_v28 }
  0xca   :  { %276 = vst [vmem:[#allocation2 + $0xe] sm:$0x3] %v262_v29 }
  0xcb   :  { %v304_v31 = vpop.f32.mrf.mxu1 }
  0xcc   :  { %v307_v32 = vadd.f32 %v304_v31, %v283_v30  ;;  %v424_v31 = vld [vmem:[#allocation2 + $0x4] sm:$0x3] }
  0xce   :  { %2620 = vtanh.f32 %v307_v32  ;;  %v2524_v35 = vmul.f32 -1.442695, %v307_v32 }
  0xd0   :  { %2622 = vpow2.f32 %v2524_v35 }
  0xd4   :  { %v2621_v33 = vpop.eup %2620 }
  0xd5   :  { %334 = vrot.lane.b32.xlu0 %v2621_v33, %s2969_s30 }
  0xd6   :  { %v2623_v36 = vpop.eup %2622 }
  0xd7   :  { %v311_v37 = vadd.f32 1.0, %v2623_v36 }
  0xd9   :  { %2624 = vrcp.f32 %v311_v37  ;;  %v323_v43 = vand.u32 2147483648, %v311_v37  ;;  %vm317_vm2 = vweird.f32 %v311_v37  ;;  %v321_v44 = vand.u32 2147483647, %v311_v37 }
  0xdb   :  { %v324_v46 = vor.u32 1.1754944e-38, %v323_v43  ;;  %vm322_vm4 = vcmp.eq.f32.partialorder %v321_v44, 8.507059e+37 }
  0xdd   :  { %329 = vrot.lane.b32.xlu0 %v282_v34, %s3832_s24 }
  0xdf   :  { %v2625_v38 = vpop.eup %2624 }
  0xe0   :  { %v313_v39 = vmul.f32 %v2625_v38, %v311_v37  ;;  %vm318_vm1 = vweird.f32 %v2625_v38 }
  0xe1   :  { %vm319_vm3 = vmor %vm317_vm2, %vm318_vm1 }
  0xe2   :  { %v314_v40 = vsub.f32 1.0, %v313_v39 }
  0xe4   :  { %v315_v41 = vmul.f32 %v2625_v38, %v314_v40 }
  0xe6   :  { %v316_v42 = vadd.f32 %v2625_v38, %v315_v41 }
  0xe8   :  { %v320_v45 = vsel %vm319_vm3, %v2625_v38, %v316_v42 }
  0xe9   :  { %v325_v48 = vsel %vm322_vm4, %v324_v46, %v320_v45 }
 0x147   :  { %v335_v47 = vpop.permute.xlu0 %334 }
 0x148   :  { %v337_v49 = vmul.f32 %v335_v47, %v325_v48 }
 0x14a   :  { %339 = vrot.lane.b32.xlu1 %v337_v49, %s3832_s24 }
 0x14f   :  { %v330_v50 = vpop.permute.xlu0 %329 }
 0x150   :  { %v332_v51 = vmul.f32 %v330_v50, %v325_v48 }
 0x1bc   :  { %v340_v52 = vpop.permute.xlu1 %339 }
 0x1bd   :  { %v342_v53 = vadd.f32 %v340_v52, %v332_v51 }
 0x1bf   :  { %2626 = vtanh.f32 %v342_v53 }
 0x1c5   :  { %v2627_v54 = vpop.eup %2626 }
 0x1c6   :  { %345 = vrot.lane.b32.xlu1 %v2627_v54, %s2969_s30 }
 0x238   :  { %v346_v55 = vpop.permute.xlu1 %345 }
 0x239   :  { %v348_v56 = vmul.f32 %v346_v55, %v325_v48 }
 0x23b   :  { %350 = vrot.lane.b32.xlu2 %v348_v56, %s3832_s24 }
 0x295   :  { %v351_v57 = vpop.permute.xlu2 %350 }
 0x296   :  { %354 = vst.msk [vmem:[#allocation3] sm:$0x3] %vm353_vm5, %v351_v57  ;;  %2525 = vmatmul.msk.f32.vlgmr.msra.gmra.mxu2 %vm227_vm0, %v351_v57 }
 0x29d   :  { %v831_v58 = vld [vmem:[#allocation3] sm:$0x3] }
 0x29e   :  { %v3220_v59 = vadd.f32 %v831_v58, %v3161_v3  ;;  %v492_v58 = vld [vmem:[#allocation2 + $0x6] sm:$0x3] }
 0x2a0   :  { %857 = vst [vmem:[#allocation1] ss:$4 sm:$0xff] %v3220_v59 }
 0x319   :  { %v376_v61 = vpop.f32.mrf.mxu2 }
 0x31a   :  { %v379_v62 = vadd.f32 %v376_v61, %v356_v60 }
 0x31c   :  { %2628 = vtanh.f32 %v379_v62  ;;  %v2526_v0 = vmul.f32 -1.442695, %v379_v62 }
 0x31e   :  { %2630 = vpow2.f32 %v2526_v0 }
 0x322   :  { %v2629_v63 = vpop.eup %2628 }
 0x323   :  { %402 = vrot.lane.b32.xlu2 %v2629_v63, %s2969_s30 }
 0x324   :  { %v2631_v1 = vpop.eup %2630 }
 0x325   :  { %v383_v2 = vadd.f32 1.0, %v2631_v1 }
 0x327   :  { %2632 = vrcp.f32 %v383_v2  ;;  %v395_v15 = vand.u32 2147483648, %v383_v2  ;;  %vm389_vm7 = vweird.f32 %v383_v2  ;;  %v393_v16 = vand.u32 2147483647, %v383_v2 }
 0x329   :  { %v396_v18 = vor.u32 1.1754944e-38, %v395_v15  ;;  %vm394_vm9 = vcmp.eq.f32.partialorder %v393_v16, 8.507059e+37 }
 0x32d   :  { %v2633_v7 = vpop.eup %2632 }
 0x32e   :  { %v385_v9 = vmul.f32 %v2633_v7, %v383_v2  ;;  %vm390_vm6 = vweird.f32 %v2633_v7 }
 0x32f   :  { %vm391_vm8 = vmor %vm389_vm7, %vm390_vm6 }
 0x330   :  { %v386_v11 = vsub.f32 1.0, %v385_v9 }
 0x332   :  { %v387_v14 = vmul.f32 %v2633_v7, %v386_v11 }
 0x334   :  { %v388_v3 = vadd.f32 %v2633_v7, %v387_v14 }
 0x336   :  { %v392_v17 = vsel %vm391_vm8, %v2633_v7, %v388_v3 }
 0x337   :  { %v397_v20 = vsel %vm394_vm9, %v396_v18, %v392_v17 }
 0x338   :  { %v400_v22 = vmul.f32 %v397_v20, %v342_v53 }
 0x37d   :  { %v403_v19 = vpop.permute.xlu2 %402 }
 0x37e   :  { %v405_v21 = vmul.f32 %v403_v19, %v397_v20 }
 0x380   :  { %407 = vrot.lane.b32.xlu0 %v405_v21, %s3832_s24 }
 0x3f2   :  { %v408_v23 = vpop.permute.xlu0 %407 }
 0x3f3   :  { %v410_v24 = vadd.f32 %v408_v23, %v400_v22 }
 0x3f5   :  { %2634 = vtanh.f32 %v410_v24 }
 0x3fb   :  { %v2635_v25 = vpop.eup %2634 }
 0x3fc   :  { %413 = vrot.lane.b32.xlu1 %v2635_v25, %s2969_s30 }
 0x46e   :  { %v414_v26 = vpop.permute.xlu1 %413 }
 0x46f   :  { %v416_v27 = vmul.f32 %v414_v26, %v397_v20 }
 0x471   :  { %418 = vrot.lane.b32.xlu2 %v416_v27, %s3832_s24 }
 0x4cb   :  { %v419_v28 = vpop.permute.xlu2 %418 }
 0x4cc   :  { %422 = vst.msk [vmem:[#allocation3 + $0x2] sm:$0x3] %vm353_vm5, %v419_v28  ;;  %2527 = vmatmul.msk.f32.vlgmr.msra.gmra.mxu3 %vm227_vm0, %v419_v28 }
 0x4d3   :  { %v832_v29 = vld [vmem:[#allocation3 + $0x2] sm:$0x3] }
 0x4d4   :  { %v3230_v30 = vadd.f32 %v832_v29, %v3163_v4  ;;  %v560_v29 = vld [vmem:[#allocation2 + $0x8] sm:$0x3] }
 0x4d6   :  { %859 = vst [vmem:[#allocation1 + $0x1] ss:$4 sm:$0xff] %v3230_v30 }
 0x54f   :  { %v444_v32 = vpop.f32.mrf.mxu3 }
 0x550   :  { %v447_v33 = vadd.f32 %v444_v32, %v424_v31 }
 0x552   :  { %2636 = vtanh.f32 %v447_v33  ;;  %v2528_v35 = vmul.f32 -1.442695, %v447_v33 }
 0x554   :  { %2638 = vpow2.f32 %v2528_v35 }
 0x558   :  { %v2637_v34 = vpop.eup %2636 }
 0x559   :  { %470 = vrot.lane.b32.xlu0 %v2637_v34, %s2969_s30 }
 0x55a   :  { %v2639_v36 = vpop.eup %2638 }
 0x55b   :  { %v451_v37 = vadd.f32 1.0, %v2639_v36 }
 0x55d   :  { %2640 = vrcp.f32 %v451_v37  ;;  %v463_v42 = vand.u32 2147483648, %v451_v37  ;;  %vm457_vm11 = vweird.f32 %v451_v37  ;;  %v461_v43 = vand.u32 2147483647, %v451_v37 }
 0x55f   :  { %v464_v45 = vor.u32 1.1754944e-38, %v463_v42  ;;  %vm462_vm13 = vcmp.eq.f32.partialorder %v461_v43, 8.507059e+37 }
 0x563   :  { %v2641_v38 = vpop.eup %2640 }
 0x564   :  { %v453_v39 = vmul.f32 %v2641_v38, %v451_v37  ;;  %vm458_vm10 = vweird.f32 %v2641_v38 }
 0x565   :  { %vm459_vm12 = vmor %vm457_vm11, %vm458_vm10 }
 0x566   :  { %v454_v40 = vsub.f32 1.0, %v453_v39 }
 0x568   :  { %v455_v41 = vmul.f32 %v2641_v38, %v454_v40 }
 0x56a   :  { %v456_v4 = vadd.f32 %v2641_v38, %v455_v41 }
 0x56c   :  { %v460_v44 = vsel %vm459_vm12, %v2641_v38, %v456_v4 }
 0x56d   :  { %v465_v47 = vsel %vm462_vm13, %v464_v45, %v460_v44 }
 0x56e   :  { %v468_v49 = vmul.f32 %v465_v47, %v410_v24 }
 0x5cb   :  { %v471_v46 = vpop.permute.xlu0 %470 }
 0x5cc   :  { %v473_v48 = vmul.f32 %v471_v46, %v465_v47 }
 0x5ce   :  { %475 = vrot.lane.b32.xlu1 %v473_v48, %s3832_s24 }
 0x640   :  { %v476_v50 = vpop.permute.xlu1 %475 }
 0x641   :  { %v478_v51 = vadd.f32 %v476_v50, %v468_v49 }
 0x643   :  { %2642 = vtanh.f32 %v478_v51 }
 0x649   :  { %v2643_v52 = vpop.eup %2642 }
 0x64a   :  { %481 = vrot.lane.b32.xlu2 %v2643_v52, %s2969_s30 }
 0x6a4   :  { %v482_v53 = vpop.permute.xlu2 %481 }
 0x6a5   :  { %v484_v54 = vmul.f32 %v482_v53, %v465_v47 }
 0x6a7   :  { %486 = vrot.lane.b32.xlu0 %v484_v54, %s3832_s24 }
 0x719   :  { %v487_v55 = vpop.permute.xlu0 %486 }
 0x71a   :  { %490 = vst.msk [vmem:[#allocation3 + $0x4] sm:$0x3] %vm353_vm5, %v487_v55  ;;  %2529 = vmatmul.msk.f32.vlgmr.msra.gmra.mxu1 %vm227_vm0, %v487_v55 }
 0x721   :  { %v833_v56 = vld [vmem:[#allocation3 + $0x4] sm:$0x3] }
 0x722   :  { %v3240_v57 = vadd.f32 %v833_v56, %v3165_v5  ;;  %v628_v56 = vld [vmem:[#allocation2 + $0xa] sm:$0x3] }
 0x724   :  { %861 = vst [vmem:[#allocation1 + $0x2] ss:$4 sm:$0xff] %v3240_v57 }
 0x797   :  { %v512_v60 = vpop.f32.mrf.mxu1 }
 0x798   :  { %v515_v61 = vadd.f32 %v512_v60, %v492_v58 }
 0x79a   :  { %2644 = vtanh.f32 %v515_v61  ;;  %v2530_v63 = vmul.f32 -1.442695, %v515_v61 }
 0x79c   :  { %2646 = vpow2.f32 %v2530_v63 }
 0x7a0   :  { %v2645_v62 = vpop.eup %2644 }
 0x7a1   :  { %538 = vrot.lane.b32.xlu1 %v2645_v62, %s2969_s30 }
 0x7a2   :  { %v2647_v0 = vpop.eup %2646 }
 0x7a3   :  { %v519_v1 = vadd.f32 1.0, %v2647_v0 }
 0x7a5   :  { %2648 = vrcp.f32 %v519_v1  ;;  %v531_v14 = vand.u32 2147483648, %v519_v1  ;;  %vm525_vm15 = vweird.f32 %v519_v1  ;;  %v529_v3 = vand.u32 2147483647, %v519_v1 }
 0x7a7   :  { %v532_v16 = vor.u32 1.1754944e-38, %v531_v14  ;;  %vm530_vm2 = vcmp.eq.f32.partialorder %v529_v3, 8.507059e+37 }
 0x7ab   :  { %v2649_v2 = vpop.eup %2648 }
 0x7ac   :  { %v521_v7 = vmul.f32 %v2649_v2, %v519_v1  ;;  %vm526_vm14 = vweird.f32 %v2649_v2 }
 0x7ad   :  { %vm527_vm1 = vmor %vm525_vm15, %vm526_vm14 }
 0x7ae   :  { %v522_v9 = vsub.f32 1.0, %v521_v7 }
 0x7b0   :  { %v523_v11 = vmul.f32 %v2649_v2, %v522_v9 }
 0x7b2   :  { %v524_v5 = vadd.f32 %v2649_v2, %v523_v11 }
 0x7b4   :  { %v528_v15 = vsel %vm527_vm1, %v2649_v2, %v524_v5 }
 0x7b5   :  { %v533_v18 = vsel %vm530_vm2, %v532_v16, %v528_v15 }
 0x7b6   :  { %v536_v20 = vmul.f32 %v533_v18, %v478_v51 }
 0x813   :  { %v539_v17 = vpop.permute.xlu1 %538 }
 0x814   :  { %v541_v19 = vmul.f32 %v539_v17, %v533_v18 }
 0x816   :  { %543 = vrot.lane.b32.xlu2 %v541_v19, %s3832_s24 }
 0x870   :  { %v544_v21 = vpop.permute.xlu2 %543 }
 0x871   :  { %v546_v22 = vadd.f32 %v544_v21, %v536_v20 }
 0x873   :  { %2650 = vtanh.f32 %v546_v22 }
 0x879   :  { %v2651_v23 = vpop.eup %2650 }
 0x87a   :  { %549 = vrot.lane.b32.xlu0 %v2651_v23, %s2969_s30 }
 0x8ec   :  { %v550_v24 = vpop.permute.xlu0 %549 }
 0x8ed   :  { %v552_v25 = vmul.f32 %v550_v24, %v533_v18 }
 0x8ef   :  { %554 = vrot.lane.b32.xlu1 %v552_v25, %s3832_s24 }
 0x961   :  { %v555_v26 = vpop.permute.xlu1 %554 }
 0x962   :  { %558 = vst.msk [vmem:[#allocation3 + $0x6] sm:$0x3] %vm353_vm5, %v555_v26  ;;  %2531 = vmatmul.msk.f32.vlgmr.msrb.gmra.mxu2 %vm227_vm0, %v555_v26 }
 0x969   :  { %v834_v27 = vld [vmem:[#allocation3 + $0x6] sm:$0x3] }
 0x96a   :  { %v3250_v28 = vadd.f32 %v834_v27, %v3167_v6  ;;  %v696_v27 = vld [vmem:[#allocation2 + $0xc] sm:$0x3] }
 0x96c   :  { %863 = vst [vmem:[#allocation1 + $0x3] ss:$4 sm:$0xff] %v3250_v28 }
 0x9e5   :  { %v580_v31 = vpop.f32.mrf.mxu2 }
 0x9e6   :  { %v583_v32 = vadd.f32 %v580_v31, %v560_v29 }
 0x9e8   :  { %2652 = vtanh.f32 %v583_v32  ;;  %v2532_v34 = vmul.f32 -1.442695, %v583_v32 }
 0x9ea   :  { %2654 = vpow2.f32 %v2532_v34 }
 0x9ee   :  { %v2653_v33 = vpop.eup %2652 }
 0x9ef   :  { %606 = vrot.lane.b32.xlu2 %v2653_v33, %s2969_s30 }
 0x9f0   :  { %v2655_v35 = vpop.eup %2654 }
 0x9f1   :  { %v587_v36 = vadd.f32 1.0, %v2655_v35 }
 0x9f3   :  { %2656 = vrcp.f32 %v587_v36  ;;  %v599_v41 = vand.u32 2147483648, %v587_v36  ;;  %vm593_vm4 = vweird.f32 %v587_v36  ;;  %v597_v4 = vand.u32 2147483647, %v587_v36 }
 0x9f5   :  { %v600_v43 = vor.u32 1.1754944e-38, %v599_v41  ;;  %vm598_vm7 = vcmp.eq.f32.partialorder %v597_v4, 8.507059e+37 }
 0x9f9   :  { %v2657_v37 = vpop.eup %2656 }
 0x9fa   :  { %v589_v38 = vmul.f32 %v2657_v37, %v587_v36  ;;  %vm594_vm3 = vweird.f32 %v2657_v37 }
 0x9fb   :  { %vm595_vm6 = vmor %vm593_vm4, %vm594_vm3 }
 0x9fc   :  { %v590_v39 = vsub.f32 1.0, %v589_v38 }
 0x9fe   :  { %v591_v40 = vmul.f32 %v2657_v37, %v590_v39 }
 0xa00   :  { %v592_v6 = vadd.f32 %v2657_v37, %v591_v40 }
 0xa02   :  { %v596_v42 = vsel %vm595_vm6, %v2657_v37, %v592_v6 }
 0xa03   :  { %v601_v45 = vsel %vm598_vm7, %v600_v43, %v596_v42 }
 0xa04   :  { %v604_v47 = vmul.f32 %v601_v45, %v546_v22 }
 0xa49   :  { %v607_v44 = vpop.permute.xlu2 %606 }
 0xa4a   :  { %v609_v46 = vmul.f32 %v607_v44, %v601_v45 }
 0xa4c   :  { %611 = vrot.lane.b32.xlu0 %v609_v46, %s3832_s24 }
 0xabe   :  { %v612_v48 = vpop.permute.xlu0 %611 }
 0xabf   :  { %v614_v49 = vadd.f32 %v612_v48, %v604_v47 }
 0xac1   :  { %2658 = vtanh.f32 %v614_v49 }
 0xac7   :  { %v2659_v50 = vpop.eup %2658 }
 0xac8   :  { %617 = vrot.lane.b32.xlu1 %v2659_v50, %s2969_s30 }
 0xb3a   :  { %v618_v51 = vpop.permute.xlu1 %617 }
 0xb3b   :  { %v620_v52 = vmul.f32 %v618_v51, %v601_v45 }
 0xb3d   :  { %622 = vrot.lane.b32.xlu2 %v620_v52, %s3832_s24 }
 0xb97   :  { %v623_v53 = vpop.permute.xlu2 %622 }
 0xb98   :  { %626 = vst.msk [vmem:[#allocation3 + $0x8] sm:$0x3] %vm353_vm5, %v623_v53  ;;  %2533 = vmatmul.msk.f32.vlgmr.msrb.gmra.mxu3 %vm227_vm0, %v623_v53 }
 0xb9f   :  { %v835_v54 = vld [vmem:[#allocation3 + $0x8] sm:$0x3] }
 0xba0   :  { %v3260_v55 = vadd.f32 %v835_v54, %v3174_v8  ;;  %v764_v54 = vld [vmem:[#allocation2 + $0xe] sm:$0x3] }
 0xba2   :  { %865 = vst [vmem:[#allocation1 + $0x20] ss:$4 sm:$0xff] %v3260_v55 }
 0xc1b   :  { %v648_v58 = vpop.f32.mrf.mxu3 }
 0xc1c   :  { %v651_v60 = vadd.f32 %v648_v58, %v628_v56 }
 0xc1e   :  { %2660 = vtanh.f32 %v651_v60  ;;  %v2534_v62 = vmul.f32 -1.442695, %v651_v60 }
 0xc20   :  { %2662 = vpow2.f32 %v2534_v62 }
 0xc24   :  { %v2661_v61 = vpop.eup %2660 }
 0xc25   :  { %674 = vrot.lane.b32.xlu0 %v2661_v61, %s2969_s30 }
 0xc26   :  { %v2663_v63 = vpop.eup %2662 }
 0xc27   :  { %v655_v0 = vadd.f32 1.0, %v2663_v63 }
 0xc29   :  { %2664 = vrcp.f32 %v655_v0  ;;  %v667_v11 = vand.u32 2147483648, %v655_v0  ;;  %vm661_vm9 = vweird.f32 %v655_v0  ;;  %v665_v5 = vand.u32 2147483647, %v655_v0 }
 0xc2b   :  { %v668_v3 = vor.u32 1.1754944e-38, %v667_v11  ;;  %vm666_vm11 = vcmp.eq.f32.partialorder %v665_v5, 8.507059e+37 }
 0xc2f   :  { %v2665_v1 = vpop.eup %2664 }
 0xc30   :  { %v657_v2 = vmul.f32 %v2665_v1, %v655_v0  ;;  %vm662_vm8 = vweird.f32 %v2665_v1 }
 0xc31   :  { %vm663_vm10 = vmor %vm661_vm9, %vm662_vm8 }
 0xc32   :  { %v658_v7 = vsub.f32 1.0, %v657_v2 }
 0xc34   :  { %v659_v9 = vmul.f32 %v2665_v1, %v658_v7 }
 0xc36   :  { %v660_v8 = vadd.f32 %v2665_v1, %v659_v9 }
 0xc38   :  { %v664_v14 = vsel %vm663_vm10, %v2665_v1, %v660_v8 }
 0xc39   :  { %v669_v16 = vsel %vm666_vm11, %v668_v3, %v664_v14 }
 0xc3a   :  { %v672_v18 = vmul.f32 %v669_v16, %v614_v49 }
 0xc97   :  { %v675_v15 = vpop.permute.xlu0 %674 }
 0xc98   :  { %v677_v17 = vmul.f32 %v675_v15, %v669_v16 }
 0xc9a   :  { %679 = vrot.lane.b32.xlu1 %v677_v17, %s3832_s24 }
 0xd0c   :  { %v680_v19 = vpop.permute.xlu1 %679 }
 0xd0d   :  { %v682_v20 = vadd.f32 %v680_v19, %v672_v18 }
 0xd0f   :  { %2666 = vtanh.f32 %v682_v20 }
 0xd15   :  { %v2667_v21 = vpop.eup %2666 }
 0xd16   :  { %685 = vrot.lane.b32.xlu2 %v2667_v21, %s2969_s30 }
 0xd70   :  { %v686_v22 = vpop.permute.xlu2 %685 }
 0xd71   :  { %v688_v23 = vmul.f32 %v686_v22, %v669_v16  ;;  %v872_v16 = vld.sshfl [vmem:[#allocation1] sm:$0xff pattern:$0x73625140]  ;;  %v2970_v22 = vmov 32.0  }
 0xd72   :  { %v876_v17 = vsel %vm227_vm0, %v872_v16, 0.0 }
 0xd73   :  { %690 = vrot.lane.b32.xlu0 %v688_v23, %s3832_s24 }
 0xde5   :  { %v691_v24 = vpop.permute.xlu0 %690 }
 0xde6   :  { %694 = vst.msk [vmem:[#allocation3 + $0xa] sm:$0x3] %vm353_vm5, %v691_v24  ;;  %2535 = vmatmul.msk.f32.vlgmr.msra.gmra.mxu0 %vm227_vm0, %v691_v24 }
 0xded   :  { %v836_v25 = vld [vmem:[#allocation3 + $0xa] sm:$0x3] }
 0xdee   :  { %v3270_v26 = vadd.f32 %v836_v25, %v3180_v10 }
 0xdf0   :  { %867 = vst [vmem:[#allocation1 + $0x21] ss:$4 sm:$0xff] %v3270_v26 }
 0xe63   :  { %v716_v29 = vpop.f32.mrf.mxu0 }
 0xe64   :  { %v719_v31 = vadd.f32 %v716_v29, %v696_v27 }
 0xe66   :  { %2668 = vtanh.f32 %v719_v31  ;;  %v2536_v33 = vmul.f32 -1.442695, %v719_v31  ;;  %v2971_v31 = vmov 269488144  }
 0xe68   :  { %2670 = vpow2.f32 %v2536_v33  ;;  %v2972_v33 = vmov 842150450  }
 0xe6c   :  { %v2669_v32 = vpop.eup %2668 }
 0xe6d   :  { %742 = vrot.lane.b32.xlu1 %v2669_v32, %s2969_s30  ;;  %v894_v32 = vunpack.c.l.s4 %v2971_v31 }
 0xe6e   :  { %v2671_v34 = vpop.eup %2670 }
 0xe6f   :  { %v723_v35 = vadd.f32 1.0, %v2671_v34  ;;  %v898_v34 = vunpack.c.l.s4 %v2972_v33 }
 0xe71   :  { %2672 = vrcp.f32 %v723_v35  ;;  %v735_v40 = vand.u32 2147483648, %v723_v35  ;;  %vm729_vm13 = vweird.f32 %v723_v35  ;;  %v733_v6 = vand.u32 2147483647, %v723_v35 }
 0xe73   :  { %v736_v4 = vor.u32 1.1754944e-38, %v735_v40  ;;  %vm734_vm15 = vcmp.eq.f32.partialorder %v733_v6, 8.507059e+37  ;;  %v3291_v40 = vunpack.c.0.s8 %v898_v34 }
 0xe77   :  { %v2673_v36 = vpop.eup %2672 }
 0xe78   :  { %v725_v37 = vmul.f32 %v2673_v36, %v723_v35  ;;  %vm730_vm12 = vweird.f32 %v2673_v36  ;;  %v2973_v35 = vmov 1414812756  }
 0xe79   :  { %vm731_vm14 = vmor %vm729_vm13, %vm730_vm12  ;;  %vm1249_vm13 = vcmask 1041409  }
 0xe7a   :  { %v726_v38 = vsub.f32 1.0, %v725_v37  ;;  %v2974_v37 = vmov 1987475062  }
 0xe7c   :  { %v727_v39 = vmul.f32 %v2673_v36, %v726_v38  ;;  %v906_v38 = vunpack.c.l.s4 %v2974_v37 }
 0xe7e   :  { %v728_v10 = vadd.f32 %v2673_v36, %v727_v39 }
 0xe80   :  { %v732_v41 = vsel %vm731_vm14, %v2673_v36, %v728_v10  ;;  %v902_v36 = vunpack.c.l.s4 %v2973_v35  ;;  %v3289_v10 = vunpack.c.0.s8 %v894_v32  ;;  %vm1251_vm14 = vcmask 1042434  }
 0xe81   :  { %v737_v43 = vsel %vm734_vm15, %v736_v4, %v732_v41  ;;  %v3295_v41 = vunpack.c.0.s8 %v906_v38  ;;  %vm1253_vm15 = vcmask 1043459  }
 0xe82   :  { %v740_v45 = vmul.f32 %v737_v43, %v682_v20  ;;  %v3293_v6 = vunpack.c.0.s8 %v902_v36 }
 0xedf   :  { %v743_v42 = vpop.permute.xlu1 %742 }
 0xee0   :  { %v745_v44 = vmul.f32 %v743_v42, %v737_v43 }
 0xee2   :  { %747 = vrot.lane.b32.xlu2 %v745_v44, %s3832_s24 }
 0xf3c   :  { %v748_v46 = vpop.permute.xlu2 %747 }
 0xf3d   :  { %v750_v47 = vadd.f32 %v748_v46, %v740_v45 }
 0xf3f   :  { %2674 = vtanh.f32 %v750_v47 }
 0xf45   :  { %v2675_v48 = vpop.eup %2674 }
 0xf46   :  { %753 = vrot.lane.b32.xlu0 %v2675_v48, %s2969_s30 }
 0xfb8   :  { %v754_v49 = vpop.permute.xlu0 %753 }
 0xfb9   :  { %v756_v50 = vmul.f32 %v754_v49, %v737_v43 }
 0xfbb   :  { %758 = vrot.lane.b32.xlu1 %v756_v50, %s3832_s24 }
0x102d   :  { %v759_v51 = vpop.permute.xlu1 %758 }
0x102e   :  { %762 = vst.msk [vmem:[#allocation3 + $0xc] sm:$0x3] %vm353_vm5, %v759_v51  ;;  %2537 = vmatmul.msk.f32.vlgmr.msrb.gmra.mxu1 %vm227_vm0, %v759_v51 }
0x1035   :  { %v837_v52 = vld [vmem:[#allocation3 + $0xc] sm:$0x3] }
0x1036   :  { %v3280_v53 = vadd.f32 %v837_v52, %v3186_v12 }
0x1038   :  { %869 = vst [vmem:[#allocation1 + $0x22] ss:$4 sm:$0xff] %v3280_v53 }
0x10ab   :  { %v784_v56 = vpop.f32.mrf.mxu1 }
0x10ac   :  { %v787_v58 = vadd.f32 %v784_v56, %v764_v54 }
0x10ae   :  { %2676 = vtanh.f32 %v787_v58  ;;  %v2538_v61 = vmul.f32 -1.442695, %v787_v58 }
0x10b0   :  { %2678 = vpow2.f32 %v2538_v61 }
0x10b4   :  { %v2677_v60 = vpop.eup %2676 }
0x10b5   :  { %810 = vrot.lane.b32.xlu2 %v2677_v60, %s2969_s30 }
0x10b6   :  { %v2679_v62 = vpop.eup %2678 }
0x10b7   :  { %v791_v63 = vadd.f32 1.0, %v2679_v62 }
0x10b9   :  { %2680 = vrcp.f32 %v791_v63  ;;  %v803_v9 = vand.u32 2147483648, %v791_v63  ;;  %vm797_vm2 = vweird.f32 %v791_v63  ;;  %v801_v8 = vand.u32 2147483647, %v791_v63 }
0x10bb   :  { %v804_v5 = vor.u32 1.1754944e-38, %v803_v9  ;;  %vm802_vm4 = vcmp.eq.f32.partialorder %v801_v8, 8.507059e+37  ;;  %v1090_v9 = vld [vmem:[%s3798_s10] sm:$0xff] }
0x10bf   :  { %v2681_v0 = vpop.eup %2680 }
0x10c0   :  { %v793_v1 = vmul.f32 %v2681_v0, %v791_v63  ;;  %vm798_vm1 = vweird.f32 %v2681_v0 }
0x10c1   :  { %vm799_vm3 = vmor %vm797_vm2, %vm798_vm1  ;;  %vm1255_vm1 = vcmask 1044484   ;;  %vm1257_vm2 = vcmask 1045509  }
0x10c2   :  { %v794_v2 = vsub.f32 1.0, %v793_v1 }
0x10c4   :  { %v795_v7 = vmul.f32 %v2681_v0, %v794_v2  ;;  %v1093_v2 = vld [vmem:[%s3798_s10 + $0x18] sm:$0xff] }
0x10c5   :  { %1139 = vmatpush.msra.mxu2 %v1093_v2  ;;  %v1163_v2 = vld [vmem:[#allocation10 + $0x18] sm:$0xff] }
0x10c6   :  { %v796_v12 = vadd.f32 %v2681_v0, %v795_v7  ;;  %v1092_v7 = vld [vmem:[%s3798_s10 + $0x10] sm:$0xff]  ;;  %1209 = vmatpush.msra.mxu3 %v1163_v2 }
0x10c7   :  { %1140 = vmatpush.msra.mxu2 %v1092_v7  ;;  %v1162_v7 = vld [vmem:[#allocation10 + $0x10] sm:$0xff] }
0x10c8   :  { %v800_v11 = vsel %vm799_vm3, %v2681_v0, %v796_v12  ;;  %1210 = vmatpush.msra.mxu3 %v1162_v7  ;;  %vm1259_vm3 = vcmask 1046534  }
0x10c9   :  { %v805_v3 = vsel %vm802_vm4, %v804_v5, %v800_v11  ;;  %vm1261_vm4 = vcmask 1047559  }
0x10ca   :  { %v808_v18 = vmul.f32 %v805_v3, %v750_v47 }
0x110f   :  { %v811_v14 = vpop.permute.xlu2 %810 }
0x1110   :  { %v813_v15 = vmul.f32 %v811_v14, %v805_v3 }
0x1112   :  { %815 = vrot.lane.b32.xlu0 %v813_v15, %s3832_s24 }
0x113c   :  { %877 = vadd.xlane.f32.xlu0 %v876_v17 }
0x1184   :  { %v816_v19 = vpop.permute.xlu0 %815 }
0x1185   :  { %v818_v20 = vadd.f32 %v816_v19, %v808_v18 }
0x1187   :  { %2682 = vtanh.f32 %v818_v20 }
0x1188   :  { %2684 = vrcp.f32 %v2970_v22 }
0x118d   :  { %v2683_v21 = vpop.eup %2682 }
0x118e   :  { %821 = vrot.lane.b32.xlu1 %v2683_v21, %s2969_s30  ;;  %v2685_v23 = vpop.eup %2684  ;;  %s3839_s30 = sld [smem:[#allocation35_spill]] }
0x118f   :  { %v883_v24 = vmul.f32 32.0, %v2685_v23  ;;  %vm887_vm6 = vweird.f32 %v2685_v23 }
0x1191   :  { %v884_v25 = vsub.f32 1.0, %v883_v24 }
0x1193   :  { %v885_v27 = vmul.f32 %v2685_v23, %v884_v25 }
0x1194   :  { %v3335_v16 = vld [vmem:[%s3839_s30] ss:$0 sm:$0xff] }
0x1195   :  { %v886_v29 = vadd.f32 %v2685_v23, %v885_v27  ;;  %v1076_v27 = vrot.slane %v3335_v16, 2  ;;  %v1078_v35 = vrot.slane %v3335_v16, 6 }
0x1197   :  { %v3287_v39 = vsel %vm887_vm6, %v2685_v23, %v886_v29  ;;  %v1077_v29 = vrot.slane %v3335_v16, 4  ;;  %vm1278_vm6 = vcmask 64512  }
0x11af   :  { %v878_v4 = vpop.xlane.xlu0 %877 }
0x11b0   :  { %v889_v42 = vmul.f32 %v3287_v39, %v878_v4 }
0x11b2   :  { %v896_v43 = vperm.slane %v889_v42, %v3289_v10  ;;  %v900_v44 = vperm.slane %v889_v42, %v3291_v40  ;;  %v904_v45 = vperm.slane %v889_v42, %v3293_v6  ;;  %v908_v46 = vperm.slane %v889_v42, %v3295_v41 }
0x11b4   :  { %v933_v47 = vsub.f32 %v3220_v59, %v896_v43  ;;  %v934_v48 = vsub.f32 %v3230_v30, %v900_v44  ;;  %v935_v49 = vsub.f32 %v3240_v57, %v904_v45  ;;  %v936_v50 = vsub.f32 %v3250_v28, %v908_v46 }
0x11b6   :  { %v941_v51 = vmul.f32 %v933_v47, %v933_v47  ;;  %v942_v52 = vmul.f32 %v934_v48, %v934_v48  ;;  %v943_v54 = vmul.f32 %v935_v49, %v935_v49  ;;  %v944_v56 = vmul.f32 %v936_v50, %v936_v50 }
0x11b8   :  { %957 = vst [vmem:[#allocation1] ss:$4 sm:$0xff] %v941_v51 }
0x11b9   :  { %959 = vst [vmem:[#allocation1 + $0x1] ss:$4 sm:$0xff] %v942_v52 }
0x11ba   :  { %961 = vst [vmem:[#allocation1 + $0x2] ss:$4 sm:$0xff] %v943_v54 }
0x11bb   :  { %963 = vst [vmem:[#allocation1 + $0x3] ss:$4 sm:$0xff] %v944_v56 }
0x11c2   :  { %v972_v61 = vld.sshfl [vmem:[#allocation1] sm:$0xff pattern:$0x73625140] }
0x11c3   :  { %v976_v59 = vsel %vm227_vm0, %v972_v61, 0.0 }
0x1200   :  { %v822_v58 = vpop.permute.xlu1 %821 }
0x1201   :  { %v824_v60 = vmul.f32 %v822_v58, %v805_v3  ;;  %v3330_v3 = vld [vmem:[%s3838_s0] ss:$0 sm:$0xff]  ;;  %s2982_s0 = smov 24  }
0x1202   :  { %v1059_v18 = vrot.slane %v3330_v3, 2  ;;  %v1060_v19 = vrot.slane %v3330_v3, 4  ;;  %v1061_v20 = vrot.slane %v3330_v3, 6 }
0x1203   :  { %826 = vrot.lane.b32.xlu2 %v824_v60, %s3832_s24 }
0x122c   :  { %977 = vadd.xlane.f32.xlu2 %v976_v59 }
0x125d   :  { %v827_v30 = vpop.permute.xlu2 %826 }
0x125e   :  { %830 = vst.msk [vmem:[#allocation3 + $0xe] sm:$0x3] %vm353_vm5, %v827_v30 }
0x1265   :  { %v838_v57 = vld [vmem:[#allocation3 + $0xe] sm:$0x3] }
0x1266   :  { %v3310_v28 = vadd.f32 %v838_v57, %v3188_v13  ;;  %v1091_v13 = vld [vmem:[%s3798_s10 + $0x8] sm:$0xff] }
0x1267   :  { %1141 = vmatpush.msra.mxu2 %v1091_v13 }
0x1268   :  { %871 = vst [vmem:[#allocation1 + $0x23] ss:$4 sm:$0xff] %v3310_v28 }
0x1269   :  { %1142 = vmatpush.msra.mxu2 %v1090_v9  ;;  %v1160_v9 = vld [vmem:[#allocation10] sm:$0xff] }
0x126f   :  { %v873_v62 = vld.sshfl [vmem:[#allocation1 + $0x20] sm:$0xff pattern:$0x73625140] }
0x1270   :  { %v879_v63 = vsel %vm227_vm0, %v873_v62, 0.0 }
0x1271   :  { %880 = vadd.xlane.f32.xlu1 %v879_v63 }
0x129f   :  { %v978_v0 = vpop.xlane.xlu2 %977 }
0x12a0   :  { %v982_v1 = vmul.f32 %v978_v0, %v3287_v39  ;;  %v1152_v0 = vld [vmem:[#allocation8] sm:$0x3] }
0x12a2   :  { %v984_v12 = vadd.f32 1e-05, %v982_v1  ;;  %v1154_v1 = vld [vmem:[#allocation8 + $0x4] sm:$0x3] }
0x12a4   :  { %2686 = vrsqrt.f32 %v984_v12  ;;  %vm992_vm8 = vweird.f32 %v984_v12 }
0x12aa   :  { %v2687_v8 = vpop.eup %2686 }
0x12ab   :  { %v987_v11 = vmul.f32 %v2687_v8, %v984_v12  ;;  %vm993_vm7 = vweird.f32 %v2687_v8  ;;  %v1161_v12 = vld [vmem:[#allocation10 + $0x8] sm:$0xff] }
0x12ac   :  { %vm994_vm9 = vmor %vm992_vm8, %vm993_vm7  ;;  %1211 = vmatpush.msra.mxu3 %v1161_v12  ;;  %vm1355_vm7 = vcmask 57344   ;;  %vm1470_vm8 = vcmask 122944  }
0x12ad   :  { %v988_v5 = vmul.f32 %v2687_v8, %v987_v11 }
0x12ae   :  { %1212 = vmatpush.msra.mxu3 %v1160_v9 }
0x12af   :  { %v989_v14 = vmul.f32 0.5, %v988_v5 }
0x12b1   :  { %v990_v15 = vsub.f32 1.5, %v989_v14 }
0x12b3   :  { %v991_v17 = vmul.f32 %v2687_v8, %v990_v15 }
0x12b5   :  { %v995_v21 = vsel %vm994_vm9, %v2687_v8, %v991_v17  ;;  %vm1585_vm9 = vcmask 188544  }
0x12b6   :  { %v1011_v22 = vperm.slane %v995_v21, %v3289_v10  ;;  %v1015_v23 = vperm.slane %v995_v21, %v3291_v40  ;;  %v1019_v24 = vperm.slane %v995_v21, %v3293_v6  ;;  %v1023_v25 = vperm.slane %v995_v21, %v3295_v41 }
0x12b8   :  { %v1048_v31 = vmul.f32 %v1011_v22, %v933_v47  ;;  %v1049_v32 = vmul.f32 %v1015_v23, %v934_v48  ;;  %v1050_v33 = vmul.f32 %v1019_v24, %v935_v49  ;;  %v1051_v34 = vmul.f32 %v1023_v25, %v936_v50 }
0x12ba   :  { %v1065_v36 = vmul.f32 %v3330_v3, %v1048_v31  ;;  %v1066_v37 = vmul.f32 %v1059_v18, %v1049_v32  ;;  %v1067_v38 = vmul.f32 %v1060_v19, %v1050_v33  ;;  %v1068_v4 = vmul.f32 %v1061_v20, %v1051_v34 }
0x12bc   :  { %v3355_v42 = vadd.f32 %v3335_v16, %v1065_v36  ;;  %v3359_v43 = vadd.f32 %v1076_v27, %v1066_v37  ;;  %v3363_v44 = vadd.f32 %v1077_v29, %v1067_v38  ;;  %v3367_v45 = vadd.f32 %v1078_v35, %v1068_v4 }
0x12be   :  { %1106 = vst [vmem:[#allocation1] ss:$4 sm:$0xff] %v3355_v42 }
0x12bf   :  { %1108 = vst [vmem:[#allocation1 + $0x1] ss:$4 sm:$0xff] %v3359_v43 }
0x12c0   :  { %1110 = vst [vmem:[#allocation1 + $0x2] ss:$4 sm:$0xff] %v3363_v44 }
0x12c1   :  { %1112 = vst [vmem:[#allocation1 + $0x3] ss:$4 sm:$0xff] %v3367_v45 }
0x12c8   :  { %v1121_v46 = vld.sshfl [vmem:[#allocation1] sm:$0xff pattern:$0x73625140] }
0x12c9   :  { %2539 = vmatmul.msk.f32.vlgmr.msra.gmra.mxu2 %vm227_vm0, %v1121_v46  ;;  %1176 = vst [vmem:[#allocation1] ss:$4 sm:$0xff] %v1152_v0 }
0x12ca   :  { %1180 = vst [vmem:[#allocation1 + $0x2] ss:$4 sm:$0xff] %v1154_v1 }
0x12e4   :  { %v881_v47 = vpop.xlane.xlu1 %880 }
0x12e5   :  { %v890_v48 = vmul.f32 %v3287_v39, %v881_v47 }
0x12e7   :  { %v912_v49 = vperm.slane %v890_v48, %v3289_v10  ;;  %v916_v50 = vperm.slane %v890_v48, %v3291_v40  ;;  %v920_v51 = vperm.slane %v890_v48, %v3293_v6  ;;  %v924_v52 = vperm.slane %v890_v48, %v3295_v41 }
0x12e9   :  { %v937_v54 = vsub.f32 %v3260_v55, %v912_v49  ;;  %v938_v56 = vsub.f32 %v3270_v26, %v916_v50  ;;  %v939_v58 = vsub.f32 %v3280_v53, %v920_v51  ;;  %v940_v60 = vsub.f32 %v3310_v28, %v924_v52  ;;  %v1153_v55 = vld [vmem:[#allocation8 + $0x2] sm:$0x3]  ;;  %v1155_v53 = vld [vmem:[#allocation8 + $0x6] sm:$0x3]  ;;  %v2610_v52 = vld [vmem:[%s3801_s13] ss:$0 sm:$0xff] }
0x12ea   :  { %1178 = vst [vmem:[#allocation1 + $0x1] ss:$4 sm:$0xff] %v1153_v55  ;;  %s2976_s13 = smov 120  }
0x12eb   :  { %v945_v61 = vmul.f32 %v937_v54, %v937_v54  ;;  %v946_v59 = vmul.f32 %v938_v56, %v938_v56  ;;  %v947_v30 = vmul.f32 %v939_v58, %v939_v58  ;;  %v948_v57 = vmul.f32 %v940_v60, %v940_v60  ;;  %1182 = vst [vmem:[#allocation1 + $0x3] ss:$4 sm:$0xff] %v1155_v53 }
0x12ed   :  { %965 = vst [vmem:[#allocation1 + $0x20] ss:$4 sm:$0xff] %v945_v61 }
0x12ee   :  { %967 = vst [vmem:[#allocation1 + $0x21] ss:$4 sm:$0xff] %v946_v59 }
0x12ef   :  { %969 = vst [vmem:[#allocation1 + $0x22] ss:$4 sm:$0xff] %v947_v30 }
0x12f0   :  { %971 = vst [vmem:[#allocation1 + $0x23] ss:$4 sm:$0xff] %v948_v57 }
0x12f2   :  { %v1191_v8 = vld.sshfl [vmem:[#allocation1] sm:$0xff pattern:$0x73625140] }
0x12f3   :  { %2541 = vmatmul.msk.f32.vlgmr.msra.gmra.mxu3 %vm227_vm0, %v1191_v8 }
0x12f7   :  { %v973_v62 = vld.sshfl [vmem:[#allocation1 + $0x20] sm:$0xff pattern:$0x73625140] }
0x12f8   :  { %v979_v63 = vsel %vm227_vm0, %v973_v62, 0.0 }
0x12f9   :  { %980 = vadd.xlane.f32.xlu2 %v979_v63 }
0x134c   :  { %v1144_v46 = vpop.f32.mrf.mxu2 }
0x136c   :  { %v981_v26 = vpop.xlane.xlu2 %980 }
0x136d   :  { %v983_v28 = vmul.f32 %v981_v26, %v3287_v39 }
0x136f   :  { %v985_v13 = vadd.f32 1e-05, %v983_v28 }
0x1371   :  { %2688 = vrsqrt.f32 %v985_v13  ;;  %vm1002_vm11 = vweird.f32 %v985_v13 }
0x1377   :  { %v2689_v11 = vpop.eup %2688 }
0x1378   :  { %v997_v5 = vmul.f32 %v2689_v11, %v985_v13  ;;  %vm1003_vm10 = vweird.f32 %v2689_v11 }
0x1379   :  { %vm1004_vm12 = vmor %vm1002_vm11, %vm1003_vm10  ;;  %vm1700_vm10 = vcmask 254144  }
0x137a   :  { %v998_v14 = vmul.f32 %v2689_v11, %v997_v5 }
0x137c   :  { %v999_v15 = vmul.f32 0.5, %v998_v14 }
0x137e   :  { %v1000_v17 = vsub.f32 1.5, %v999_v15 }
0x1380   :  { %v1001_v21 = vmul.f32 %v2689_v11, %v1000_v17 }
0x1382   :  { %v1005_v22 = vsel %vm1004_vm12, %v2689_v11, %v1001_v21 }
0x1383   :  { %v1027_v23 = vperm.slane %v1005_v22, %v3289_v10  ;;  %v1031_v24 = vperm.slane %v1005_v22, %v3291_v40  ;;  %v1035_v25 = vperm.slane %v1005_v22, %v3293_v6  ;;  %v1039_v31 = vperm.slane %v1005_v22, %v3295_v41 }
0x1385   :  { %v1052_v32 = vmul.f32 %v1027_v23, %v937_v54  ;;  %v1053_v33 = vmul.f32 %v1031_v24, %v938_v56  ;;  %v1054_v34 = vmul.f32 %v1035_v25, %v939_v58  ;;  %v1055_v36 = vmul.f32 %v1039_v31, %v940_v60  ;;  %v1214_v54 = vpop.f32.mrf.mxu3 }
0x1386   :  { %v1215_v61 = vadd.f32 %v2610_v52, %v1214_v54 }
0x1387   :  { %v1069_v37 = vmul.f32 %v3330_v3, %v1052_v32  ;;  %v1070_v38 = vmul.f32 %v1059_v18, %v1053_v33  ;;  %v1071_v4 = vmul.f32 %v1060_v19, %v1054_v34  ;;  %v1072_v10 = vmul.f32 %v1061_v20, %v1055_v36  ;;  %v1156_v3 = vld [vmem:[#allocation8 + $0x8] sm:$0x3]  ;;  %v1157_v19 = vld [vmem:[#allocation8 + $0xa] sm:$0x3] }
0x1388   :  { %v1230_v0 = vrot.slane %v1215_v61, 2  ;;  %v1231_v53 = vrot.slane %v1215_v61, 4  ;;  %v1263_v13 = vperm.slane %v1215_v61, 0  ;;  %v1232_v15 = vrot.slane %v1215_v61, 6 }
0x1389   :  { %v3398_v40 = vadd.f32 %v3335_v16, %v1069_v37  ;;  %v3402_v6 = vadd.f32 %v1076_v27, %v1070_v38  ;;  %v3406_v41 = vadd.f32 %v1077_v29, %v1071_v4  ;;  %v3410_v18 = vadd.f32 %v1078_v35, %v1072_v10  ;;  %v1158_v27 = vld [vmem:[#allocation8 + $0xc] sm:$0x3]  ;;  %v1159_v29 = vld [vmem:[#allocation8 + $0xe] sm:$0x3]  ;;  %v2609_v35 = vld [vmem:[%s3799_s11] ss:$0 sm:$0xff] }
0x138a   :  { %v1145_v47 = vadd.f32 %v2609_v35, %v1144_v46  ;;  %v1264_v9 = vperm.slane %v1230_v0, 0  ;;  %v1730_v17 = vperm.slane %v1215_v61, 1  ;;  %v1731_v21 = vperm.slane %v1230_v0, 1  ;;  %s2975_s11 = smov 112  }
0x138b   :  { %1114 = vst [vmem:[#allocation1 + $0x20] ss:$4 sm:$0xff] %v3398_v40  ;;  %v1265_v23 = vperm.slane %v1231_v53, 0  ;;  %v1732_v34 = vperm.slane %v1231_v53, 1  ;;  %v1266_v38 = vperm.slane %v1232_v15, 0 }
0x138c   :  { %1116 = vst [vmem:[#allocation1 + $0x21] ss:$4 sm:$0xff] %v3402_v6  ;;  %v1150_v48 = vmul.f32 0.35355338, %v1145_v47  ;;  %v1271_v31 = vsel %vm1249_vm13, %v1264_v9, %v1263_v13  ;;  %v1738_v4 = vsel %vm1249_vm13, %v1731_v21, %v1730_v17  ;;  %v2611_v21 = vld [vmem:[%s3840_s28] ss:$0 sm:$0xff] }
0x138d   :  { %1118 = vst [vmem:[#allocation1 + $0x22] ss:$4 sm:$0xff] %v3406_v41 }
0x138e   :  { %1120 = vst [vmem:[#allocation1 + $0x23] ss:$4 sm:$0xff] %v3410_v18  ;;  %v1222_v49 = vrot.slane %v1150_v48, 2  ;;  %v1223_v50 = vrot.slane %v1150_v48, 4  ;;  %v1241_v56 = vperm.slane %v1150_v48, 0  ;;  %v1224_v60 = vrot.slane %v1150_v48, 6 }
0x138f   :  { %v1715_v1 = vperm.slane %v1150_v48, 1  ;;  %v1739_v48 = vsel %vm1251_vm14, %v1732_v34, %v1738_v4 }
0x1390   :  { %v1242_v51 = vperm.slane %v1222_v49, 0  ;;  %v1243_v58 = vperm.slane %v1223_v50, 0  ;;  %v1244_v63 = vperm.slane %v1224_v60, 0  ;;  %v1716_v26 = vperm.slane %v1222_v49, 1 }
0x1391   :  { %v1717_v22 = vperm.slane %v1223_v50, 1  ;;  %v1718_v46 = vperm.slane %v1224_v60, 1 }
0x1392   :  { %v1250_v59 = vsel %vm1249_vm13, %v1242_v51, %v1241_v56  ;;  %v1723_v33 = vsel %vm1249_vm13, %v1716_v26, %v1715_v1 }
0x1393   :  { %v1252_v62 = vsel %vm1251_vm14, %v1243_v58, %v1250_v59 }
0x1394   :  { %v1254_v2 = vsel %vm1253_vm15, %v1244_v63, %v1252_v62 }
0x1395   :  { %v1122_v20 = vld.sshfl [vmem:[#allocation1 + $0x20] sm:$0xff pattern:$0x73625140] }
0x1396   :  { %2540 = vmatmul.msk.f32.gmra.mxu2 %vm227_vm0, %v1122_v20  ;;  %1184 = vst [vmem:[#allocation1 + $0x20] ss:$4 sm:$0xff] %v1156_v3  ;;  %v1733_v3 = vperm.slane %v1232_v15, 1  ;;  %v1724_v20 = vsel %vm1251_vm14, %v1717_v22, %v1723_v33 }
0x1397   :  { %1186 = vst [vmem:[#allocation1 + $0x21] ss:$4 sm:$0xff] %v1157_v19  ;;  %v1272_v19 = vsel %vm1251_vm14, %v1265_v23, %v1271_v31  ;;  %v1725_v56 = vsel %vm1253_vm15, %v1718_v46, %v1724_v20 }
0x1398   :  { %1188 = vst [vmem:[#allocation1 + $0x22] ss:$4 sm:$0xff] %v1158_v27 }
0x1399   :  { %1190 = vst [vmem:[#allocation1 + $0x23] ss:$4 sm:$0xff] %v1159_v29 }
0x13a0   :  { %v1192_v16 = vld.sshfl [vmem:[#allocation1 + $0x20] sm:$0xff pattern:$0x73625140] }
0x13a1   :  { %2542 = vmatmul.msk.f32.gmra.mxu3 %vm227_vm0, %v1192_v16 }
0x1419   :  { %v1147_v30 = vpop.f32.mrf.mxu2 }
0x141a   :  { %v1148_v57 = vadd.f32 %v2609_v35, %v1147_v30  ;;  %v1740_v30 = vsel %vm1253_vm15, %v1733_v3, %v1739_v48 }
0x141c   :  { %v3426_v55 = vmul.f32 0.35355338, %v1148_v57 }
0x141e   :  { %v1225_v28 = vrot.slane %v3426_v55, 2  ;;  %v1245_v7 = vperm.slane %v3426_v55, 0  ;;  %v1226_v12 = vrot.slane %v3426_v55, 4  ;;  %v1227_v8 = vrot.slane %v3426_v55, 6 }
0x141f   :  { %v1719_v49 = vperm.slane %v3426_v55, 1 }
0x1420   :  { %v1246_v11 = vperm.slane %v1225_v28, 0  ;;  %v1247_v5 = vperm.slane %v1226_v12, 0  ;;  %v1256_v14 = vsel %vm1255_vm1, %v1245_v7, %v1254_v2  ;;  %v1248_v24 = vperm.slane %v1227_v8, 0 }
0x1421   :  { %v1720_v62 = vperm.slane %v1225_v28, 1  ;;  %v1726_v0 = vsel %vm1255_vm1, %v1719_v49, %v1725_v56  ;;  %v1721_v2 = vperm.slane %v1226_v12, 1  ;;  %v1722_v9 = vperm.slane %v1227_v8, 1 }
0x1422   :  { %v1258_v25 = vsel %vm1257_vm2, %v1246_v11, %v1256_v14 }
0x1423   :  { %v1260_v32 = vsel %vm1259_vm3, %v1247_v5, %v1258_v25  ;;  %v1727_v53 = vsel %vm1257_vm2, %v1720_v62, %v1726_v0 }
0x1424   :  { %v1217_v36 = vpop.f32.mrf.mxu3  ;;  %v1262_v37 = vsel %vm1261_vm4, %v1248_v24, %v1260_v32  ;;  %v1728_v13 = vsel %vm1259_vm3, %v1721_v2, %v1727_v53 }
0x1425   :  { %v1218_v10 = vadd.f32 %v2610_v52, %v1217_v36  ;;  %1480 = vrot.lane.b32.xlu1 %v1262_v37, %s2975_s11  ;;  %v1273_v52 = vsel %vm1253_vm15, %v1266_v38, %v1272_v19  ;;  %v1729_v12 = vsel %vm1261_vm4, %v1722_v9, %v1728_v13 }
0x1427   :  { %v1233_v27 = vrot.slane %v1218_v10, 2  ;;  %v1234_v29 = vrot.slane %v1218_v10, 4  ;;  %v1235_v16 = vrot.slane %v1218_v10, 6  ;;  %v1267_v35 = vperm.slane %v1218_v10, 0 }
0x1428   :  { %v1734_v47 = vperm.slane %v1218_v10, 1 }
0x1429   :  { %v1268_v50 = vperm.slane %v1233_v27, 0  ;;  %v1269_v51 = vperm.slane %v1234_v29, 0  ;;  %v1274_v54 = vsel %vm1255_vm1, %v1267_v35, %v1273_v52  ;;  %v1270_v58 = vperm.slane %v1235_v16, 0 }
0x142a   :  { %v1735_v61 = vperm.slane %v1233_v27, 1  ;;  %v1741_v57 = vsel %vm1255_vm1, %v1734_v47, %v1740_v30  ;;  %v1736_v1 = vperm.slane %v1234_v29, 1  ;;  %v1737_v7 = vperm.slane %v1235_v16, 1  ;;  %v2612_v16 = vld [vmem:[%s3840_s28 + $0x1] ss:$0 sm:$0xff] }
0x142b   :  { %v1275_v59 = vsel %vm1257_vm2, %v1268_v50, %v1274_v54 }
0x142c   :  { %v1276_v60 = vsel %vm1259_vm3, %v1269_v51, %v1275_v59  ;;  %v1742_v26 = vsel %vm1257_vm2, %v1735_v61, %v1741_v57  ;;  %vm2371_vm2 = vcmask 523264  }
0x142d   :  { %v3455_v63 = vsel %vm1261_vm4, %v1270_v58, %v1276_v60  ;;  %v1743_v28 = vsel %vm1259_vm3, %v1736_v1, %v1742_v26 }
0x142e   :  { %1367 = vrot.lane.b32.xlu2 %v3455_v63, %s2976_s13  ;;  %1482 = vrot.lane.b32.xlu0 %v3455_v63, %s2975_s11  ;;  %v3472_v11 = vsel %vm1261_vm4, %v1737_v7, %v1743_v28 }
0x142f   :  { %2543 = vmatpush.xpose.msk.msrb.mxu0 %vm1278_vm6, %v3455_v63  ;;  %1597 = vrot.lane.b32.xlu1 %v3455_v63, %s2977_s12  ;;  %v2601_v0 = vpack.i.bf16 %v3472_v11, %v3455_v63 }
0x1432   :  { %2544 = vmatmul.msk.f32.vlgmr.msrb.gmra.mxu0 %vm1278_vm6, %v1262_v37 }
0x1436   :  { %1946 = vrot.lane.b32.xlu2 %v3472_v11, %s2975_s11  ;;  %1365 = vrot.lane.b32.xlu0 %v1262_v37, %s2976_s13 }
0x1437   :  { %1944 = vrot.lane.b32.xlu1 %v1729_v12, %s2975_s11  ;;  %s2487_s11 = sshll.u32 %s3841_s29, 4  ;;  %s2488_s11 = int_to_ptr.hbm [resolvable:$true] %s2487_s11 }
0x143e   :  { %1830 = vrot.lane.b32.xlu2 %v1729_v12, %s2976_s13  ;;  %1595 = vrot.lane.b32.xlu0 %v1262_v37, %s2977_s12 }
0x143f   :  { %2060 = vrot.lane.b32.xlu1 %v3472_v11, %s2977_s12 }
0x1446   :  { %1832 = vrot.lane.b32.xlu0 %v3472_v11, %s2976_s13 }
0x144e   :  { %2058 = vrot.lane.b32.xlu0 %v1729_v12, %s2977_s12 }
0x1488   :  { %v1368_v55 = vpop.permute.xlu2 %1367 }
0x1489   :  { %2546 = vmatpush.xpose.msk.msra.mxu0 %vm1278_vm6, %v1368_v55 }
0x1490   :  { %v1947_v15 = vpop.permute.xlu2 %1946 }
0x1497   :  { %v1481_v8 = vpop.permute.xlu1 %1480 }
0x1498   :  { %v1831_v34 = vpop.permute.xlu2 %1830 }
0x14a0   :  { %v1483_v5 = vpop.permute.xlu0 %1482 }
0x14a1   :  { %2549 = vmatpush.xpose.msk.msrb.mxu2 %vm1278_vm6, %v1483_v5  ;;  %v1598_v14 = vpop.permute.xlu1 %1597 }
0x14a2   :  { %2552 = vmatpush.xpose.msk.msrb.mxu0 %vm1278_vm6, %v1598_v14 }
0x14a4   :  { %2550 = vmatmul.msk.f32.vlgmr.msrb.gmra.mxu2 %vm1278_vm6, %v1481_v8 }
0x14a5   :  { %2555 = vmatpush.xpose.msk.msra.mxu2 %vm1278_vm6, %v3472_v11 }
0x14a8   :  { %v1366_v17 = vpop.permute.xlu0 %1365 }
0x14a9   :  { %2561 = vmatpush.xpose.msk.msrb.mxu2 %vm1278_vm6, %v1947_v15  ;;  %2547 = vmatmul.msk.f32.vlgmr.msra.gmra.mxu0 %vm1278_vm6, %v1366_v17  ;;  %v1945_v22 = vpop.permute.xlu1 %1944 }
0x14ac   :  { %2556 = vmatmul.msk.f32.vlgmr.msra.gmra.mxu2 %vm1278_vm6, %v1729_v12 }
0x14af   :  { %v1300_v23 = vpop.f32.mrf.mxu0 }
0x14b0   :  { %v1301_v24 = vadd.f32 %v2611_v21, %v1300_v23  ;;  %v1596_v25 = vpop.permute.xlu0 %1595 }
0x14b1   :  { %2553 = vmatmul.msk.f32.vlgmr.msrb.gmra.mxu0 %vm1278_vm6, %v1596_v25  ;;  %v2061_v33 = vpop.permute.xlu1 %2060 }
0x14b2   :  { %v1303_v31 = vsel %vm1278_vm6, %v1301_v24, -inf }
0x14b3   :  { %1304 = vmax.xlane.f32.xlu2 %v1303_v31 }
0x14b4   :  { %2562 = vmatmul.msk.f32.vlgmr.msrb.gmra.mxu2 %vm1278_vm6, %v1945_v22 }
0x14b8   :  { %v1833_v32 = vpop.permute.xlu0 %1832 }
0x14b9   :  { %2558 = vmatpush.xpose.msk.msra.mxu0 %vm1278_vm6, %v1833_v32 }
0x14bc   :  { %2559 = vmatmul.msk.f32.vlgmr.msra.gmra.mxu0 %vm1278_vm6, %v1831_v34 }
0x14bd   :  { %2564 = vmatpush.xpose.msk.msrb.mxu0 %vm1278_vm6, %v2061_v33 }
0x14c0   :  { %v2059_v36 = vpop.permute.xlu0 %2058 }
0x14c4   :  { %2565 = vmatmul.msk.f32.vlgmr.msrb.gmra.mxu0 %vm1278_vm6, %v2059_v36 }
0x1526   :  { %v1305_v37 = vpop.xlane.xlu2 %1304  ;;  %v1390_v38 = vpop.f32.mrf.mxu0 }
0x1527   :  { %v1306_v4 = vsub.f32 %v1301_v24, %v1305_v37  ;;  %v1391_v10 = vadd.f32 %v2611_v21, %v1390_v38  ;;  %v1505_v3 = vpop.f32.mrf.mxu2 }
0x1528   :  { %v1506_v19 = vadd.f32 %v2611_v21, %v1505_v3 }
0x1529   :  { %v1307_v20 = vmul.f32 1.442695, %v1306_v4  ;;  %v1393_v27 = vsel %vm1278_vm6, %v1391_v10, -inf }
0x152a   :  { %1394 = vmax.xlane.f32.xlu1 %v1393_v27  ;;  %v1508_v29 = vsel %vm1278_vm6, %v1506_v19, -inf }
0x152b   :  { %2690 = vpow2.f32 %v1307_v20  ;;  %1509 = vmax.xlane.f32.xlu0 %v1508_v29 }
0x152e   :  { %v1620_v35 = vpop.f32.mrf.mxu0 }
0x152f   :  { %v1621_v46 = vadd.f32 %v2611_v21, %v1620_v35  ;;  %v1766_v47 = vpop.f32.mrf.mxu2 }
0x1530   :  { %v1767_v48 = vadd.f32 %v2612_v16, %v1766_v47 }
0x1531   :  { %v3504_v49 = vpop.eup %2690  ;;  %v1623_v50 = vsel %vm1278_vm6, %v1621_v46, -inf }
0x1532   :  { %1624 = vmax.xlane.f32.xlu2 %v1623_v50  ;;  %v1769_v51 = vsel %vm1278_vm6, %v1767_v48, -inf  ;;  %v1309_v52 = vsel %vm1278_vm6, %v3504_v49, 0.0 }
0x1533   :  { %1770 = vmax.xlane.f32.xlu1 %v1769_v51  ;;  %1310 = vadd.xlane.f32.xlu0 %v1309_v52 }
0x1537   :  { %v1969_v54 = vpop.f32.mrf.mxu2 }
0x1538   :  { %v1970_v56 = vadd.f32 %v2612_v16, %v1969_v54 }
0x1539   :  { %v1855_v58 = vpop.f32.mrf.mxu0 }
0x153a   :  { %v1856_v61 = vadd.f32 %v2612_v16, %v1855_v58  ;;  %v1972_v59 = vsel %vm1278_vm6, %v1970_v56, -inf }
0x153b   :  { %1973 = vmax.xlane.f32.xlu2 %v1972_v59 }
0x153c   :  { %v1858_v30 = vsel %vm1278_vm6, %v1856_v61, -inf }
0x153d   :  { %1859 = vmax.xlane.f32.xlu0 %v1858_v30 }
0x1541   :  { %v2083_v60 = vpop.f32.mrf.mxu0 }
0x1542   :  { %v2084_v57 = vadd.f32 %v2612_v16, %v2083_v60 }
0x1544   :  { %v2086_v62 = vsel %vm1278_vm6, %v2084_v57, -inf }
0x1545   :  { %2087 = vmax.xlane.f32.xlu1 %v2086_v62 }
0x1551   :  { %1404 = vrot.lane.b32.xlu0 %v3455_v63, %s2978_s26 }
0x1553   :  { %1519 = vrot.lane.b32.xlu2 %v3455_v63, %s2979_s21 }
0x1559   :  { %1634 = vrot.lane.b32.xlu0 %v3455_v63, %s2980_s5 }
0x155e   :  { %2602 = vrot.lane.b32.xlu1 %v2601_v0, %s2981_s19 }
0x159d   :  { %v1395_v1 = vpop.xlane.xlu1 %1394 }
0x159e   :  { %v1396_v26 = vsub.f32 %v1391_v10, %v1395_v1  ;;  %v1510_v2 = vpop.xlane.xlu0 %1509 }
0x159f   :  { %v1511_v53 = vsub.f32 %v1506_v19, %v1510_v2 }
0x15a0   :  { %v1397_v28 = vmul.f32 1.442695, %v1396_v26 }
0x15a1   :  { %v1512_v7 = vmul.f32 1.442695, %v1511_v53 }
0x15a2   :  { %2692 = vpow2.f32 %v1397_v28 }
0x15a3   :  { %2694 = vpow2.f32 %v1512_v7 }
0x15a5   :  { %v1625_v13 = vpop.xlane.xlu2 %1624 }
0x15a6   :  { %v1626_v9 = vsub.f32 %v1621_v46, %v1625_v13  ;;  %v1771_v12 = vpop.xlane.xlu1 %1770  ;;  %v1311_v14 = vpop.xlane.xlu0 %1310 }
0x15a7   :  { %v1772_v5 = vsub.f32 %v1767_v48, %v1771_v12 }
0x15a8   :  { %v3521_v55 = vpop.eup %2692  ;;  %v1627_v8 = vmul.f32 1.442695, %v1626_v9 }
0x15a9   :  { %v2695_v15 = vpop.eup %2694  ;;  %v1399_v63 = vsel %vm1278_vm6, %v3521_v55, 0.0  ;;  %v1773_v21 = vmul.f32 1.442695, %v1772_v5 }
0x15aa   :  { %2696 = vpow2.f32 %v1627_v8  ;;  %1400 = vadd.xlane.f32.xlu2 %v1399_v63  ;;  %v1514_v17 = vsel %vm1278_vm6, %v2695_v15, 0.0 }
0x15ab   :  { %1515 = vadd.xlane.f32.xlu0 %v1514_v17  ;;  %2698 = vpow2.f32 %v1773_v21 }
0x15ae   :  { %v1974_v22 = vpop.xlane.xlu2 %1973 }
0x15af   :  { %v1975_v23 = vsub.f32 %v1970_v56, %v1974_v22 }
0x15b0   :  { %v2697_v24 = vpop.eup %2696  ;;  %v1860_v25 = vpop.xlane.xlu0 %1859 }
0x15b1   :  { %v1976_v31 = vmul.f32 1.442695, %v1975_v23  ;;  %v1861_v32 = vsub.f32 %v1856_v61, %v1860_v25  ;;  %v1629_v33 = vsel %vm1278_vm6, %v2697_v24, 0.0  ;;  %v2699_v36 = vpop.eup %2698 }
0x15b2   :  { %1630 = vadd.xlane.f32.xlu2 %v1629_v33  ;;  %v1775_v3 = vsel %vm1278_vm6, %v2699_v36, 0.0 }
0x15b3   :  { %2700 = vpow2.f32 %v1976_v31  ;;  %v1862_v34 = vmul.f32 1.442695, %v1861_v32 }
0x15b5   :  { %2702 = vpow2.f32 %v1862_v34 }
0x15b6   :  { %v1520_v37 = vpop.permute.xlu2 %1519 }
0x15b7   :  { %1540 = vmatpush.msrb.mxu3 %v1520_v37 }
0x15b8   :  { %v2088_v38 = vpop.xlane.xlu1 %2087 }
0x15b9   :  { %v3527_v4 = vpop.eup %2700  ;;  %v2089_v10 = vsub.f32 %v2084_v57, %v2088_v38 }
0x15ba   :  { %1776 = vadd.xlane.f32.xlu2 %v1775_v3  ;;  %v1978_v19 = vsel %vm1278_vm6, %v3527_v4, 0.0 }
0x15bb   :  { %v2703_v20 = vpop.eup %2702  ;;  %v2090_v27 = vmul.f32 1.442695, %v2089_v10  ;;  %1979 = vadd.xlane.f32.xlu0 %v1978_v19 }
0x15bc   :  { %v1864_v29 = vsel %vm1278_vm6, %v2703_v20, 0.0 }
0x15bd   :  { %2704 = vpow2.f32 %v2090_v27  ;;  %1865 = vadd.xlane.f32.xlu1 %v1864_v29 }
0x15be   :  { %2706 = vrcp.f32 %v1311_v14 }
0x15c3   :  { %v2705_v16 = vpop.eup %2704  ;;  %v1405_v46 = vpop.permute.xlu0 %1404 }
0x15c4   :  { %v2092_v35 = vsel %vm1278_vm6, %v2705_v16, 0.0  ;;  %v2707_v47 = vpop.eup %2706 }
0x15c5   :  { %2093 = vadd.xlane.f32.xlu2 %v2092_v35  ;;  %v1313_v52 = vmul.f32 %v2707_v47, %v3504_v49 }
0x15cb   :  { %v1635_v54 = vpop.permute.xlu0 %1634 }
0x15cf   :  { %1983 = vrot.lane.b32.xlu0 %v3472_v11, %s2979_s21 }
0x15d0   :  { %v2603_v48 = vpop.permute.xlu1 %2602 }
0x15d1   :  { %v2605_v50 = vunpack.i.h.bf16 %v2603_v48  ;;  %v2604_v51 = vunpack.i.l.bf16 %v2603_v48 }
0x15d3   :  { %1335 = vmatpush.msra.mxu1 %v2604_v51  ;;  %1801 = vmatpush.msra.mxu3 %v2605_v50 }
0x15d4   :  { %2545 = vmatmul.msk.f32.vlgmr.msra.gmra.mxu1 %vm1278_vm6, %v1313_v52 }
0x15d5   :  { %1425 = vmatpush.msrb.mxu1 %v1405_v46 }
0x15d6   :  { %1869 = vrot.lane.b32.xlu1 %v3472_v11, %s2978_s26 }
0x15d7   :  { %1655 = vmatpush.msra.mxu1 %v1635_v54 }
0x15dd   :  { %2097 = vrot.lane.b32.xlu2 %v3472_v11, %s2980_s5 }
0x161d   :  { %v1401_v56 = vpop.xlane.xlu2 %1400 }
0x161e   :  { %2708 = vrcp.f32 %v1401_v56  ;;  %v1516_v58 = vpop.xlane.xlu0 %1515 }
0x161f   :  { %2710 = vrcp.f32 %v1516_v58 }
0x1624   :  { %v2709_v61 = vpop.eup %2708 }
0x1625   :  { %v2711_v59 = vpop.eup %2710  ;;  %v1403_v49 = vmul.f32 %v2709_v61, %v3521_v55  ;;  %v1631_v30 = vpop.xlane.xlu2 %1630 }
0x1626   :  { %v1518_v60 = vmul.f32 %v2711_v59, %v2695_v15  ;;  %2712 = vrcp.f32 %v1631_v30 }
0x1627   :  { %2548 = vmatmul.msk.f32.vlgmr.msrb.gmra.mxu1 %vm1278_vm6, %v1403_v49  ;;  %v1479_v57 = vadd.f32 %v1403_v49, %v1313_v52 }
0x1628   :  { %2551 = vmatmul.msk.f32.vlgmr.msrb.gmra.mxu3 %vm1278_vm6, %v1518_v60 }
0x1629   :  { %v1594_v0 = vadd.f32 %v1518_v60, %v1479_v57 }
0x162c   :  { %v2713_v62 = vpop.eup %2712 }
0x162d   :  { %v1633_v1 = vmul.f32 %v2713_v62, %v2697_v24  ;;  %v1777_v11 = vpop.xlane.xlu2 %1776 }
0x162e   :  { %2714 = vrcp.f32 %v1777_v11  ;;  %v1980_v28 = vpop.xlane.xlu0 %1979 }
0x162f   :  { %v1709_v26 = vadd.f32 %v1633_v1, %v1594_v0  ;;  %2554 = vmatmul.msk.f32.vlgmr.msra.gmra.mxu1 %vm1278_vm6, %v1633_v1 }
0x1630   :  { %v1866_v2 = vpop.xlane.xlu1 %1865 }
0x1631   :  { %v1710_v53 = vmul.f32 0.25, %v1709_v26  ;;  %2716 = vrcp.f32 %v1866_v2 }
0x1632   :  { %2718 = vrcp.f32 %v1980_v28 }
0x1633   :  { %1711 = vst.msk [vmem:[#allocation18] sm:$0xff] %vm1278_vm6, %v1710_v53 }
0x1634   :  { %v2715_v7 = vpop.eup %2714 }
0x1635   :  { %v1779_v13 = vmul.f32 %v2715_v7, %v2699_v36 }
0x1637   :  { %v2717_v9 = vpop.eup %2716  ;;  %2557 = vmatmul.msk.f32.vlgmr.msra.gmra.mxu3 %vm1278_vm6, %v1779_v13 }
0x1638   :  { %v1868_v12 = vmul.f32 %v2717_v9, %v2703_v20  ;;  %v2094_v55 = vpop.xlane.xlu2 %2093  ;;  %v2719_v8 = vpop.eup %2718 }
0x1639   :  { %2720 = vrcp.f32 %v2094_v55  ;;  %v1982_v14 = vmul.f32 %v2719_v8, %v3527_v4 }
0x163a   :  { %v1943_v5 = vadd.f32 %v1868_v12, %v1779_v13 }
0x163c   :  { %v2057_v63 = vadd.f32 %v1982_v14, %v1943_v5 }
0x163f   :  { %v2721_v15 = vpop.eup %2720 }
0x1640   :  { %v2096_v17 = vmul.f32 %v2721_v15, %v2705_v16  ;;  %v2098_v25 = vpop.permute.xlu2 %2097 }
0x1641   :  { %v1984_v21 = vpop.permute.xlu0 %1983 }
0x1642   :  { %v2171_v22 = vadd.f32 %v2096_v17, %v2057_v63  ;;  %2004 = vmatpush.msrb.mxu3 %v1984_v21 }
0x1643   :  { %2563 = vmatmul.msk.f32.vlgmr.msrb.gmra.mxu3 %vm1278_vm6, %v1982_v14 }
0x1644   :  { %v2172_v23 = vmul.f32 0.25, %v2171_v22 }
0x1646   :  { %2174 = vst.msk [vmem:[#allocation18 + $0x8] sm:$0xff] %vm1278_vm6, %v2172_v23 }
0x1648   :  { %v1870_v24 = vpop.permute.xlu1 %1869 }
0x1649   :  { %1890 = vmatpush.msrb.mxu1 %v1870_v24 }
0x164a   :  { %2560 = vmatmul.msk.f32.vlgmr.msrb.gmra.mxu1 %vm1278_vm6, %v1868_v12 }
0x164b   :  { %2118 = vmatpush.msra.mxu1 %v2098_v25 }
0x1651   :  { %v1337_v31 = vpop.f32.mrf.mxu1 }
0x1652   :  { %2566 = vmatmul.msk.f32.vlgmr.msra.gmra.mxu1 %vm1278_vm6, %v2096_v17  ;;  %v1346_v32 = vrot.slane %v1337_v31, 6  ;;  %1356 = vst.msk [vmem:[#allocation4] sm:$0x1] %vm1355_vm7, %v1337_v31  ;;  %v1342_v33 = vrot.slane %v1337_v31, 2  ;;  %v1341_v34 = vrot.slane %v1337_v31, 1  ;;  %v1345_v36 = vrot.slane %v1337_v31, 5 }
0x1653   :  { %v1343_v37 = vrot.slane %v1337_v31, 3  ;;  %v1344_v38 = vrot.slane %v1337_v31, 4  ;;  %v1347_v4 = vrot.slane %v1337_v31, 7 }
0x1654   :  { %1362 = vst.msk [vmem:[#allocation4 + $0xc] sm:$0x1] %vm1355_vm7, %v1346_v32 }
0x1655   :  { %1358 = vst.msk [vmem:[#allocation4 + $0x4] sm:$0x1] %vm1355_vm7, %v1342_v33 }
0x1656   :  { %1357 = vst.msk [vmem:[#allocation4 + $0x2] sm:$0x1] %vm1355_vm7, %v1341_v34 }
0x1657   :  { %1361 = vst.msk [vmem:[#allocation4 + $0xa] sm:$0x1] %vm1355_vm7, %v1345_v36 }
0x1658   :  { %1359 = vst.msk [vmem:[#allocation4 + $0x6] sm:$0x1] %vm1355_vm7, %v1343_v37 }
0x1659   :  { %1360 = vst.msk [vmem:[#allocation4 + $0x8] sm:$0x1] %vm1355_vm7, %v1344_v38 }
0x165a   :  { %1363 = vst.msk [vmem:[#allocation4 + $0xe] sm:$0x1] %vm1355_vm7, %v1347_v4 }
0x16a4   :  { %v1427_v10 = vpop.f32.mrf.mxu1 }
0x16a5   :  { %v1438_v3 = vperm.slane %v1427_v10, 0  ;;  %v1436_v19 = vrot.slane %v1427_v10, 6  ;;  %v1432_v20 = vrot.slane %v1427_v10, 2  ;;  %v1431_v16 = vrot.slane %v1427_v10, 1 }
0x16a6   :  { %v1435_v35 = vrot.slane %v1427_v10, 5  ;;  %v1433_v52 = vrot.slane %v1427_v10, 3  ;;  %v1434_v49 = vrot.slane %v1427_v10, 4  ;;  %v1437_v13 = vrot.slane %v1427_v10, 7 }
0x16a7   :  { %1446 = vrot.lane.b32.xlu1 %v1438_v3, %s2963_s6  ;;  %v1444_v27 = vperm.slane %v1436_v19, 0  ;;  %v1440_v29 = vperm.slane %v1432_v20, 0  ;;  %v1439_v47 = vperm.slane %v1431_v16, 0 }
0x16a8   :  { %v1443_v50 = vperm.slane %v1435_v35, 0  ;;  %v1441_v58 = vperm.slane %v1433_v52, 0  ;;  %v1442_v11 = vperm.slane %v1434_v49, 0  ;;  %v1445_v55 = vperm.slane %v1437_v13, 0 }
0x16a9   :  { %1458 = vrot.lane.b32.xlu2 %v1444_v27, %s2963_s6  ;;  %1450 = vrot.lane.b32.xlu0 %v1440_v29, %s2963_s6 }
0x16ab   :  { %v3570_v54 = vpop.f32.mrf.mxu3 }
0x16ac   :  { %v3564_v46 = vpop.f32.mrf.mxu1  ;;  %v1553_v28 = vperm.slane %v3570_v54, 0  ;;  %v1548_v12 = vrot.slane %v3570_v54, 3  ;;  %v1549_v63 = vrot.slane %v3570_v54, 4  ;;  %v1547_v24 = vrot.slane %v3570_v54, 2 }
0x16ad   :  { %v1661_v48 = vrot.slane %v3564_v46, 1  ;;  %v1665_v56 = vrot.slane %v3564_v46, 5  ;;  %v1668_v61 = vperm.slane %v3564_v46, 0  ;;  %v1663_v60 = vrot.slane %v3564_v46, 3 }
0x16ae   :  { %v1664_v9 = vrot.slane %v3564_v46, 4  ;;  %v1556_v5 = vperm.slane %v1548_v12, 0  ;;  %v1662_v14 = vrot.slane %v3564_v46, 2  ;;  %v1667_v15 = vrot.slane %v3564_v46, 7 }
0x16af   :  { %1448 = vrot.lane.b32.xlu1 %v1439_v47, %s2963_s6  ;;  %v1669_v51 = vperm.slane %v1661_v48, 0  ;;  %v1673_v59 = vperm.slane %v1665_v56, 0  ;;  %v1671_v53 = vperm.slane %v1663_v60, 0  ;;  %v1557_v22 = vperm.slane %v1549_v63, 0 }
0x16b0   :  { %v1672_v8 = vperm.slane %v1664_v9, 0  ;;  %v1670_v17 = vperm.slane %v1662_v14, 0  ;;  %v1675_v21 = vperm.slane %v1667_v15, 0  ;;  %v1666_v23 = vrot.slane %v3564_v46, 6 }
0x16b1   :  { %1456 = vrot.lane.b32.xlu0 %v1443_v50, %s2963_s6  ;;  %1678 = vrot.lane.b32.xlu2 %v1669_v51, %s2982_s0  ;;  %v1552_v25 = vrot.slane %v3570_v54, 7  ;;  %v1555_v32 = vperm.slane %v1547_v24, 0  ;;  %v1546_v36 = vrot.slane %v3570_v54, 1  ;;  %v1551_v37 = vrot.slane %v3570_v54, 6 }
0x16b2   :  { %v1674_v31 = vperm.slane %v1666_v23, 0  ;;  %v1550_v19 = vrot.slane %v3570_v54, 5 }
0x16b3   :  { %v1560_v33 = vperm.slane %v1552_v25, 0  ;;  %v1554_v4 = vperm.slane %v1546_v36, 0  ;;  %v1559_v10 = vperm.slane %v1551_v37, 0 }
0x16b4   :  { %v1558_v27 = vperm.slane %v1550_v19, 0 }
0x16b7   :  { %1452 = vrot.lane.b32.xlu1 %v1441_v58, %s2963_s6 }
0x16b9   :  { %1676 = vrot.lane.b32.xlu0 %v1668_v61, %s2982_s0  ;;  %1686 = vrot.lane.b32.xlu2 %v1673_v59, %s2982_s0 }
0x16ba   :  { %v1803_v30 = vpop.f32.mrf.mxu3 }
0x16bb   :  { %1821 = vst.msk [vmem:[#allocation4 + $0x1] sm:$0x1] %vm1355_vm7, %v1803_v30  ;;  %v1807_v57 = vrot.slane %v1803_v30, 1  ;;  %v1811_v62 = vrot.slane %v1803_v30, 5  ;;  %v1808_v0 = vrot.slane %v1803_v30, 2  ;;  %v1809_v1 = vrot.slane %v1803_v30, 3 }
0x16bc   :  { %v1812_v26 = vrot.slane %v1803_v30, 6  ;;  %v1810_v2 = vrot.slane %v1803_v30, 4  ;;  %v1813_v7 = vrot.slane %v1803_v30, 7 }
0x16bd   :  { %1822 = vst.msk [vmem:[#allocation4 + $0x3] sm:$0x1] %vm1355_vm7, %v1807_v57 }
0x16be   :  { %1826 = vst.msk [vmem:[#allocation4 + $0xb] sm:$0x1] %vm1355_vm7, %v1811_v62 }
0x16bf   :  { %1454 = vrot.lane.b32.xlu1 %v1442_v11, %s2963_s6  ;;  %1823 = vst.msk [vmem:[#allocation4 + $0x5] sm:$0x1] %vm1355_vm7, %v1808_v0 }
0x16c0   :  { %1824 = vst.msk [vmem:[#allocation4 + $0x7] sm:$0x1] %vm1355_vm7, %v1809_v1 }
0x16c1   :  { %1682 = vrot.lane.b32.xlu0 %v1671_v53, %s2982_s0  ;;  %1561 = vrot.lane.b32.xlu2 %v1553_v28, %s2983_s4  ;;  %1827 = vst.msk [vmem:[#allocation4 + $0xd] sm:$0x1] %vm1355_vm7, %v1812_v26 }
0x16c2   :  { %1825 = vst.msk [vmem:[#allocation4 + $0x9] sm:$0x1] %vm1355_vm7, %v1810_v2 }
0x16c3   :  { %1828 = vst.msk [vmem:[#allocation4 + $0xf] sm:$0x1] %vm1355_vm7, %v1813_v7 }
0x16c6   :  { %v2006_v1 = vpop.f32.mrf.mxu3 }
0x16c7   :  { %1460 = vrot.lane.b32.xlu1 %v1445_v55, %s2963_s6  ;;  %v1892_v34 = vpop.f32.mrf.mxu1  ;;  %v2011_v26 = vrot.slane %v2006_v1, 2  ;;  %v2017_v53 = vperm.slane %v2006_v1, 0  ;;  %v2012_v13 = vrot.slane %v2006_v1, 3  ;;  %v2015_v12 = vrot.slane %v2006_v1, 6 }
0x16c8   :  { %v1896_v38 = vrot.slane %v1892_v34, 1  ;;  %v1900_v20 = vrot.slane %v1892_v34, 5  ;;  %v1903_v29 = vperm.slane %v1892_v34, 0  ;;  %v1897_v35 = vrot.slane %v1892_v34, 2 }
0x16c9   :  { %1684 = vrot.lane.b32.xlu0 %v1672_v8, %s2982_s0  ;;  %1567 = vrot.lane.b32.xlu2 %v1556_v5, %s2983_s4  ;;  %v1898_v46 = vrot.slane %v1892_v34, 3  ;;  %v1901_v52 = vrot.slane %v1892_v34, 6  ;;  %v1899_v54 = vrot.slane %v1892_v34, 4  ;;  %v1902_v30 = vrot.slane %v1892_v34, 7 }
0x16ca   :  { %v1904_v3 = vperm.slane %v1896_v38, 0  ;;  %v1908_v16 = vperm.slane %v1900_v20, 0  ;;  %v1905_v48 = vperm.slane %v1897_v35, 0  ;;  %v2019_v28 = vperm.slane %v2011_v26, 0 }
0x16cb   :  { %v1906_v50 = vperm.slane %v1898_v46, 0  ;;  %v1909_v58 = vperm.slane %v1901_v52, 0  ;;  %v1907_v61 = vperm.slane %v1899_v54, 0  ;;  %v1910_v62 = vperm.slane %v1902_v30, 0 }
0x16cc   :  { %v2010_v55 = vrot.slane %v2006_v1, 1  ;;  %v2020_v8 = vperm.slane %v2012_v13, 0  ;;  %v2023_v5 = vperm.slane %v2015_v12, 0  ;;  %v2013_v15 = vrot.slane %v2006_v1, 4  ;;  %v2186_v13 = vld [vmem:[#allocation11 + $0x18] sm:$0xff]  ;;  %v2184_v12 = vld [vmem:[#allocation11 + $0x8] sm:$0xff] }
0x16cd   :  { %2232 = vmatpush.msra.mxu2 %v2186_v13 }
0x16ce   :  { %v2018_v14 = vperm.slane %v2010_v55, 0 }
0x16cf   :  { %1680 = vrot.lane.b32.xlu1 %v1670_v17, %s2982_s0  ;;  %v3616_v47 = vpop.f32.mrf.mxu1 }
0x16d0   :  { %v2131_v51 = vperm.slane %v3616_v47, 0  ;;  %v2126_v56 = vrot.slane %v3616_v47, 3  ;;  %v2124_v49 = vrot.slane %v3616_v47, 1  ;;  %v2127_v60 = vrot.slane %v3616_v47, 4 }
0x16d1   :  { %1690 = vrot.lane.b32.xlu0 %v1675_v21, %s2982_s0  ;;  %1569 = vrot.lane.b32.xlu2 %v1557_v22, %s2983_s4  ;;  %v2125_v2 = vrot.slane %v3616_v47, 2  ;;  %v2130_v17 = vrot.slane %v3616_v47, 7  ;;  %v2014_v21 = vrot.slane %v2006_v1, 5  ;;  %v2021_v22 = vperm.slane %v2013_v15, 0 }
0x16d2   :  { %v2134_v59 = vperm.slane %v2126_v56, 0  ;;  %v2132_v57 = vperm.slane %v2124_v49, 0  ;;  %v2135_v0 = vperm.slane %v2127_v60, 0  ;;  %v2129_v34 = vrot.slane %v3616_v47, 6 }
0x16d3   :  { %v2133_v7 = vperm.slane %v2125_v2, 0  ;;  %v2138_v23 = vperm.slane %v2130_v17, 0  ;;  %v2022_v24 = vperm.slane %v2014_v21, 0 }
0x16d4   :  { %v2137_v37 = vperm.slane %v2129_v34, 0 }
0x16d7   :  { %1688 = vrot.lane.b32.xlu1 %v1674_v31, %s2982_s0  ;;  %v2016_v31 = vrot.slane %v2006_v1, 7 }
0x16d9   :  { %1565 = vrot.lane.b32.xlu0 %v1555_v32, %s2983_s4  ;;  %1575 = vrot.lane.b32.xlu2 %v1560_v33, %s2983_s4  ;;  %v2024_v36 = vperm.slane %v2016_v31, 0 }
0x16df   :  { %1563 = vrot.lane.b32.xlu1 %v1554_v4, %s2983_s4  ;;  %v2128_v4 = vrot.slane %v3616_v47, 5 }
0x16e1   :  { %1573 = vrot.lane.b32.xlu0 %v1559_v10, %s2983_s4  ;;  %1913 = vrot.lane.b32.xlu2 %v1904_v3, %s2963_s6  ;;  %v2136_v19 = vperm.slane %v2128_v4, 0 }
0x16e7   :  { %1571 = vrot.lane.b32.xlu1 %v1558_v27, %s2983_s4 }
0x16e9   :  { %1911 = vrot.lane.b32.xlu0 %v1903_v29, %s2963_s6  ;;  %1921 = vrot.lane.b32.xlu2 %v1908_v16, %s2963_s6 }
0x16ef   :  { %1915 = vrot.lane.b32.xlu1 %v1905_v48, %s2963_s6 }
0x16f1   :  { %1917 = vrot.lane.b32.xlu0 %v1906_v50, %s2963_s6  ;;  %2139 = vrot.lane.b32.xlu2 %v2131_v51, %s2982_s0 }
0x16f7   :  { %1923 = vrot.lane.b32.xlu1 %v1909_v58, %s2963_s6 }
0x16f9   :  { %1919 = vrot.lane.b32.xlu0 %v1907_v61, %s2963_s6  ;;  %2145 = vrot.lane.b32.xlu2 %v2134_v59, %s2982_s0 }
0x16ff   :  { %2141 = vrot.lane.b32.xlu1 %v2132_v57, %s2982_s0 }
0x1701   :  { %1925 = vrot.lane.b32.xlu0 %v1910_v62, %s2963_s6  ;;  %2147 = vrot.lane.b32.xlu2 %v2135_v0, %s2982_s0 }
0x1703   :  { %v1459_v11 = vpop.permute.xlu2 %1458 }
0x1704   :  { %1477 = vst.msk [vmem:[#allocation4 + $0xc] sm:$0x1] %vm1470_vm8, %v1459_v11 }
0x1707   :  { %2025 = vrot.lane.b32.xlu1 %v2017_v53, %s2983_s4 }
0x1709   :  { %2029 = vrot.lane.b32.xlu2 %v2019_v28, %s2983_s4  ;;  %2143 = vrot.lane.b32.xlu0 %v2133_v7, %s2982_s0 }
0x170b   :  { %v3636_v9 = vpop.permute.xlu2 %1678 }
0x170f   :  { %2031 = vrot.lane.b32.xlu1 %v2020_v8, %s2983_s4  ;;  %v2183_v8 = vld [vmem:[#allocation11] sm:$0xff] }
0x1711   :  { %2037 = vrot.lane.b32.xlu2 %v2023_v5, %s2983_s4  ;;  %2027 = vrot.lane.b32.xlu0 %v2018_v14, %s2983_s4 }
0x1713   :  { %v3641_v63 = vpop.permute.xlu2 %1686 }
0x1717   :  { %2033 = vrot.lane.b32.xlu1 %v2021_v22, %s2983_s4 }
0x1719   :  { %v1447_v25 = vpop.permute.xlu1 %1446  ;;  %2153 = vrot.lane.b32.xlu2 %v2138_v23, %s2982_s0  ;;  %2035 = vrot.lane.b32.xlu0 %v2022_v24, %s2983_s4 }
0x171a   :  { %1471 = vst.msk [vmem:[#allocation4] sm:$0x1] %vm1470_vm8, %v1447_v25 }
0x171b   :  { %v1451_v32 = vpop.permute.xlu0 %1450  ;;  %v1562_v33 = vpop.permute.xlu2 %1561 }
0x171c   :  { %1473 = vst.msk [vmem:[#allocation4 + $0x4] sm:$0x1] %vm1470_vm8, %v1451_v32 }
0x171d   :  { %1586 = vst.msk [vmem:[#allocation4] sm:$0x1] %vm1585_vm9, %v1562_v33 }
0x171f   :  { %2039 = vrot.lane.b32.xlu1 %v2024_v36, %s2983_s4 }
0x1721   :  { %v1449_v38 = vpop.permute.xlu1 %1448  ;;  %2151 = vrot.lane.b32.xlu0 %v2137_v37, %s2982_s0 }
0x1722   :  { %1472 = vst.msk [vmem:[#allocation4 + $0x2] sm:$0x1] %vm1470_vm8, %v1449_v38 }
0x1723   :  { %v1457_v10 = vpop.permute.xlu0 %1456  ;;  %v1568_v3 = vpop.permute.xlu2 %1567 }
0x1724   :  { %1476 = vst.msk [vmem:[#allocation4 + $0xa] sm:$0x1] %vm1470_vm8, %v1457_v10 }
0x1727   :  { %2149 = vrot.lane.b32.xlu1 %v2136_v19, %s2982_s0 }
0x1729   :  { %v1453_v20 = vpop.permute.xlu1 %1452 }
0x172a   :  { %1474 = vst.msk [vmem:[#allocation4 + $0x6] sm:$0x1] %vm1470_vm8, %v1453_v20 }
0x172b   :  { %1589 = vst.msk [vmem:[#allocation4 + $0x6] sm:$0x1] %vm1585_vm9, %v1568_v3  ;;  %v1677_v27 = vpop.permute.xlu0 %1676  ;;  %v1570_v29 = vpop.permute.xlu2 %1569 }
0x172c   :  { %1701 = vst.msk [vmem:[#allocation4] sm:$0x1] %vm1700_vm10, %v1677_v27 }
0x1731   :  { %v1455_v16 = vpop.permute.xlu1 %1454 }
0x1732   :  { %1475 = vst.msk [vmem:[#allocation4 + $0x8] sm:$0x1] %vm1470_vm8, %v1455_v16 }
0x1733   :  { %1590 = vst.msk [vmem:[#allocation4 + $0x8] sm:$0x1] %vm1585_vm9, %v1570_v29  ;;  %v1683_v35 = vpop.permute.xlu0 %1682  ;;  %v1576_v46 = vpop.permute.xlu2 %1575 }
0x1734   :  { %1704 = vst.msk [vmem:[#allocation4 + $0x6] sm:$0x1] %vm1700_vm10, %v1683_v35 }
0x1739   :  { %v1461_v47 = vpop.permute.xlu1 %1460 }
0x173a   :  { %1478 = vst.msk [vmem:[#allocation4 + $0xe] sm:$0x1] %vm1470_vm8, %v1461_v47 }
0x173b   :  { %1593 = vst.msk [vmem:[#allocation4 + $0xe] sm:$0x1] %vm1585_vm9, %v1576_v46  ;;  %v1685_v48 = vpop.permute.xlu0 %1684  ;;  %v1914_v50 = vpop.permute.xlu2 %1913 }
0x173c   :  { %1705 = vst.msk [vmem:[#allocation4 + $0x8] sm:$0x1] %vm1700_vm10, %v1685_v48 }
0x173d   :  { %1936 = vst.msk [vmem:[#allocation4 + $0x3] sm:$0x1] %vm1470_vm8, %v1914_v50 }
0x1741   :  { %v1681_v51 = vpop.permute.xlu1 %1680 }
0x1743   :  { %v1691_v52 = vpop.permute.xlu0 %1690  ;;  %v1922_v54 = vpop.permute.xlu2 %1921 }
0x1744   :  { %1708 = vst.msk [vmem:[#allocation4 + $0xe] sm:$0x1] %vm1700_vm10, %v1691_v52 }
0x1745   :  { %1940 = vst.msk [vmem:[#allocation4 + $0xb] sm:$0x1] %vm1470_vm8, %v1922_v54  ;;  %v2323_v54 = vld [vmem:[#allocation13 + $0x18] sm:$0xff] }
0x1746   :  { %2346 = vmatpush.msra.mxu3 %v2323_v54 }
0x1749   :  { %v1689_v56 = vpop.permute.xlu1 %1688 }
0x174b   :  { %v1566_v58 = vpop.permute.xlu0 %1565  ;;  %v2140_v61 = vpop.permute.xlu2 %2139 }
0x174c   :  { %1588 = vst.msk [vmem:[#allocation4 + $0x4] sm:$0x1] %vm1585_vm9, %v1566_v58  ;;  %v2321_v58 = vld [vmem:[#allocation13 + $0x8] sm:$0xff] }
0x174d   :  { %1703 = vst.msk [vmem:[#allocation4 + $0x4] sm:$0x1] %vm1700_vm10, %v1681_v51 }
0x1751   :  { %v1564_v59 = vpop.permute.xlu1 %1563 }
0x1752   :  { %1587 = vst.msk [vmem:[#allocation4 + $0x2] sm:$0x1] %vm1585_vm9, %v1564_v59 }
0x1753   :  { %1702 = vst.msk [vmem:[#allocation4 + $0x2] sm:$0x1] %vm1700_vm10, %v3636_v9  ;;  %v1574_v49 = vpop.permute.xlu0 %1573  ;;  %v2146_v30 = vpop.permute.xlu2 %2145  ;;  %v2185_v9 = vld [vmem:[#allocation11 + $0x10] sm:$0xff] }
0x1754   :  { %1592 = vst.msk [vmem:[#allocation4 + $0xc] sm:$0x1] %vm1585_vm9, %v1574_v49  ;;  %2233 = vmatpush.msra.mxu2 %v2185_v9  ;;  %v2363_v9 = vld [vmem:[%s3808_s20 + $0x20] sm:$0xff] }
0x1755   :  { %1707 = vst.msk [vmem:[#allocation4 + $0xc] sm:$0x1] %vm1700_vm10, %v1689_v56  ;;  %v2322_v56 = vld [vmem:[#allocation13 + $0x10] sm:$0xff] }
0x1756   :  { %2234 = vmatpush.msra.mxu2 %v2184_v12  ;;  %2347 = vmatpush.msra.mxu3 %v2322_v56 }
0x1758   :  { %2235 = vmatpush.msra.mxu2 %v2183_v8  ;;  %2348 = vmatpush.msra.mxu3 %v2321_v58 }
0x1759   :  { %v1572_v60 = vpop.permute.xlu1 %1571 }
0x175a   :  { %1591 = vst.msk [vmem:[#allocation4 + $0xa] sm:$0x1] %vm1585_vm9, %v1572_v60 }
0x175b   :  { %1706 = vst.msk [vmem:[#allocation4 + $0xa] sm:$0x1] %vm1700_vm10, %v3641_v63  ;;  %v1912_v57 = vpop.permute.xlu0 %1911  ;;  %v2148_v62 = vpop.permute.xlu2 %2147 }
0x175c   :  { %1935 = vst.msk [vmem:[#allocation4 + $0x1] sm:$0x1] %vm1470_vm8, %v1912_v57 }
0x1761   :  { %v1916_v0 = vpop.permute.xlu1 %1915 }
0x1762   :  { %1937 = vst.msk [vmem:[#allocation4 + $0x5] sm:$0x1] %vm1470_vm8, %v1916_v0 }
0x1763   :  { %v1918_v1 = vpop.permute.xlu0 %1917  ;;  %v2030_v11 = vpop.permute.xlu2 %2029 }
0x1764   :  { %1938 = vst.msk [vmem:[#allocation4 + $0x7] sm:$0x1] %vm1470_vm8, %v1918_v1  ;;  %v2366_v1 = vld [vmem:[%s3808_s20 + $0x38] sm:$0xff] }
0x1765   :  { %2051 = vst.msk [vmem:[#allocation4 + $0x5] sm:$0x1] %vm1585_vm9, %v2030_v11  ;;  %v2365_v11 = vld [vmem:[%s3808_s20 + $0x30] sm:$0xff]  ;;  %2386 = vmatpush.msra.mxu0 %v2366_v1 }
0x1767   :  { %2387 = vmatpush.msra.mxu0 %v2365_v11 }
0x1769   :  { %v1924_v26 = vpop.permute.xlu1 %1923 }
0x176a   :  { %1941 = vst.msk [vmem:[#allocation4 + $0xd] sm:$0x1] %vm1470_vm8, %v1924_v26 }
0x176b   :  { %v1920_v2 = vpop.permute.xlu0 %1919  ;;  %v2038_v53 = vpop.permute.xlu2 %2037 }
0x176c   :  { %1939 = vst.msk [vmem:[#allocation4 + $0x9] sm:$0x1] %vm1470_vm8, %v1920_v2  ;;  %v2364_v2 = vld [vmem:[%s3808_s20 + $0x28] sm:$0xff] }
0x176d   :  { %2055 = vst.msk [vmem:[#allocation4 + $0xd] sm:$0x1] %vm1585_vm9, %v2038_v53  ;;  %2388 = vmatpush.msra.mxu0 %v2364_v2 }
0x176f   :  { %2389 = vmatpush.msra.mxu0 %v2363_v9 }
0x1771   :  { %v2142_v28 = vpop.permute.xlu1 %2141 }
0x1773   :  { %v1926_v7 = vpop.permute.xlu0 %1925  ;;  %v2154_v32 = vpop.permute.xlu2 %2153 }
0x1774   :  { %1942 = vst.msk [vmem:[#allocation4 + $0xf] sm:$0x1] %vm1470_vm8, %v1926_v7  ;;  %v2614_v7 = vld [vmem:[%s3804_s16] ss:$0 sm:$0xff] }
0x1779   :  { %v2026_v55 = vpop.permute.xlu1 %2025 }
0x177a   :  { %2049 = vst.msk [vmem:[#allocation4 + $0x1] sm:$0x1] %vm1585_vm9, %v2026_v55 }
0x177b   :  { %2163 = vst.msk [vmem:[#allocation4 + $0x1] sm:$0x1] %vm1700_vm10, %v2140_v61  ;;  %v2144_v5 = vpop.permute.xlu0 %2143  ;;  %v2320_v61 = vld [vmem:[#allocation13] sm:$0xff] }
0x177c   :  { %2165 = vst.msk [vmem:[#allocation4 + $0x5] sm:$0x1] %vm1700_vm10, %v2144_v5  ;;  %2349 = vmatpush.msra.mxu3 %v2320_v61  ;;  %v2615_v5 = vld [vmem:[%s3805_s17] ss:$0 sm:$0xff] }
0x1781   :  { %v2032_v14 = vpop.permute.xlu1 %2031 }
0x1782   :  { %v2175_v15 = vld [vmem:[#allocation4] sm:$0x3]  ;;  %2052 = vst.msk [vmem:[#allocation4 + $0x7] sm:$0x1] %vm1585_vm9, %v2032_v14  ;;  %v2362_v14 = vld [vmem:[%s3808_s20 + $0x18] sm:$0xff] }
0x1783   :  { %2199 = vst [vmem:[#allocation1] ss:$4 sm:$0xff] %v2175_v15  ;;  %v2177_v63 = vld [vmem:[#allocation4 + $0x4] sm:$0x3]  ;;  %v2028_v17 = vpop.permute.xlu0 %2027  ;;  %2390 = vmatpush.msra.mxu0 %v2362_v14 }
0x1784   :  { %2203 = vst [vmem:[#allocation1 + $0x2] ss:$4 sm:$0xff] %v2177_v63 }
0x1785   :  { %2166 = vst.msk [vmem:[#allocation4 + $0x7] sm:$0x1] %vm1700_vm10, %v2146_v30 }
0x1786   :  { %2050 = vst.msk [vmem:[#allocation4 + $0x3] sm:$0x1] %vm1585_vm9, %v2028_v17 }
0x1787   :  { %2164 = vst.msk [vmem:[#allocation4 + $0x3] sm:$0x1] %vm1700_vm10, %v2142_v28 }
0x1789   :  { %v2034_v21 = vpop.permute.xlu1 %2033 }
0x178a   :  { %2053 = vst.msk [vmem:[#allocation4 + $0x9] sm:$0x1] %vm1585_vm9, %v2034_v21 }
0x178b   :  { %2167 = vst.msk [vmem:[#allocation4 + $0x9] sm:$0x1] %vm1700_vm10, %v2148_v62  ;;  %v2036_v22 = vpop.permute.xlu0 %2035 }
0x178c   :  { %v2178_v23 = vld [vmem:[#allocation4 + $0x6] sm:$0x3]  ;;  %2054 = vst.msk [vmem:[#allocation4 + $0xb] sm:$0x1] %vm1585_vm9, %v2036_v22 }
0x178d   :  { %2205 = vst [vmem:[#allocation1 + $0x3] ss:$4 sm:$0xff] %v2178_v23 }
0x178e   :  { %v2176_v24 = vld [vmem:[#allocation4 + $0x2] sm:$0x3] }
0x178f   :  { %2201 = vst [vmem:[#allocation1 + $0x1] ss:$4 sm:$0xff] %v2176_v24 }
0x1791   :  { %v2040_v25 = vpop.permute.xlu1 %2039 }
0x1792   :  { %v2179_v31 = vld [vmem:[#allocation4 + $0x8] sm:$0x3]  ;;  %2056 = vst.msk [vmem:[#allocation4 + $0xf] sm:$0x1] %vm1585_vm9, %v2040_v25 }
0x1793   :  { %2207 = vst [vmem:[#allocation1 + $0x20] ss:$4 sm:$0xff] %v2179_v31  ;;  %v2152_v33 = vpop.permute.xlu0 %2151 }
0x1794   :  { %2170 = vst.msk [vmem:[#allocation4 + $0xf] sm:$0x1] %vm1700_vm10, %v2154_v32 }
0x1795   :  { %2169 = vst.msk [vmem:[#allocation4 + $0xd] sm:$0x1] %vm1700_vm10, %v2152_v33 }
0x1796   :  { %v2214_v34 = vld.sshfl [vmem:[#allocation1] sm:$0xff pattern:$0x73625140] }
0x1797   :  { %2567 = vmatmul.msk.f32.vlgmr.msra.gmra.mxu2 %vm227_vm0, %v2214_v34  ;;  %2245 = vst [vmem:[#allocation1] ss:$4 sm:$0xff] %v3355_v42  ;;  %v2613_v42 = vld [vmem:[%s3803_s15] ss:$0 sm:$0xff]  ;;  %s2500_s15 = sshll.u32 %s3813_s25, 4  ;;  %s2501_s15 = int_to_ptr.hbm [resolvable:$true] %s2500_s15 }
0x1798   :  { %2247 = vst [vmem:[#allocation1 + $0x1] ss:$4 sm:$0xff] %v3359_v43 }
0x1799   :  { %2249 = vst [vmem:[#allocation1 + $0x2] ss:$4 sm:$0xff] %v3363_v44  ;;  %v2150_v36 = vpop.permute.xlu1 %2149 }
0x179a   :  { %2251 = vst [vmem:[#allocation1 + $0x3] ss:$4 sm:$0xff] %v3367_v45 }
0x179b   :  { %v2182_v37 = vld [vmem:[#allocation4 + $0xe] sm:$0x3]  ;;  %2168 = vst.msk [vmem:[#allocation4 + $0xb] sm:$0x1] %vm1700_vm10, %v2150_v36 }
0x179c   :  { %2213 = vst [vmem:[#allocation1 + $0x23] ss:$4 sm:$0xff] %v2182_v37  ;;  %v2181_v38 = vld [vmem:[#allocation4 + $0xc] sm:$0x3]  ;;  %v2360_v37 = vld [vmem:[%s3808_s20 + $0x8] sm:$0xff] }
0x179d   :  { %2211 = vst [vmem:[#allocation1 + $0x22] ss:$4 sm:$0xff] %v2181_v38  ;;  %v2361_v36 = vld [vmem:[%s3808_s20 + $0x10] sm:$0xff]  ;;  %v2359_v38 = vld [vmem:[%s3808_s20] sm:$0xff]  ;;  %s2984_s20 = smov [#allocation18]  }
0x179e   :  { %2391 = vmatpush.msra.mxu0 %v2361_v36  ;;  %s2498_s4 = sshll.u32 %s2984_s20, 4  ;;  %s2499_s4 = int_to_ptr.vmem [resolvable:$true] %s2498_s4 }
0x179f   :  { %2506 = dma.vmem_to_hbm [thread:$0]  %s2499_s4, 256, %s2501_s15, [#allocation19], %s2962_s2, %s2962_s2, %s2963_s6  }
0x17a0   :  { %2392 = vmatpush.msra.mxu0 %v2360_v37 }
0x17a1   :  { %v2260_v45 = vld.sshfl [vmem:[#allocation1] sm:$0xff pattern:$0x73625140] }
0x17a2   :  { %v2180_v4 = vld [vmem:[#allocation4 + $0xa] sm:$0x3]  ;;  %2393 = vmatpush.msra.mxu0 %v2359_v38 }
0x17a3   :  { %2209 = vst [vmem:[#allocation1 + $0x21] ss:$4 sm:$0xff] %v2180_v4  ;;  %v2616_v4 = vld [vmem:[#allocation14] ss:$0 sm:$0xff] }
0x17aa   :  { %v2215_v10 = vld.sshfl [vmem:[#allocation1 + $0x20] sm:$0xff pattern:$0x73625140] }
0x17ab   :  { %2568 = vmatmul.msk.f32.gmra.mxu2 %vm227_vm0, %v2215_v10  ;;  %2253 = vst [vmem:[#allocation1 + $0x20] ss:$4 sm:$0xff] %v3398_v40 }
0x17ac   :  { %2255 = vst [vmem:[#allocation1 + $0x21] ss:$4 sm:$0xff] %v3402_v6 }
0x17ad   :  { %2257 = vst [vmem:[#allocation1 + $0x22] ss:$4 sm:$0xff] %v3406_v41 }
0x17ae   :  { %2259 = vst [vmem:[#allocation1 + $0x23] ss:$4 sm:$0xff] %v3410_v18 }
0x17b5   :  { %v2261_v40 = vld.sshfl [vmem:[#allocation1 + $0x20] sm:$0xff pattern:$0x73625140] }
0x181a   :  { %v2237_v43 = vpop.f32.mrf.mxu2 }
0x181b   :  { %v2238_v44 = vadd.f32 %v2613_v42, %v2237_v43 }
0x181d   :  { %v2264_v3 = vadd.f32 %v2260_v45, %v2238_v44 }
0x181f   :  { %v2266_v19 = vsel %vm227_vm0, %v2264_v3, 0.0 }
0x1820   :  { %2267 = vadd.xlane.f32.xlu1 %v2266_v19  ;;  %v2617_v19 = vld [vmem:[#allocation16] ss:$0 sm:$0xff] }
0x182e   :  { %v2240_v20 = vpop.f32.mrf.mxu2 }
0x182f   :  { %v2241_v27 = vadd.f32 %v2613_v42, %v2240_v20 }
0x1831   :  { %v2265_v29 = vadd.f32 %v2261_v40, %v2241_v27 }
0x1833   :  { %v2269_v6 = vsel %vm227_vm0, %v2265_v29, 0.0 }
0x1834   :  { %2270 = vadd.xlane.f32.xlu0 %v2269_v6 }
0x1893   :  { %v2268_v41 = vpop.xlane.xlu1 %2267 }
0x1894   :  { %v2272_v18 = vmul.f32 %v2268_v41, %v3287_v39 }
0x1896   :  { %v2274_v16 = vsub.f32 %v2264_v3, %v2272_v18 }
0x1898   :  { %v2276_v35 = vmul.f32 %v2274_v16, %v2274_v16 }
0x189a   :  { %v2278_v46 = vsel %vm227_vm0, %v2276_v35, 0.0 }
0x189b   :  { %2279 = vadd.xlane.f32.xlu2 %v2278_v46 }
0x18a7   :  { %v2271_v47 = vpop.xlane.xlu0 %2270 }
0x18a8   :  { %v2273_v48 = vmul.f32 %v2271_v47, %v3287_v39 }
0x18aa   :  { %v2275_v50 = vsub.f32 %v2265_v29, %v2273_v48 }
0x18ac   :  { %v2277_v51 = vmul.f32 %v2275_v50, %v2275_v50 }
0x18ae   :  { %v2281_v52 = vsel %vm227_vm0, %v2277_v51, 0.0 }
0x18af   :  { %2282 = vadd.xlane.f32.xlu1 %v2281_v52 }
0x190e   :  { %v2280_v59 = vpop.xlane.xlu2 %2279 }
0x190f   :  { %v2284_v49 = vmul.f32 %v2280_v59, %v3287_v39 }
0x1911   :  { %v2286_v30 = vadd.f32 1e-05, %v2284_v49 }
0x1913   :  { %2722 = vrsqrt.f32 %v2286_v30  ;;  %vm2294_vm12 = vweird.f32 %v2286_v30 }
0x1919   :  { %v2723_v60 = vpop.eup %2722 }
0x191a   :  { %v2289_v57 = vmul.f32 %v2723_v60, %v2286_v30  ;;  %vm2295_vm11 = vweird.f32 %v2723_v60 }
0x191b   :  { %vm2296_vm13 = vmor %vm2294_vm12, %vm2295_vm11 }
0x191c   :  { %v2290_v62 = vmul.f32 %v2723_v60, %v2289_v57 }
0x191e   :  { %v2291_v0 = vmul.f32 0.5, %v2290_v62 }
0x1920   :  { %v2292_v26 = vsub.f32 1.5, %v2291_v0 }
0x1922   :  { %v2293_v53 = vmul.f32 %v2723_v60, %v2292_v26  ;;  %v2283_v28 = vpop.xlane.xlu1 %2282  ;;  %v2618_v26 = vld [vmem:[%s3810_s22] ss:$0 sm:$0xff]  ;;  %s2985_s22 = smov [#allocation17]  }
0x1923   :  { %v2285_v13 = vmul.f32 %v2283_v28, %v3287_v39  ;;  %v2619_v28 = vld [vmem:[%s3811_s23] ss:$0 sm:$0xff]  ;;  %s2485_s23 = sshll.u32 %s2985_s22, 4  ;;  %s2486_s23 = int_to_ptr.vmem [resolvable:$true] %s2485_s23 }
0x1924   :  { %v2297_v12 = vsel %vm2296_vm13, %v2723_v60, %v2293_v53 }
0x1925   :  { %v2308_v55 = vmul.f32 %v2297_v12, %v2274_v16  ;;  %v2287_v8 = vadd.f32 1e-05, %v2285_v13 }
0x1927   :  { %v2313_v15 = vmul.f32 %v2614_v7, %v2308_v55  ;;  %2724 = vrsqrt.f32 %v2287_v8  ;;  %vm2304_vm15 = vweird.f32 %v2287_v8 }
0x1929   :  { %v2318_v63 = vadd.f32 %v2615_v5, %v2313_v15 }
0x192b   :  { %2569 = vmatmul.msk.f32.vlgmr.msra.gmra.mxu3 %vm227_vm0, %v2318_v63 }
0x192d   :  { %v2725_v17 = vpop.eup %2724 }
0x192e   :  { %v2299_v21 = vmul.f32 %v2725_v17, %v2287_v8  ;;  %vm2305_vm14 = vweird.f32 %v2725_v17 }
0x192f   :  { %vm2306_vm1 = vmor %vm2304_vm15, %vm2305_vm14 }
0x1930   :  { %v2300_v22 = vmul.f32 %v2725_v17, %v2299_v21 }
0x1932   :  { %v2301_v23 = vmul.f32 0.5, %v2300_v22 }
0x1934   :  { %v2302_v24 = vsub.f32 1.5, %v2301_v23 }
0x1936   :  { %v2303_v25 = vmul.f32 %v2725_v17, %v2302_v24 }
0x1938   :  { %v2307_v31 = vsel %vm2306_vm1, %v2725_v17, %v2303_v25 }
0x1939   :  { %v2309_v32 = vmul.f32 %v2307_v31, %v2275_v50 }
0x193b   :  { %v2314_v33 = vmul.f32 %v2614_v7, %v2309_v32 }
0x193d   :  { %v2319_v34 = vadd.f32 %v2615_v5, %v2314_v33 }
0x193f   :  { %2570 = vmatmul.msk.f32.gmra.mxu3 %vm227_vm0, %v2319_v34 }
0x19ae   :  { %v2351_v10 = vpop.f32.mrf.mxu3 }
0x19af   :  { %v2352_v42 = vadd.f32 %v2616_v4, %v2351_v10 }
0x19b1   :  { %v2357_v43 = vmax.f32 %v2352_v42, 0.0 }
0x19b3   :  { %2571 = vmatmul.msk.f32.vlgmr.msra.gmra.mxu0 %vm2371_vm2, %v2357_v43 }
0x19c2   :  { %v2354_v44 = vpop.f32.mrf.mxu3 }
0x19c3   :  { %v2355_v45 = vadd.f32 %v2616_v4, %v2354_v44 }
0x19c5   :  { %v2358_v3 = vmax.f32 %v2355_v45, 0.0 }
0x19c7   :  { %2572 = vmatmul.msk.f32.gmra.mxu0 %vm2371_vm2, %v2358_v3 }
0x1a30   :  { %v2395_v20 = vpop.f32.mrf.mxu0 }
0x1a31   :  { %v2396_v27 = vadd.f32 %v2617_v19, %v2395_v20 }
0x1a33   :  { %v2403_v40 = vadd.f32 %v2396_v27, %v2318_v63 }
0x1a35   :  { %v2405_v29 = vsel %vm227_vm0, %v2403_v40, 0.0 }
0x1a36   :  { %2406 = vadd.xlane.f32.xlu0 %v2405_v29 }
0x1a44   :  { %v2398_v6 = vpop.f32.mrf.mxu0 }
0x1a45   :  { %v2399_v41 = vadd.f32 %v2617_v19, %v2398_v6 }
0x1a47   :  { %v2404_v18 = vadd.f32 %v2399_v41, %v2319_v34 }
0x1a49   :  { %v2408_v16 = vsel %vm227_vm0, %v2404_v18, 0.0 }
0x1a4a   :  { %2409 = vadd.xlane.f32.xlu2 %v2408_v16 }
0x1aa9   :  { %v2407_v35 = vpop.xlane.xlu0 %2406 }
0x1aaa   :  { %v2411_v46 = vmul.f32 %v2407_v35, %v3287_v39 }
0x1aac   :  { %v2413_v47 = vsub.f32 %v2403_v40, %v2411_v46 }
0x1aae   :  { %v2415_v48 = vmul.f32 %v2413_v47, %v2413_v47 }
0x1ab0   :  { %v2417_v50 = vsel %vm227_vm0, %v2415_v48, 0.0 }
0x1ab1   :  { %2418 = vadd.xlane.f32.xlu1 %v2417_v50 }
0x1abd   :  { %v2410_v51 = vpop.xlane.xlu2 %2409 }
0x1abe   :  { %v2412_v52 = vmul.f32 %v2410_v51, %v3287_v39 }
0x1ac0   :  { %v2414_v54 = vsub.f32 %v2404_v18, %v2412_v52 }
0x1ac2   :  { %v2416_v56 = vmul.f32 %v2414_v54, %v2414_v54 }
0x1ac4   :  { %v2420_v58 = vsel %vm227_vm0, %v2416_v56, 0.0 }
0x1ac5   :  { %2421 = vadd.xlane.f32.xlu0 %v2420_v58 }
0x1b24   :  { %v2419_v61 = vpop.xlane.xlu1 %2418 }
0x1b25   :  { %v2423_v59 = vmul.f32 %v2419_v61, %v3287_v39 }
0x1b27   :  { %v2425_v49 = vadd.f32 1e-05, %v2423_v59 }
0x1b29   :  { %2726 = vrsqrt.f32 %v2425_v49  ;;  %vm2433_vm3 = vweird.f32 %v2425_v49 }
0x1b2f   :  { %v2727_v30 = vpop.eup %2726 }
0x1b30   :  { %v2428_v60 = vmul.f32 %v2727_v30, %v2425_v49  ;;  %vm2434_vm0 = vweird.f32 %v2727_v30 }
0x1b31   :  { %vm2435_vm4 = vmor %vm2433_vm3, %vm2434_vm0 }
0x1b32   :  { %v2429_v57 = vmul.f32 %v2727_v30, %v2428_v60 }
0x1b34   :  { %v2430_v62 = vmul.f32 0.5, %v2429_v57 }
0x1b36   :  { %v2431_v0 = vsub.f32 1.5, %v2430_v62 }
0x1b38   :  { %v2432_v1 = vmul.f32 %v2727_v30, %v2431_v0  ;;  %v2422_v11 = vpop.xlane.xlu0 %2421 }
0x1b39   :  { %v2424_v2 = vmul.f32 %v2422_v11, %v3287_v39 }
0x1b3a   :  { %v2436_v53 = vsel %vm2435_vm4, %v2727_v30, %v2432_v1 }
0x1b3b   :  { %v2447_v7 = vmul.f32 %v2436_v53, %v2413_v47  ;;  %v2426_v13 = vadd.f32 1e-05, %v2424_v2 }
0x1b3d   :  { %v2452_v9 = vmul.f32 %v2618_v26, %v2447_v7  ;;  %2728 = vrsqrt.f32 %v2426_v13  ;;  %vm2443_vm7 = vweird.f32 %v2426_v13 }
0x1b3f   :  { %v2457_v12 = vadd.f32 %v2619_v28, %v2452_v9 }
0x1b41   :  { %v2461_v55 = vrot.slane %v2457_v12, 2  ;;  %v2462_v8 = vrot.slane %v2457_v12, 4  ;;  %v2463_v5 = vrot.slane %v2457_v12, 6  ;;  %2473 = vst.msk [vmem:[#allocation17] sm:$0x3] %vm353_vm5, %v2457_v12 }
0x1b43   :  { %v2729_v14 = vpop.eup %2728  ;;  %2474 = vst.msk [vmem:[#allocation17 + $0x2] sm:$0x3] %vm353_vm5, %v2461_v55 }
0x1b44   :  { %2475 = vst.msk [vmem:[#allocation17 + $0x4] sm:$0x3] %vm353_vm5, %v2462_v8  ;;  %v2438_v39 = vmul.f32 %v2729_v14, %v2426_v13  ;;  %vm2444_vm6 = vweird.f32 %v2729_v14 }
0x1b45   :  { %2476 = vst.msk [vmem:[#allocation17 + $0x6] sm:$0x3] %vm353_vm5, %v2463_v5  ;;  %vm2445_vm8 = vmor %vm2443_vm7, %vm2444_vm6 }
0x1b46   :  { %v2439_v15 = vmul.f32 %v2729_v14, %v2438_v39 }
0x1b48   :  { %v2440_v63 = vmul.f32 0.5, %v2439_v15 }
0x1b4a   :  { %v2441_v17 = vsub.f32 1.5, %v2440_v63 }
0x1b4c   :  { %v2442_v21 = vmul.f32 %v2729_v14, %v2441_v17 }
0x1b4e   :  { %v2446_v22 = vsel %vm2445_vm8, %v2729_v14, %v2442_v21 }
0x1b4f   :  { %v2448_v23 = vmul.f32 %v2446_v22, %v2414_v54 }
0x1b51   :  { %v2453_v24 = vmul.f32 %v2618_v26, %v2448_v23 }
0x1b53   :  { %v2458_v25 = vadd.f32 %v2619_v28, %v2453_v24 }
0x1b55   :  { %v2464_v31 = vrot.slane %v2458_v25, 2  ;;  %v2465_v32 = vrot.slane %v2458_v25, 4  ;;  %v2466_v33 = vrot.slane %v2458_v25, 6  ;;  %2477 = vst.msk [vmem:[#allocation17 + $0x8] sm:$0x3] %vm353_vm5, %v2458_v25 }
0x1b57   :  { %2478 = vst.msk [vmem:[#allocation17 + $0xa] sm:$0x3] %vm353_vm5, %v2464_v31 }
0x1b58   :  { %2479 = vst.msk [vmem:[#allocation17 + $0xc] sm:$0x3] %vm353_vm5, %v2465_v32 }
0x1b59   :  { %2480 = vst.msk [vmem:[#allocation17 + $0xe] sm:$0x3] %vm353_vm5, %v2466_v33 }
0x1b5a   :  { %2493 = dma.vmem_to_hbm [thread:$0]  %s2486_s23, 256, %s2488_s11, [#allocation7], %s3832_s24, %s3832_s24, %s2960_s1  }
0x1b5b   :  { %2954 = dma.done.wait [#allocation7], 256  }
0x1b5c   :  { %2955 = vsyncadd [#allocation7], 4294967040 }
0x1b5d   :  { %2956 = dma.done.wait [#allocation19], 256  }
0x1b5e   :  { %2957 = vsyncadd [#allocation19], 4294967040 }
0x1b5f   :  { %2515 = vsyncpa [#allocation6], 1 }
0x1b60   :  { %2516 = vsyncpa [#allocation9], 1 }
0x1b61   :  { %2517 = vsyncpa [#allocation12], 1 }
0x1b62   :  { %2518 = vsyncpa [#allocation15], 1 }
0x1b63   :  { %2519 = vsyncpa [#allocation7], 1 }
0x1b64   :  { %2520 = vsyncpa [#allocation19], 1 }

</bundles_post_ra>
